<compile_context>
chip_gen: v7x
topology: tpu7x:2x2x1
jax: 0.10.0
libtpu: 0.0.40
codegen_flags: <defaults>
</compile_context>

<pallas_src>
import numpy as np

import jax
import jax.numpy as jnp
from jax.experimental import pallas as pl
from jax.experimental.pallas import tpu as pltpu

LANE = 128


# ------------------------------ fused kernel --------------------------------

def _lenet_fused_kernel(x_ref, w1_ref, b1_ref, w2_ref, b2_ref,
                        wf1_ref, bf1_ref, wf2_ref, bf2_ref, wf3_ref, bf3_ref,
                        o_ref, p1_s, p2_s):
    """Whole LeNet forward for one sample; every intermediate stays in VMEM.

    x_ref : (1, 4, 8, 96)  row-phase-split input: [0, p, r, 3*w + c] = x[c, 4r+p, w]
    w1_ref: (5, 2, 96, 84) BN-folded conv1 weight, banded + column-phase expanded
    b1_ref: (1, 84)        BN-folded conv1 bias, tiled over (jo, o) columns
    w2_ref: (5, 2, 84, 80) conv2 weight, banded + column-phase expanded
    b2_ref: (1, 80)
    wf1_ref:(5, 80, 128)   fc1 weight, rows permuted to the (io, jo, c) layout
    wf2/wf3:(128, 128)     fc2 / fc3 weights zero-padded to lane-dense tiles
    o_ref : (1, 1, 128)    logits (first 10 lanes real)
    p1_s  : (2, 7, 84)     pooled conv1 act: [q, r, jo*6 + o]  = p1[o, 2r+q, jo]
    p2_s  : (5, 80)        pooled conv2 act: [io, jo*16 + o]   = p2[o, io, jo]
    """
    # --- Stage 1: conv1 (BN pre-folded) -> ReLU -> 2x2 max pool ---------------
    b1 = b1_ref[...]
    for q in range(2):                       # parity of the pooled output row
        best = None
        for ib in range(2):                  # pooling phase: conv row parity
            for jb in range(2):              # pooling phase: conv col parity
                acc = None
                for dh in range(5):          # conv kernel row
                    m = 2 * q + ib + dh      # raw input row = 4*rr + m
                    xs = x_ref[0, m % 4, pl.ds(m // 4, 7), :]           # (7, 96)
                    d = jnp.dot(xs, w1_ref[dh, jb],
                                preferred_element_type=jnp.float32)     # (7, 84)
                    acc = d if acc is None else acc + d
                best = acc if best is None else jnp.maximum(best, acc)
        # relu(max_phases + bias) == pool(relu(conv + bias))
        p1_s[q] = jnp.maximum(best + b1, 0.0)                           # (7, 84)

    # --- Stage 2: conv2 -> ReLU -> 2x2 max pool (input read from VMEM) -------
    b2 = b2_ref[...]
    best2 = None
    for ib in range(2):
        for jb in range(2):
            acc = None
            for dh in range(5):
                m = ib + dh                  # p1 row = 2*io + m
                ps = p1_s[m % 2, pl.ds(m // 2, 5), :]                   # (5, 84)
                d = jnp.dot(ps, w2_ref[dh, jb],
                            preferred_element_type=jnp.float32)         # (5, 80)
                acc = d if acc is None else acc + d
            best2 = acc if best2 is None else jnp.maximum(best2, acc)
    p2_s[...] = jnp.maximum(best2 + b2, 0.0)                            # (5, 80)

    # --- Stage 3: torch-order flatten (folded into wf1) -> fc1 -> fc2 -> fc3 --
    h = bf1_ref[...]                                                    # (1, 128)
    for io in range(5):
        h = h + jnp.dot(p2_s[pl.ds(io, 1), :], wf1_ref[io],
                        preferred_element_type=jnp.float32)
    h = jnp.maximum(h, 0.0)
    h = jnp.maximum(
        jnp.dot(h, wf2_ref[...], preferred_element_type=jnp.float32) + bf2_ref[...],
        0.0)
    o_ref[0] = (jnp.dot(h, wf3_ref[...], preferred_element_type=jnp.float32)
                + bf3_ref[...])


def _fused_forward_call(xs, w1e, b1c, prep):
    n = xs.shape[0]
    return pl.pallas_call(
        _lenet_fused_kernel,
        out_shape=jax.ShapeDtypeStruct((n, 1, LANE), jnp.float32),
        grid=(n,),
        in_specs=[
            pl.BlockSpec((1, 4, 8, 96), lambda i: (i, 0, 0, 0)),   # per-sample x
            pl.BlockSpec((5, 2, 96, 84), lambda i: (0, 0, 0, 0)),  # conv1 w (BN folded)
            pl.BlockSpec((1, 84), lambda i: (0, 0)),               # conv1 b
            pl.BlockSpec((5, 2, 84, 80), lambda i: (0, 0, 0, 0)),  # conv2 w
            pl.BlockSpec((1, 80), lambda i: (0, 0)),               # conv2 b
            pl.BlockSpec((5, 80, LANE), lambda i: (0, 0, 0)),      # fc1 w
            pl.BlockSpec((1, LANE), lambda i: (0, 0)),             # fc1 b
            pl.BlockSpec((LANE, LANE), lambda i: (0, 0)),          # fc2 w
            pl.BlockSpec((1, LANE), lambda i: (0, 0)),             # fc2 b
            pl.BlockSpec((LANE, LANE), lambda i: (0, 0)),          # fc3 w
            pl.BlockSpec((1, LANE), lambda i: (0, 0)),             # fc3 b
        ],
        out_specs=pl.BlockSpec((1, 1, LANE), lambda i: (i, 0, 0)),
        scratch_shapes=[pltpu.VMEM((2, 7, 84), jnp.float32),       # pooled conv1
                        pltpu.VMEM((5, 80), jnp.float32)],         # pooled conv2
        compiler_params=pltpu.CompilerParams(
            dimension_semantics=("parallel",)),
    )(xs, w1e, b1c, prep["w2"], prep["b2"], prep["wf1"], prep["bf1"],
      prep["wf2"], prep["bf2"], prep["wf3"], prep["bf3"])


# --------------------------- one-time weight prep ----------------------------

def prepare_params(params):
    """Expand / permute / zero-pad all weights once into the kernel's layouts."""
    w1 = np.asarray(params["conv1_w"], np.float32)   # (6, 3, 5, 5)
    w2 = np.asarray(params["conv2_w"], np.float32)   # (16, 6, 5, 5)
    fc1 = np.asarray(params["fc1_w"], np.float32)    # (120, 400)
    fc2 = np.asarray(params["fc2_w"], np.float32)    # (84, 120)
    fc3 = np.asarray(params["fc3_w"], np.float32)    # (10, 84)

    # conv1: W1[dh, jb, 3*w + c, 14*? ...]  -- entry (3*w+c, jo*6+o) = w1[o,c,dh,dw]
    # whenever w == 2*jo + jb + dw (banded structure => conv is a plain matmul).
    W1 = np.zeros((5, 2, 96, 84), np.float32)
    for dh in range(5):
        for jb in range(2):
            for jo in range(14):
                for dw in range(5):
                    w = 2 * jo + jb + dw
                    W1[dh, jb, 3 * w:3 * w + 3, 6 * jo:6 * jo + 6] = w1[:, :, dh, dw].T

    # conv2: entry (6*wp + c, jo*16 + o) = w2[o,c,dh,dw] with wp = 2*jo + jb + dw.
    W2 = np.zeros((5, 2, 84, 80), np.float32)
    for dh in range(5):
        for jb in range(2):
            for jo in range(5):
                for dw in range(5):
                    wp = 2 * jo + jb + dw
                    W2[dh, jb, 6 * wp:6 * wp + 6, 16 * jo:16 * jo + 16] = w2[:, :, dh, dw].T

    # fc1: rows permuted to the kernel's (io, jo, c) flatten order; 120 -> 128 pad.
    f = fc1.reshape(120, 16, 5, 5)                      # (k, o, io, jo)
    Wf1 = np.zeros((5, 80, LANE), np.float32)
    Wf1[:, :, :120] = np.transpose(f, (2, 3, 1, 0)).reshape(5, 80, 120)

    Wf2 = np.zeros((LANE, LANE), np.float32)
    Wf2[:120, :84] = fc2.T
    Wf3 = np.zeros((LANE, LANE), np.float32)
    Wf3[:84, :10] = fc3.T

    def pad_row(b):
        v = np.zeros((1, LANE), np.float32)
        b = np.asarray(b, np.float32)
        v[0, :b.shape[0]] = b
        return v

    return {
        "w1_base": jnp.asarray(W1),
        "w1_sum": jnp.asarray(w1.sum(axis=(2, 3))),                       # (6, 3)
        "conv1_b": jnp.asarray(params["conv1_b"], jnp.float32),
        "gamma": jnp.asarray(params["bn_gamma"], jnp.float32),
        "beta": jnp.asarray(params["bn_beta"], jnp.float32),
        "w2": jnp.asarray(W2),
        "b2": jnp.asarray(np.tile(np.asarray(params["conv2_b"], np.float32),
                                  5).reshape(1, 80)),
        "wf1": jnp.asarray(Wf1), "bf1": jnp.asarray(pad_row(params["fc1_b"])),
        "wf2": jnp.asarray(Wf2), "bf2": jnp.asarray(pad_row(params["fc2_b"])),
        "wf3": jnp.asarray(Wf3), "bf3": jnp.asarray(pad_row(params["fc3_b"])),
    }


# ------------------------------- LeNet model ---------------------------------

def init_params(key):
    ks = jax.random.split(key, 10)
    return {
        "bn_gamma": jnp.ones((3,), jnp.float32),
        "bn_beta": jnp.zeros((3,), jnp.float32),
        "conv1_w": 0.1 * jax.random.normal(ks[0], (6, 3, 5, 5), jnp.float32),
        "conv1_b": 0.1 * jax.random.normal(ks[1], (6,), jnp.float32),
        "conv2_w": 0.1 * jax.random.normal(ks[2], (16, 6, 5, 5), jnp.float32),
        "conv2_b": 0.1 * jax.random.normal(ks[3], (16,), jnp.float32),
        "fc1_w": 0.05 * jax.random.normal(ks[4], (120, 400), jnp.float32),
        "fc1_b": 0.05 * jax.random.normal(ks[5], (120,), jnp.float32),
        "fc2_w": 0.05 * jax.random.normal(ks[6], (84, 120), jnp.float32),
        "fc2_b": 0.05 * jax.random.normal(ks[7], (84,), jnp.float32),
        "fc3_w": 0.05 * jax.random.normal(ks[8], (10, 84), jnp.float32),
        "fc3_b": 0.05 * jax.random.normal(ks[9], (10,), jnp.float32),
    }


def lenet_forward(prep, x, eps=1e-5):
    # x: (N, 3, 32, 32) float32, NCHW (PyTorch convention).
    n = x.shape[0]
    assert x.shape[1:] == (3, 32, 32)

    # BatchNorm (training-mode batch stats) folded exactly into conv1's weight
    # and bias: one tiny XLA reduce per forward, nothing BN-related in-kernel.
    mean = jnp.mean(x, axis=(0, 2, 3))
    var = jnp.mean((x - mean.reshape(1, 3, 1, 1)) ** 2, axis=(0, 2, 3))
    s = prep["gamma"] * jax.lax.rsqrt(var + eps)                  # (3,)
    t = prep["beta"] - s * mean                                   # (3,)
    w1e = prep["w1_base"] * jnp.tile(s, 32)[None, None, :, None]  # (5,2,96,84)
    b1_eff = prep["conv1_b"] + prep["w1_sum"] @ t                 # (6,)
    b1c = jnp.tile(b1_eff, 14).reshape(1, 84)

    # Row-phase-split, lane-dense input layout: xs[n, p, r, 3*w + c] = x[n, c, 4r+p, w]
    xs = jnp.transpose(x, (0, 2, 3, 1))          # (N, 32, 32, 3)
    xs = xs.reshape(n, 8, 4, 96)                 # h -> (r, p), (w, c) -> 3w + c
    xs = jnp.transpose(xs, (0, 2, 1, 3))         # (N, 4, 8, 96)

    out = _fused_forward_call(xs, w1e, b1c, prep)                 # (N, 1, 128)
    return out.reshape(n, LANE)[:, :10]


# --------------------------- pure-JAX reference ------------------------------

def lenet_reference(params, x):
    mean = jnp.mean(x, axis=(0, 2, 3), keepdims=True)
    var = jnp.mean((x - mean) ** 2, axis=(0, 2, 3), keepdims=True)
    x = (x - mean) * jax.lax.rsqrt(var + 1e-5)
    x = x * params["bn_gamma"].reshape(1, 3, 1, 1) + params["bn_beta"].reshape(1, 3, 1, 1)

    def conv(x, w, b):
        y = jax.lax.conv_general_dilated(x, w, (1, 1), "VALID",
                                         dimension_numbers=("NCHW", "OIHW", "NCHW"))
        return jax.nn.relu(y + b.reshape(1, -1, 1, 1))

    def pool(x):
        return jax.lax.reduce_window(x, -jnp.inf, jax.lax.max,
                                     (1, 1, 2, 2), (1, 1, 2, 2), "VALID")

    x = pool(conv(x, params["conv1_w"], params["conv1_b"]))
    x = pool(conv(x, params["conv2_w"], params["conv2_b"]))
    x = x.reshape(x.shape[0], -1)
    x = jax.nn.relu(x @ params["fc1_w"].T + params["fc1_b"])
    x = jax.nn.relu(x @ params["fc2_w"].T + params["fc2_b"])
    return x @ params["fc3_w"].T + params["fc3_b"]


# ---------------------------------- main -------------------------------------

if __name__ == "__main__":
    key = jax.random.PRNGKey(0)
    pkey, xkey = jax.random.split(key)
    params = init_params(pkey)
    # LeNet-CIFAR requires 32x32 spatial input (flatten -> 16*5*5 = 400).
    x = jax.random.normal(xkey, (2, 3, 32, 32), jnp.float32)

    prep = prepare_params(params)            # one-time weight layout prep
    fwd = jax.jit(lenet_forward)

    out = jax.block_until_ready(fwd(prep, x))
    ref = jax.block_until_ready(lenet_reference(params, x))

    assert out.shape == (2, 10) and out.dtype == jnp.float32
    err = jnp.max(jnp.abs(out - ref))
    assert jnp.allclose(out, ref, rtol=1e-4, atol=1e-4), f"max abs err {err}"
    print("KERNEL_OK")
</pallas_src>

<mosaic_0001>
module attributes {stable_mosaic.version = 11 : i64} {
  func.func @_lenet_fused_kernel(%arg0: i32, %arg1: memref<1x4x8x96xf32, #tpu.memory_space<vmem>>, %arg2: memref<5x2x96x84xf32, #tpu.memory_space<vmem>>, %arg3: memref<1x84xf32, #tpu.memory_space<vmem>>, %arg4: memref<5x2x84x80xf32, #tpu.memory_space<vmem>>, %arg5: memref<1x80xf32, #tpu.memory_space<vmem>>, %arg6: memref<5x80x128xf32, #tpu.memory_space<vmem>>, %arg7: memref<1x128xf32, #tpu.memory_space<vmem>>, %arg8: memref<128x128xf32, #tpu.memory_space<vmem>>, %arg9: memref<1x128xf32, #tpu.memory_space<vmem>>, %arg10: memref<128x128xf32, #tpu.memory_space<vmem>>, %arg11: memref<1x128xf32, #tpu.memory_space<vmem>>, %arg12: memref<1x1x128xf32, #tpu.memory_space<vmem>>, %arg13: memref<2x7x84xf32, #tpu.memory_space<vmem>>, %arg14: memref<5x80xf32, #tpu.memory_space<vmem>>) attributes {dimension_semantics = [#tpu.dimension_semantics<parallel>], iteration_bounds = array<i64: 2>, scalar_prefetch = 0 : i64, scratch_operands = 2 : i64, tpu.core_type = #tpu.core_type<tc>, window_params = [{transform_indices = @transform_0, window_bounds = array<i64: 1, 4, 8, 96>}, {pipeline_mode = #tpu.pipeline_mode<synchronous>, transform_indices = @transform_1, window_bounds = array<i64: 5, 2, 96, 84>}, {pipeline_mode = #tpu.pipeline_mode<synchronous>, transform_indices = @transform_2, window_bounds = array<i64: 1, 84>}, {pipeline_mode = #tpu.pipeline_mode<synchronous>, transform_indices = @transform_3, window_bounds = array<i64: 5, 2, 84, 80>}, {pipeline_mode = #tpu.pipeline_mode<synchronous>, transform_indices = @transform_4, window_bounds = array<i64: 1, 80>}, {pipeline_mode = #tpu.pipeline_mode<synchronous>, transform_indices = @transform_5, window_bounds = array<i64: 5, 80, 128>}, {pipeline_mode = #tpu.pipeline_mode<synchronous>, transform_indices = @transform_6, window_bounds = array<i64: 1, 128>}, {pipeline_mode = #tpu.pipeline_mode<synchronous>, transform_indices = @transform_7, window_bounds = array<i64: 128, 128>}, {pipeline_mode = #tpu.pipeline_mode<synchronous>, transform_indices = @transform_8, window_bounds = array<i64: 1, 128>}, {pipeline_mode = #tpu.pipeline_mode<synchronous>, transform_indices = @transform_9, window_bounds = array<i64: 128, 128>}, {pipeline_mode = #tpu.pipeline_mode<synchronous>, transform_indices = @transform_10, window_bounds = array<i64: 1, 128>}, {transform_indices = @transform_11, window_bounds = array<i64: 1, 1, 128>}]} {
    %c0 = arith.constant 0 : index
    %c0_0 = arith.constant 0 : index
    %0 = vector.load %arg3[%c0, %c0_0] : memref<1x84xf32, #tpu.memory_space<vmem>>, vector<1x84xf32>
    %c0_1 = arith.constant 0 : index
    %c0_2 = arith.constant 0 : index
    %c0_3 = arith.constant 0 : index
    %c0_4 = arith.constant 0 : index
    %1 = vector.load %arg1[%c0_1, %c0_2, %c0_3, %c0_4] : memref<1x4x8x96xf32, #tpu.memory_space<vmem>>, vector<1x1x7x96xf32>
    %2 = vector.shape_cast %1 : vector<1x1x7x96xf32> to vector<7x96xf32>
    %c0_5 = arith.constant 0 : index
    %c0_6 = arith.constant 0 : index
    %c0_7 = arith.constant 0 : index
    %c0_8 = arith.constant 0 : index
    %3 = vector.load %arg2[%c0_5, %c0_6, %c0_7, %c0_8] : memref<5x2x96x84xf32, #tpu.memory_space<vmem>>, vector<1x1x96x84xf32>
    %4 = vector.shape_cast %3 : vector<1x1x96x84xf32> to vector<96x84xf32>
    %cst = arith.constant dense<0.000000e+00> : vector<7x84xf32>
    %5 = tpu.matmul %2, %4, %cst {dimension_numbers = #tpu.dot_dimension_numbers<[1], [0], [0], [1], [0, 0, 1, 1], [], []>} : vector<7x96xf32>, vector<96x84xf32>, vector<7x84xf32> -> vector<7x84xf32>
    %c0_9 = arith.constant 0 : index
    %c1 = arith.constant 1 : index
    %c0_10 = arith.constant 0 : index
    %c0_11 = arith.constant 0 : index
    %6 = vector.load %arg1[%c0_9, %c1, %c0_10, %c0_11] : memref<1x4x8x96xf32, #tpu.memory_space<vmem>>, vector<1x1x7x96xf32>
    %7 = vector.shape_cast %6 : vector<1x1x7x96xf32> to vector<7x96xf32>
    %c1_12 = arith.constant 1 : index
    %c0_13 = arith.constant 0 : index
    %c0_14 = arith.constant 0 : index
    %c0_15 = arith.constant 0 : index
    %8 = vector.load %arg2[%c1_12, %c0_13, %c0_14, %c0_15] : memref<5x2x96x84xf32, #tpu.memory_space<vmem>>, vector<1x1x96x84xf32>
    %9 = vector.shape_cast %8 : vector<1x1x96x84xf32> to vector<96x84xf32>
    %cst_16 = arith.constant dense<0.000000e+00> : vector<7x84xf32>
    %10 = tpu.matmul %7, %9, %cst_16 {dimension_numbers = #tpu.dot_dimension_numbers<[1], [0], [0], [1], [0, 0, 1, 1], [], []>} : vector<7x96xf32>, vector<96x84xf32>, vector<7x84xf32> -> vector<7x84xf32>
    %11 = arith.addf %5, %10 : vector<7x84xf32>
    %c0_17 = arith.constant 0 : index
    %c2 = arith.constant 2 : index
    %c0_18 = arith.constant 0 : index
    %c0_19 = arith.constant 0 : index
    %12 = vector.load %arg1[%c0_17, %c2, %c0_18, %c0_19] : memref<1x4x8x96xf32, #tpu.memory_space<vmem>>, vector<1x1x7x96xf32>
    %13 = vector.shape_cast %12 : vector<1x1x7x96xf32> to vector<7x96xf32>
    %c2_20 = arith.constant 2 : index
    %c0_21 = arith.constant 0 : index
    %c0_22 = arith.constant 0 : index
    %c0_23 = arith.constant 0 : index
    %14 = vector.load %arg2[%c2_20, %c0_21, %c0_22, %c0_23] : memref<5x2x96x84xf32, #tpu.memory_space<vmem>>, vector<1x1x96x84xf32>
    %15 = vector.shape_cast %14 : vector<1x1x96x84xf32> to vector<96x84xf32>
    %cst_24 = arith.constant dense<0.000000e+00> : vector<7x84xf32>
    %16 = tpu.matmul %13, %15, %cst_24 {dimension_numbers = #tpu.dot_dimension_numbers<[1], [0], [0], [1], [0, 0, 1, 1], [], []>} : vector<7x96xf32>, vector<96x84xf32>, vector<7x84xf32> -> vector<7x84xf32>
    %17 = arith.addf %11, %16 : vector<7x84xf32>
    %c0_25 = arith.constant 0 : index
    %c3 = arith.constant 3 : index
    %c0_26 = arith.constant 0 : index
    %c0_27 = arith.constant 0 : index
    %18 = vector.load %arg1[%c0_25, %c3, %c0_26, %c0_27] : memref<1x4x8x96xf32, #tpu.memory_space<vmem>>, vector<1x1x7x96xf32>
    %19 = vector.shape_cast %18 : vector<1x1x7x96xf32> to vector<7x96xf32>
    %c3_28 = arith.constant 3 : index
    %c0_29 = arith.constant 0 : index
    %c0_30 = arith.constant 0 : index
    %c0_31 = arith.constant 0 : index
    %20 = vector.load %arg2[%c3_28, %c0_29, %c0_30, %c0_31] : memref<5x2x96x84xf32, #tpu.memory_space<vmem>>, vector<1x1x96x84xf32>
    %21 = vector.shape_cast %20 : vector<1x1x96x84xf32> to vector<96x84xf32>
    %cst_32 = arith.constant dense<0.000000e+00> : vector<7x84xf32>
    %22 = tpu.matmul %19, %21, %cst_32 {dimension_numbers = #tpu.dot_dimension_numbers<[1], [0], [0], [1], [0, 0, 1, 1], [], []>} : vector<7x96xf32>, vector<96x84xf32>, vector<7x84xf32> -> vector<7x84xf32>
    %23 = arith.addf %17, %22 : vector<7x84xf32>
    %c0_33 = arith.constant 0 : index
    %c0_34 = arith.constant 0 : index
    %c1_35 = arith.constant 1 : index
    %c0_36 = arith.constant 0 : index
    %24 = vector.load %arg1[%c0_33, %c0_34, %c1_35, %c0_36] : memref<1x4x8x96xf32, #tpu.memory_space<vmem>>, vector<1x1x7x96xf32>
    %25 = vector.shape_cast %24 : vector<1x1x7x96xf32> to vector<7x96xf32>
    %c4 = arith.constant 4 : index
    %c0_37 = arith.constant 0 : index
    %c0_38 = arith.constant 0 : index
    %c0_39 = arith.constant 0 : index
    %26 = vector.load %arg2[%c4, %c0_37, %c0_38, %c0_39] : memref<5x2x96x84xf32, #tpu.memory_space<vmem>>, vector<1x1x96x84xf32>
    %27 = vector.shape_cast %26 : vector<1x1x96x84xf32> to vector<96x84xf32>
    %cst_40 = arith.constant dense<0.000000e+00> : vector<7x84xf32>
    %28 = tpu.matmul %25, %27, %cst_40 {dimension_numbers = #tpu.dot_dimension_numbers<[1], [0], [0], [1], [0, 0, 1, 1], [], []>} : vector<7x96xf32>, vector<96x84xf32>, vector<7x84xf32> -> vector<7x84xf32>
    %29 = arith.addf %23, %28 : vector<7x84xf32>
    %c0_41 = arith.constant 0 : index
    %c0_42 = arith.constant 0 : index
    %c0_43 = arith.constant 0 : index
    %c0_44 = arith.constant 0 : index
    %30 = vector.load %arg1[%c0_41, %c0_42, %c0_43, %c0_44] : memref<1x4x8x96xf32, #tpu.memory_space<vmem>>, vector<1x1x7x96xf32>
    %31 = vector.shape_cast %30 : vector<1x1x7x96xf32> to vector<7x96xf32>
    %c0_45 = arith.constant 0 : index
    %c1_46 = arith.constant 1 : index
    %c0_47 = arith.constant 0 : index
    %c0_48 = arith.constant 0 : index
    %32 = vector.load %arg2[%c0_45, %c1_46, %c0_47, %c0_48] : memref<5x2x96x84xf32, #tpu.memory_space<vmem>>, vector<1x1x96x84xf32>
    %33 = vector.shape_cast %32 : vector<1x1x96x84xf32> to vector<96x84xf32>
    %cst_49 = arith.constant dense<0.000000e+00> : vector<7x84xf32>
    %34 = tpu.matmul %31, %33, %cst_49 {dimension_numbers = #tpu.dot_dimension_numbers<[1], [0], [0], [1], [0, 0, 1, 1], [], []>} : vector<7x96xf32>, vector<96x84xf32>, vector<7x84xf32> -> vector<7x84xf32>
    %c0_50 = arith.constant 0 : index
    %c1_51 = arith.constant 1 : index
    %c0_52 = arith.constant 0 : index
    %c0_53 = arith.constant 0 : index
    %35 = vector.load %arg1[%c0_50, %c1_51, %c0_52, %c0_53] : memref<1x4x8x96xf32, #tpu.memory_space<vmem>>, vector<1x1x7x96xf32>
    %36 = vector.shape_cast %35 : vector<1x1x7x96xf32> to vector<7x96xf32>
    %c1_54 = arith.constant 1 : index
    %c1_55 = arith.constant 1 : index
    %c0_56 = arith.constant 0 : index
    %c0_57 = arith.constant 0 : index
    %37 = vector.load %arg2[%c1_54, %c1_55, %c0_56, %c0_57] : memref<5x2x96x84xf32, #tpu.memory_space<vmem>>, vector<1x1x96x84xf32>
    %38 = vector.shape_cast %37 : vector<1x1x96x84xf32> to vector<96x84xf32>
    %cst_58 = arith.constant dense<0.000000e+00> : vector<7x84xf32>
    %39 = tpu.matmul %36, %38, %cst_58 {dimension_numbers = #tpu.dot_dimension_numbers<[1], [0], [0], [1], [0, 0, 1, 1], [], []>} : vector<7x96xf32>, vector<96x84xf32>, vector<7x84xf32> -> vector<7x84xf32>
    %40 = arith.addf %34, %39 : vector<7x84xf32>
    %c0_59 = arith.constant 0 : index
    %c2_60 = arith.constant 2 : index
    %c0_61 = arith.constant 0 : index
    %c0_62 = arith.constant 0 : index
    %41 = vector.load %arg1[%c0_59, %c2_60, %c0_61, %c0_62] : memref<1x4x8x96xf32, #tpu.memory_space<vmem>>, vector<1x1x7x96xf32>
    %42 = vector.shape_cast %41 : vector<1x1x7x96xf32> to vector<7x96xf32>
    %c2_63 = arith.constant 2 : index
    %c1_64 = arith.constant 1 : index
    %c0_65 = arith.constant 0 : index
    %c0_66 = arith.constant 0 : index
    %43 = vector.load %arg2[%c2_63, %c1_64, %c0_65, %c0_66] : memref<5x2x96x84xf32, #tpu.memory_space<vmem>>, vector<1x1x96x84xf32>
    %44 = vector.shape_cast %43 : vector<1x1x96x84xf32> to vector<96x84xf32>
    %cst_67 = arith.constant dense<0.000000e+00> : vector<7x84xf32>
    %45 = tpu.matmul %42, %44, %cst_67 {dimension_numbers = #tpu.dot_dimension_numbers<[1], [0], [0], [1], [0, 0, 1, 1], [], []>} : vector<7x96xf32>, vector<96x84xf32>, vector<7x84xf32> -> vector<7x84xf32>
    %46 = arith.addf %40, %45 : vector<7x84xf32>
    %c0_68 = arith.constant 0 : index
    %c3_69 = arith.constant 3 : index
    %c0_70 = arith.constant 0 : index
    %c0_71 = arith.constant 0 : index
    %47 = vector.load %arg1[%c0_68, %c3_69, %c0_70, %c0_71] : memref<1x4x8x96xf32, #tpu.memory_space<vmem>>, vector<1x1x7x96xf32>
    %48 = vector.shape_cast %47 : vector<1x1x7x96xf32> to vector<7x96xf32>
    %c3_72 = arith.constant 3 : index
    %c1_73 = arith.constant 1 : index
    %c0_74 = arith.constant 0 : index
    %c0_75 = arith.constant 0 : index
    %49 = vector.load %arg2[%c3_72, %c1_73, %c0_74, %c0_75] : memref<5x2x96x84xf32, #tpu.memory_space<vmem>>, vector<1x1x96x84xf32>
    %50 = vector.shape_cast %49 : vector<1x1x96x84xf32> to vector<96x84xf32>
    %cst_76 = arith.constant dense<0.000000e+00> : vector<7x84xf32>
    %51 = tpu.matmul %48, %50, %cst_76 {dimension_numbers = #tpu.dot_dimension_numbers<[1], [0], [0], [1], [0, 0, 1, 1], [], []>} : vector<7x96xf32>, vector<96x84xf32>, vector<7x84xf32> -> vector<7x84xf32>
    %52 = arith.addf %46, %51 : vector<7x84xf32>
    %c0_77 = arith.constant 0 : index
    %c0_78 = arith.constant 0 : index
    %c1_79 = arith.constant 1 : index
    %c0_80 = arith.constant 0 : index
    %53 = vector.load %arg1[%c0_77, %c0_78, %c1_79, %c0_80] : memref<1x4x8x96xf32, #tpu.memory_space<vmem>>, vector<1x1x7x96xf32>
    %54 = vector.shape_cast %53 : vector<1x1x7x96xf32> to vector<7x96xf32>
    %c4_81 = arith.constant 4 : index
    %c1_82 = arith.constant 1 : index
    %c0_83 = arith.constant 0 : index
    %c0_84 = arith.constant 0 : index
    %55 = vector.load %arg2[%c4_81, %c1_82, %c0_83, %c0_84] : memref<5x2x96x84xf32, #tpu.memory_space<vmem>>, vector<1x1x96x84xf32>
    %56 = vector.shape_cast %55 : vector<1x1x96x84xf32> to vector<96x84xf32>
    %cst_85 = arith.constant dense<0.000000e+00> : vector<7x84xf32>
    %57 = tpu.matmul %54, %56, %cst_85 {dimension_numbers = #tpu.dot_dimension_numbers<[1], [0], [0], [1], [0, 0, 1, 1], [], []>} : vector<7x96xf32>, vector<96x84xf32>, vector<7x84xf32> -> vector<7x84xf32>
    %58 = arith.addf %52, %57 : vector<7x84xf32>
    %59 = arith.maximumf %29, %58 : vector<7x84xf32>
    %c0_86 = arith.constant 0 : index
    %c1_87 = arith.constant 1 : index
    %c0_88 = arith.constant 0 : index
    %c0_89 = arith.constant 0 : index
    %60 = vector.load %arg1[%c0_86, %c1_87, %c0_88, %c0_89] : memref<1x4x8x96xf32, #tpu.memory_space<vmem>>, vector<1x1x7x96xf32>
    %61 = vector.shape_cast %60 : vector<1x1x7x96xf32> to vector<7x96xf32>
    %c0_90 = arith.constant 0 : index
    %c0_91 = arith.constant 0 : index
    %c0_92 = arith.constant 0 : index
    %c0_93 = arith.constant 0 : index
    %62 = vector.load %arg2[%c0_90, %c0_91, %c0_92, %c0_93] : memref<5x2x96x84xf32, #tpu.memory_space<vmem>>, vector<1x1x96x84xf32>
    %63 = vector.shape_cast %62 : vector<1x1x96x84xf32> to vector<96x84xf32>
    %cst_94 = arith.constant dense<0.000000e+00> : vector<7x84xf32>
    %64 = tpu.matmul %61, %63, %cst_94 {dimension_numbers = #tpu.dot_dimension_numbers<[1], [0], [0], [1], [0, 0, 1, 1], [], []>} : vector<7x96xf32>, vector<96x84xf32>, vector<7x84xf32> -> vector<7x84xf32>
    %c0_95 = arith.constant 0 : index
    %c2_96 = arith.constant 2 : index
    %c0_97 = arith.constant 0 : index
    %c0_98 = arith.constant 0 : index
    %65 = vector.load %arg1[%c0_95, %c2_96, %c0_97, %c0_98] : memref<1x4x8x96xf32, #tpu.memory_space<vmem>>, vector<1x1x7x96xf32>
    %66 = vector.shape_cast %65 : vector<1x1x7x96xf32> to vector<7x96xf32>
    %c1_99 = arith.constant 1 : index
    %c0_100 = arith.constant 0 : index
    %c0_101 = arith.constant 0 : index
    %c0_102 = arith.constant 0 : index
    %67 = vector.load %arg2[%c1_99, %c0_100, %c0_101, %c0_102] : memref<5x2x96x84xf32, #tpu.memory_space<vmem>>, vector<1x1x96x84xf32>
    %68 = vector.shape_cast %67 : vector<1x1x96x84xf32> to vector<96x84xf32>
    %cst_103 = arith.constant dense<0.000000e+00> : vector<7x84xf32>
    %69 = tpu.matmul %66, %68, %cst_103 {dimension_numbers = #tpu.dot_dimension_numbers<[1], [0], [0], [1], [0, 0, 1, 1], [], []>} : vector<7x96xf32>, vector<96x84xf32>, vector<7x84xf32> -> vector<7x84xf32>
    %70 = arith.addf %64, %69 : vector<7x84xf32>
    %c0_104 = arith.constant 0 : index
    %c3_105 = arith.constant 3 : index
    %c0_106 = arith.constant 0 : index
    %c0_107 = arith.constant 0 : index
    %71 = vector.load %arg1[%c0_104, %c3_105, %c0_106, %c0_107] : memref<1x4x8x96xf32, #tpu.memory_space<vmem>>, vector<1x1x7x96xf32>
    %72 = vector.shape_cast %71 : vector<1x1x7x96xf32> to vector<7x96xf32>
    %c2_108 = arith.constant 2 : index
    %c0_109 = arith.constant 0 : index
    %c0_110 = arith.constant 0 : index
    %c0_111 = arith.constant 0 : index
    %73 = vector.load %arg2[%c2_108, %c0_109, %c0_110, %c0_111] : memref<5x2x96x84xf32, #tpu.memory_space<vmem>>, vector<1x1x96x84xf32>
    %74 = vector.shape_cast %73 : vector<1x1x96x84xf32> to vector<96x84xf32>
    %cst_112 = arith.constant dense<0.000000e+00> : vector<7x84xf32>
    %75 = tpu.matmul %72, %74, %cst_112 {dimension_numbers = #tpu.dot_dimension_numbers<[1], [0], [0], [1], [0, 0, 1, 1], [], []>} : vector<7x96xf32>, vector<96x84xf32>, vector<7x84xf32> -> vector<7x84xf32>
    %76 = arith.addf %70, %75 : vector<7x84xf32>
    %c0_113 = arith.constant 0 : index
    %c0_114 = arith.constant 0 : index
    %c1_115 = arith.constant 1 : index
    %c0_116 = arith.constant 0 : index
    %77 = vector.load %arg1[%c0_113, %c0_114, %c1_115, %c0_116] : memref<1x4x8x96xf32, #tpu.memory_space<vmem>>, vector<1x1x7x96xf32>
    %78 = vector.shape_cast %77 : vector<1x1x7x96xf32> to vector<7x96xf32>
    %c3_117 = arith.constant 3 : index
    %c0_118 = arith.constant 0 : index
    %c0_119 = arith.constant 0 : index
    %c0_120 = arith.constant 0 : index
    %79 = vector.load %arg2[%c3_117, %c0_118, %c0_119, %c0_120] : memref<5x2x96x84xf32, #tpu.memory_space<vmem>>, vector<1x1x96x84xf32>
    %80 = vector.shape_cast %79 : vector<1x1x96x84xf32> to vector<96x84xf32>
    %cst_121 = arith.constant dense<0.000000e+00> : vector<7x84xf32>
    %81 = tpu.matmul %78, %80, %cst_121 {dimension_numbers = #tpu.dot_dimension_numbers<[1], [0], [0], [1], [0, 0, 1, 1], [], []>} : vector<7x96xf32>, vector<96x84xf32>, vector<7x84xf32> -> vector<7x84xf32>
    %82 = arith.addf %76, %81 : vector<7x84xf32>
    %c0_122 = arith.constant 0 : index
    %c1_123 = arith.constant 1 : index
    %c1_124 = arith.constant 1 : index
    %c0_125 = arith.constant 0 : index
    %83 = vector.load %arg1[%c0_122, %c1_123, %c1_124, %c0_125] : memref<1x4x8x96xf32, #tpu.memory_space<vmem>>, vector<1x1x7x96xf32>
    %84 = vector.shape_cast %83 : vector<1x1x7x96xf32> to vector<7x96xf32>
    %c4_126 = arith.constant 4 : index
    %c0_127 = arith.constant 0 : index
    %c0_128 = arith.constant 0 : index
    %c0_129 = arith.constant 0 : index
    %85 = vector.load %arg2[%c4_126, %c0_127, %c0_128, %c0_129] : memref<5x2x96x84xf32, #tpu.memory_space<vmem>>, vector<1x1x96x84xf32>
    %86 = vector.shape_cast %85 : vector<1x1x96x84xf32> to vector<96x84xf32>
    %cst_130 = arith.constant dense<0.000000e+00> : vector<7x84xf32>
    %87 = tpu.matmul %84, %86, %cst_130 {dimension_numbers = #tpu.dot_dimension_numbers<[1], [0], [0], [1], [0, 0, 1, 1], [], []>} : vector<7x96xf32>, vector<96x84xf32>, vector<7x84xf32> -> vector<7x84xf32>
    %88 = arith.addf %82, %87 : vector<7x84xf32>
    %89 = arith.maximumf %59, %88 : vector<7x84xf32>
    %c0_131 = arith.constant 0 : index
    %c1_132 = arith.constant 1 : index
    %c0_133 = arith.constant 0 : index
    %c0_134 = arith.constant 0 : index
    %90 = vector.load %arg1[%c0_131, %c1_132, %c0_133, %c0_134] : memref<1x4x8x96xf32, #tpu.memory_space<vmem>>, vector<1x1x7x96xf32>
    %91 = vector.shape_cast %90 : vector<1x1x7x96xf32> to vector<7x96xf32>
    %c0_135 = arith.constant 0 : index
    %c1_136 = arith.constant 1 : index
    %c0_137 = arith.constant 0 : index
    %c0_138 = arith.constant 0 : index
    %92 = vector.load %arg2[%c0_135, %c1_136, %c0_137, %c0_138] : memref<5x2x96x84xf32, #tpu.memory_space<vmem>>, vector<1x1x96x84xf32>
    %93 = vector.shape_cast %92 : vector<1x1x96x84xf32> to vector<96x84xf32>
    %cst_139 = arith.constant dense<0.000000e+00> : vector<7x84xf32>
    %94 = tpu.matmul %91, %93, %cst_139 {dimension_numbers = #tpu.dot_dimension_numbers<[1], [0], [0], [1], [0, 0, 1, 1], [], []>} : vector<7x96xf32>, vector<96x84xf32>, vector<7x84xf32> -> vector<7x84xf32>
    %c0_140 = arith.constant 0 : index
    %c2_141 = arith.constant 2 : index
    %c0_142 = arith.constant 0 : index
    %c0_143 = arith.constant 0 : index
    %95 = vector.load %arg1[%c0_140, %c2_141, %c0_142, %c0_143] : memref<1x4x8x96xf32, #tpu.memory_space<vmem>>, vector<1x1x7x96xf32>
    %96 = vector.shape_cast %95 : vector<1x1x7x96xf32> to vector<7x96xf32>
    %c1_144 = arith.constant 1 : index
    %c1_145 = arith.constant 1 : index
    %c0_146 = arith.constant 0 : index
    %c0_147 = arith.constant 0 : index
    %97 = vector.load %arg2[%c1_144, %c1_145, %c0_146, %c0_147] : memref<5x2x96x84xf32, #tpu.memory_space<vmem>>, vector<1x1x96x84xf32>
    %98 = vector.shape_cast %97 : vector<1x1x96x84xf32> to vector<96x84xf32>
    %cst_148 = arith.constant dense<0.000000e+00> : vector<7x84xf32>
    %99 = tpu.matmul %96, %98, %cst_148 {dimension_numbers = #tpu.dot_dimension_numbers<[1], [0], [0], [1], [0, 0, 1, 1], [], []>} : vector<7x96xf32>, vector<96x84xf32>, vector<7x84xf32> -> vector<7x84xf32>
    %100 = arith.addf %94, %99 : vector<7x84xf32>
    %c0_149 = arith.constant 0 : index
    %c3_150 = arith.constant 3 : index
    %c0_151 = arith.constant 0 : index
    %c0_152 = arith.constant 0 : index
    %101 = vector.load %arg1[%c0_149, %c3_150, %c0_151, %c0_152] : memref<1x4x8x96xf32, #tpu.memory_space<vmem>>, vector<1x1x7x96xf32>
    %102 = vector.shape_cast %101 : vector<1x1x7x96xf32> to vector<7x96xf32>
    %c2_153 = arith.constant 2 : index
    %c1_154 = arith.constant 1 : index
    %c0_155 = arith.constant 0 : index
    %c0_156 = arith.constant 0 : index
    %103 = vector.load %arg2[%c2_153, %c1_154, %c0_155, %c0_156] : memref<5x2x96x84xf32, #tpu.memory_space<vmem>>, vector<1x1x96x84xf32>
    %104 = vector.shape_cast %103 : vector<1x1x96x84xf32> to vector<96x84xf32>
    %cst_157 = arith.constant dense<0.000000e+00> : vector<7x84xf32>
    %105 = tpu.matmul %102, %104, %cst_157 {dimension_numbers = #tpu.dot_dimension_numbers<[1], [0], [0], [1], [0, 0, 1, 1], [], []>} : vector<7x96xf32>, vector<96x84xf32>, vector<7x84xf32> -> vector<7x84xf32>
    %106 = arith.addf %100, %105 : vector<7x84xf32>
    %c0_158 = arith.constant 0 : index
    %c0_159 = arith.constant 0 : index
    %c1_160 = arith.constant 1 : index
    %c0_161 = arith.constant 0 : index
    %107 = vector.load %arg1[%c0_158, %c0_159, %c1_160, %c0_161] : memref<1x4x8x96xf32, #tpu.memory_space<vmem>>, vector<1x1x7x96xf32>
    %108 = vector.shape_cast %107 : vector<1x1x7x96xf32> to vector<7x96xf32>
    %c3_162 = arith.constant 3 : index
    %c1_163 = arith.constant 1 : index
    %c0_164 = arith.constant 0 : index
    %c0_165 = arith.constant 0 : index
    %109 = vector.load %arg2[%c3_162, %c1_163, %c0_164, %c0_165] : memref<5x2x96x84xf32, #tpu.memory_space<vmem>>, vector<1x1x96x84xf32>
    %110 = vector.shape_cast %109 : vector<1x1x96x84xf32> to vector<96x84xf32>
    %cst_166 = arith.constant dense<0.000000e+00> : vector<7x84xf32>
    %111 = tpu.matmul %108, %110, %cst_166 {dimension_numbers = #tpu.dot_dimension_numbers<[1], [0], [0], [1], [0, 0, 1, 1], [], []>} : vector<7x96xf32>, vector<96x84xf32>, vector<7x84xf32> -> vector<7x84xf32>
    %112 = arith.addf %106, %111 : vector<7x84xf32>
    %c0_167 = arith.constant 0 : index
    %c1_168 = arith.constant 1 : index
    %c1_169 = arith.constant 1 : index
    %c0_170 = arith.constant 0 : index
    %113 = vector.load %arg1[%c0_167, %c1_168, %c1_169, %c0_170] : memref<1x4x8x96xf32, #tpu.memory_space<vmem>>, vector<1x1x7x96xf32>
    %114 = vector.shape_cast %113 : vector<1x1x7x96xf32> to vector<7x96xf32>
    %c4_171 = arith.constant 4 : index
    %c1_172 = arith.constant 1 : index
    %c0_173 = arith.constant 0 : index
    %c0_174 = arith.constant 0 : index
    %115 = vector.load %arg2[%c4_171, %c1_172, %c0_173, %c0_174] : memref<5x2x96x84xf32, #tpu.memory_space<vmem>>, vector<1x1x96x84xf32>
    %116 = vector.shape_cast %115 : vector<1x1x96x84xf32> to vector<96x84xf32>
    %cst_175 = arith.constant dense<0.000000e+00> : vector<7x84xf32>
    %117 = tpu.matmul %114, %116, %cst_175 {dimension_numbers = #tpu.dot_dimension_numbers<[1], [0], [0], [1], [0, 0, 1, 1], [], []>} : vector<7x96xf32>, vector<96x84xf32>, vector<7x84xf32> -> vector<7x84xf32>
    %118 = arith.addf %112, %117 : vector<7x84xf32>
    %119 = arith.maximumf %89, %118 : vector<7x84xf32>
    %120 = vector.broadcast %0 : vector<1x84xf32> to vector<7x84xf32>
    %121 = arith.addf %119, %120 : vector<7x84xf32>
    %cst_176 = arith.constant 0.000000e+00 : f32
    %122 = vector.broadcast %cst_176 : f32 to vector<7x84xf32>
    %123 = arith.maximumf %121, %122 : vector<7x84xf32>
    %c0_177 = arith.constant 0 : index
    %c0_178 = arith.constant 0 : index
    %c0_179 = arith.constant 0 : index
    %124 = vector.load %arg13[%c0_177, %c0_178, %c0_179] : memref<2x7x84xf32, #tpu.memory_space<vmem>>, vector<1x7x84xf32>
    %125 = vector.shape_cast %124 : vector<1x7x84xf32> to vector<7x84xf32>
    %126 = vector.shape_cast %123 : vector<7x84xf32> to vector<1x7x84xf32>
    tpu.vector_store %arg13[%c0_177, %c0_178, %c0_179], %126 {strides = array<i32>} : memref<2x7x84xf32, #tpu.memory_space<vmem>>, vector<1x7x84xf32>,
    %c0_180 = arith.constant 0 : index
    %c2_181 = arith.constant 2 : index
    %c0_182 = arith.constant 0 : index
    %c0_183 = arith.constant 0 : index
    %127 = vector.load %arg1[%c0_180, %c2_181, %c0_182, %c0_183] : memref<1x4x8x96xf32, #tpu.memory_space<vmem>>, vector<1x1x7x96xf32>
    %128 = vector.shape_cast %127 : vector<1x1x7x96xf32> to vector<7x96xf32>
    %c0_184 = arith.constant 0 : index
    %c0_185 = arith.constant 0 : index
    %c0_186 = arith.constant 0 : index
    %c0_187 = arith.constant 0 : index
    %129 = vector.load %arg2[%c0_184, %c0_185, %c0_186, %c0_187] : memref<5x2x96x84xf32, #tpu.memory_space<vmem>>, vector<1x1x96x84xf32>
    %130 = vector.shape_cast %129 : vector<1x1x96x84xf32> to vector<96x84xf32>
    %cst_188 = arith.constant dense<0.000000e+00> : vector<7x84xf32>
    %131 = tpu.matmul %128, %130, %cst_188 {dimension_numbers = #tpu.dot_dimension_numbers<[1], [0], [0], [1], [0, 0, 1, 1], [], []>} : vector<7x96xf32>, vector<96x84xf32>, vector<7x84xf32> -> vector<7x84xf32>
    %c0_189 = arith.constant 0 : index
    %c3_190 = arith.constant 3 : index
    %c0_191 = arith.constant 0 : index
    %c0_192 = arith.constant 0 : index
    %132 = vector.load %arg1[%c0_189, %c3_190, %c0_191, %c0_192] : memref<1x4x8x96xf32, #tpu.memory_space<vmem>>, vector<1x1x7x96xf32>
    %133 = vector.shape_cast %132 : vector<1x1x7x96xf32> to vector<7x96xf32>
    %c1_193 = arith.constant 1 : index
    %c0_194 = arith.constant 0 : index
    %c0_195 = arith.constant 0 : index
    %c0_196 = arith.constant 0 : index
    %134 = vector.load %arg2[%c1_193, %c0_194, %c0_195, %c0_196] : memref<5x2x96x84xf32, #tpu.memory_space<vmem>>, vector<1x1x96x84xf32>
    %135 = vector.shape_cast %134 : vector<1x1x96x84xf32> to vector<96x84xf32>
    %cst_197 = arith.constant dense<0.000000e+00> : vector<7x84xf32>
    %136 = tpu.matmul %133, %135, %cst_197 {dimension_numbers = #tpu.dot_dimension_numbers<[1], [0], [0], [1], [0, 0, 1, 1], [], []>} : vector<7x96xf32>, vector<96x84xf32>, vector<7x84xf32> -> vector<7x84xf32>
    %137 = arith.addf %131, %136 : vector<7x84xf32>
    %c0_198 = arith.constant 0 : index
    %c0_199 = arith.constant 0 : index
    %c1_200 = arith.constant 1 : index
    %c0_201 = arith.constant 0 : index
    %138 = vector.load %arg1[%c0_198, %c0_199, %c1_200, %c0_201] : memref<1x4x8x96xf32, #tpu.memory_space<vmem>>, vector<1x1x7x96xf32>
    %139 = vector.shape_cast %138 : vector<1x1x7x96xf32> to vector<7x96xf32>
    %c2_202 = arith.constant 2 : index
    %c0_203 = arith.constant 0 : index
    %c0_204 = arith.constant 0 : index
    %c0_205 = arith.constant 0 : index
    %140 = vector.load %arg2[%c2_202, %c0_203, %c0_204, %c0_205] : memref<5x2x96x84xf32, #tpu.memory_space<vmem>>, vector<1x1x96x84xf32>
    %141 = vector.shape_cast %140 : vector<1x1x96x84xf32> to vector<96x84xf32>
    %cst_206 = arith.constant dense<0.000000e+00> : vector<7x84xf32>
    %142 = tpu.matmul %139, %141, %cst_206 {dimension_numbers = #tpu.dot_dimension_numbers<[1], [0], [0], [1], [0, 0, 1, 1], [], []>} : vector<7x96xf32>, vector<96x84xf32>, vector<7x84xf32> -> vector<7x84xf32>
    %143 = arith.addf %137, %142 : vector<7x84xf32>
    %c0_207 = arith.constant 0 : index
    %c1_208 = arith.constant 1 : index
    %c1_209 = arith.constant 1 : index
    %c0_210 = arith.constant 0 : index
    %144 = vector.load %arg1[%c0_207, %c1_208, %c1_209, %c0_210] : memref<1x4x8x96xf32, #tpu.memory_space<vmem>>, vector<1x1x7x96xf32>
    %145 = vector.shape_cast %144 : vector<1x1x7x96xf32> to vector<7x96xf32>
    %c3_211 = arith.constant 3 : index
    %c0_212 = arith.constant 0 : index
    %c0_213 = arith.constant 0 : index
    %c0_214 = arith.constant 0 : index
    %146 = vector.load %arg2[%c3_211, %c0_212, %c0_213, %c0_214] : memref<5x2x96x84xf32, #tpu.memory_space<vmem>>, vector<1x1x96x84xf32>
    %147 = vector.shape_cast %146 : vector<1x1x96x84xf32> to vector<96x84xf32>
    %cst_215 = arith.constant dense<0.000000e+00> : vector<7x84xf32>
    %148 = tpu.matmul %145, %147, %cst_215 {dimension_numbers = #tpu.dot_dimension_numbers<[1], [0], [0], [1], [0, 0, 1, 1], [], []>} : vector<7x96xf32>, vector<96x84xf32>, vector<7x84xf32> -> vector<7x84xf32>
    %149 = arith.addf %143, %148 : vector<7x84xf32>
    %c0_216 = arith.constant 0 : index
    %c2_217 = arith.constant 2 : index
    %c1_218 = arith.constant 1 : index
    %c0_219 = arith.constant 0 : index
    %150 = vector.load %arg1[%c0_216, %c2_217, %c1_218, %c0_219] : memref<1x4x8x96xf32, #tpu.memory_space<vmem>>, vector<1x1x7x96xf32>
    %151 = vector.shape_cast %150 : vector<1x1x7x96xf32> to vector<7x96xf32>
    %c4_220 = arith.constant 4 : index
    %c0_221 = arith.constant 0 : index
    %c0_222 = arith.constant 0 : index
    %c0_223 = arith.constant 0 : index
    %152 = vector.load %arg2[%c4_220, %c0_221, %c0_222, %c0_223] : memref<5x2x96x84xf32, #tpu.memory_space<vmem>>, vector<1x1x96x84xf32>
    %153 = vector.shape_cast %152 : vector<1x1x96x84xf32> to vector<96x84xf32>
    %cst_224 = arith.constant dense<0.000000e+00> : vector<7x84xf32>
    %154 = tpu.matmul %151, %153, %cst_224 {dimension_numbers = #tpu.dot_dimension_numbers<[1], [0], [0], [1], [0, 0, 1, 1], [], []>} : vector<7x96xf32>, vector<96x84xf32>, vector<7x84xf32> -> vector<7x84xf32>
    %155 = arith.addf %149, %154 : vector<7x84xf32>
    %c0_225 = arith.constant 0 : index
    %c2_226 = arith.constant 2 : index
    %c0_227 = arith.constant 0 : index
    %c0_228 = arith.constant 0 : index
    %156 = vector.load %arg1[%c0_225, %c2_226, %c0_227, %c0_228] : memref<1x4x8x96xf32, #tpu.memory_space<vmem>>, vector<1x1x7x96xf32>
    %157 = vector.shape_cast %156 : vector<1x1x7x96xf32> to vector<7x96xf32>
    %c0_229 = arith.constant 0 : index
    %c1_230 = arith.constant 1 : index
    %c0_231 = arith.constant 0 : index
    %c0_232 = arith.constant 0 : index
    %158 = vector.load %arg2[%c0_229, %c1_230, %c0_231, %c0_232] : memref<5x2x96x84xf32, #tpu.memory_space<vmem>>, vector<1x1x96x84xf32>
    %159 = vector.shape_cast %158 : vector<1x1x96x84xf32> to vector<96x84xf32>
    %cst_233 = arith.constant dense<0.000000e+00> : vector<7x84xf32>
    %160 = tpu.matmul %157, %159, %cst_233 {dimension_numbers = #tpu.dot_dimension_numbers<[1], [0], [0], [1], [0, 0, 1, 1], [], []>} : vector<7x96xf32>, vector<96x84xf32>, vector<7x84xf32> -> vector<7x84xf32>
    %c0_234 = arith.constant 0 : index
    %c3_235 = arith.constant 3 : index
    %c0_236 = arith.constant 0 : index
    %c0_237 = arith.constant 0 : index
    %161 = vector.load %arg1[%c0_234, %c3_235, %c0_236, %c0_237] : memref<1x4x8x96xf32, #tpu.memory_space<vmem>>, vector<1x1x7x96xf32>
    %162 = vector.shape_cast %161 : vector<1x1x7x96xf32> to vector<7x96xf32>
    %c1_238 = arith.constant 1 : index
    %c1_239 = arith.constant 1 : index
    %c0_240 = arith.constant 0 : index
    %c0_241 = arith.constant 0 : index
    %163 = vector.load %arg2[%c1_238, %c1_239, %c0_240, %c0_241] : memref<5x2x96x84xf32, #tpu.memory_space<vmem>>, vector<1x1x96x84xf32>
    %164 = vector.shape_cast %163 : vector<1x1x96x84xf32> to vector<96x84xf32>
    %cst_242 = arith.constant dense<0.000000e+00> : vector<7x84xf32>
    %165 = tpu.matmul %162, %164, %cst_242 {dimension_numbers = #tpu.dot_dimension_numbers<[1], [0], [0], [1], [0, 0, 1, 1], [], []>} : vector<7x96xf32>, vector<96x84xf32>, vector<7x84xf32> -> vector<7x84xf32>
    %166 = arith.addf %160, %165 : vector<7x84xf32>
    %c0_243 = arith.constant 0 : index
    %c0_244 = arith.constant 0 : index
    %c1_245 = arith.constant 1 : index
    %c0_246 = arith.constant 0 : index
    %167 = vector.load %arg1[%c0_243, %c0_244, %c1_245, %c0_246] : memref<1x4x8x96xf32, #tpu.memory_space<vmem>>, vector<1x1x7x96xf32>
    %168 = vector.shape_cast %167 : vector<1x1x7x96xf32> to vector<7x96xf32>
    %c2_247 = arith.constant 2 : index
    %c1_248 = arith.constant 1 : index
    %c0_249 = arith.constant 0 : index
    %c0_250 = arith.constant 0 : index
    %169 = vector.load %arg2[%c2_247, %c1_248, %c0_249, %c0_250] : memref<5x2x96x84xf32, #tpu.memory_space<vmem>>, vector<1x1x96x84xf32>
    %170 = vector.shape_cast %169 : vector<1x1x96x84xf32> to vector<96x84xf32>
    %cst_251 = arith.constant dense<0.000000e+00> : vector<7x84xf32>
    %171 = tpu.matmul %168, %170, %cst_251 {dimension_numbers = #tpu.dot_dimension_numbers<[1], [0], [0], [1], [0, 0, 1, 1], [], []>} : vector<7x96xf32>, vector<96x84xf32>, vector<7x84xf32> -> vector<7x84xf32>
    %172 = arith.addf %166, %171 : vector<7x84xf32>
    %c0_252 = arith.constant 0 : index
    %c1_253 = arith.constant 1 : index
    %c1_254 = arith.constant 1 : index
    %c0_255 = arith.constant 0 : index
    %173 = vector.load %arg1[%c0_252, %c1_253, %c1_254, %c0_255] : memref<1x4x8x96xf32, #tpu.memory_space<vmem>>, vector<1x1x7x96xf32>
    %174 = vector.shape_cast %173 : vector<1x1x7x96xf32> to vector<7x96xf32>
    %c3_256 = arith.constant 3 : index
    %c1_257 = arith.constant 1 : index
    %c0_258 = arith.constant 0 : index
    %c0_259 = arith.constant 0 : index
    %175 = vector.load %arg2[%c3_256, %c1_257, %c0_258, %c0_259] : memref<5x2x96x84xf32, #tpu.memory_space<vmem>>, vector<1x1x96x84xf32>
    %176 = vector.shape_cast %175 : vector<1x1x96x84xf32> to vector<96x84xf32>
    %cst_260 = arith.constant dense<0.000000e+00> : vector<7x84xf32>
    %177 = tpu.matmul %174, %176, %cst_260 {dimension_numbers = #tpu.dot_dimension_numbers<[1], [0], [0], [1], [0, 0, 1, 1], [], []>} : vector<7x96xf32>, vector<96x84xf32>, vector<7x84xf32> -> vector<7x84xf32>
    %178 = arith.addf %172, %177 : vector<7x84xf32>
    %c0_261 = arith.constant 0 : index
    %c2_262 = arith.constant 2 : index
    %c1_263 = arith.constant 1 : index
    %c0_264 = arith.constant 0 : index
    %179 = vector.load %arg1[%c0_261, %c2_262, %c1_263, %c0_264] : memref<1x4x8x96xf32, #tpu.memory_space<vmem>>, vector<1x1x7x96xf32>
    %180 = vector.shape_cast %179 : vector<1x1x7x96xf32> to vector<7x96xf32>
    %c4_265 = arith.constant 4 : index
    %c1_266 = arith.constant 1 : index
    %c0_267 = arith.constant 0 : index
    %c0_268 = arith.constant 0 : index
    %181 = vector.load %arg2[%c4_265, %c1_266, %c0_267, %c0_268] : memref<5x2x96x84xf32, #tpu.memory_space<vmem>>, vector<1x1x96x84xf32>
    %182 = vector.shape_cast %181 : vector<1x1x96x84xf32> to vector<96x84xf32>
    %cst_269 = arith.constant dense<0.000000e+00> : vector<7x84xf32>
    %183 = tpu.matmul %180, %182, %cst_269 {dimension_numbers = #tpu.dot_dimension_numbers<[1], [0], [0], [1], [0, 0, 1, 1], [], []>} : vector<7x96xf32>, vector<96x84xf32>, vector<7x84xf32> -> vector<7x84xf32>
    %184 = arith.addf %178, %183 : vector<7x84xf32>
    %185 = arith.maximumf %155, %184 : vector<7x84xf32>
    %c0_270 = arith.constant 0 : index
    %c3_271 = arith.constant 3 : index
    %c0_272 = arith.constant 0 : index
    %c0_273 = arith.constant 0 : index
    %186 = vector.load %arg1[%c0_270, %c3_271, %c0_272, %c0_273] : memref<1x4x8x96xf32, #tpu.memory_space<vmem>>, vector<1x1x7x96xf32>
    %187 = vector.shape_cast %186 : vector<1x1x7x96xf32> to vector<7x96xf32>
    %c0_274 = arith.constant 0 : index
    %c0_275 = arith.constant 0 : index
    %c0_276 = arith.constant 0 : index
    %c0_277 = arith.constant 0 : index
    %188 = vector.load %arg2[%c0_274, %c0_275, %c0_276, %c0_277] : memref<5x2x96x84xf32, #tpu.memory_space<vmem>>, vector<1x1x96x84xf32>
    %189 = vector.shape_cast %188 : vector<1x1x96x84xf32> to vector<96x84xf32>
    %cst_278 = arith.constant dense<0.000000e+00> : vector<7x84xf32>
    %190 = tpu.matmul %187, %189, %cst_278 {dimension_numbers = #tpu.dot_dimension_numbers<[1], [0], [0], [1], [0, 0, 1, 1], [], []>} : vector<7x96xf32>, vector<96x84xf32>, vector<7x84xf32> -> vector<7x84xf32>
    %c0_279 = arith.constant 0 : index
    %c0_280 = arith.constant 0 : index
    %c1_281 = arith.constant 1 : index
    %c0_282 = arith.constant 0 : index
    %191 = vector.load %arg1[%c0_279, %c0_280, %c1_281, %c0_282] : memref<1x4x8x96xf32, #tpu.memory_space<vmem>>, vector<1x1x7x96xf32>
    %192 = vector.shape_cast %191 : vector<1x1x7x96xf32> to vector<7x96xf32>
    %c1_283 = arith.constant 1 : index
    %c0_284 = arith.constant 0 : index
    %c0_285 = arith.constant 0 : index
    %c0_286 = arith.constant 0 : index
    %193 = vector.load %arg2[%c1_283, %c0_284, %c0_285, %c0_286] : memref<5x2x96x84xf32, #tpu.memory_space<vmem>>, vector<1x1x96x84xf32>
    %194 = vector.shape_cast %193 : vector<1x1x96x84xf32> to vector<96x84xf32>
    %cst_287 = arith.constant dense<0.000000e+00> : vector<7x84xf32>
    %195 = tpu.matmul %192, %194, %cst_287 {dimension_numbers = #tpu.dot_dimension_numbers<[1], [0], [0], [1], [0, 0, 1, 1], [], []>} : vector<7x96xf32>, vector<96x84xf32>, vector<7x84xf32> -> vector<7x84xf32>
    %196 = arith.addf %190, %195 : vector<7x84xf32>
    %c0_288 = arith.constant 0 : index
    %c1_289 = arith.constant 1 : index
    %c1_290 = arith.constant 1 : index
    %c0_291 = arith.constant 0 : index
    %197 = vector.load %arg1[%c0_288, %c1_289, %c1_290, %c0_291] : memref<1x4x8x96xf32, #tpu.memory_space<vmem>>, vector<1x1x7x96xf32>
    %198 = vector.shape_cast %197 : vector<1x1x7x96xf32> to vector<7x96xf32>
    %c2_292 = arith.constant 2 : index
    %c0_293 = arith.constant 0 : index
    %c0_294 = arith.constant 0 : index
    %c0_295 = arith.constant 0 : index
    %199 = vector.load %arg2[%c2_292, %c0_293, %c0_294, %c0_295] : memref<5x2x96x84xf32, #tpu.memory_space<vmem>>, vector<1x1x96x84xf32>
    %200 = vector.shape_cast %199 : vector<1x1x96x84xf32> to vector<96x84xf32>
    %cst_296 = arith.constant dense<0.000000e+00> : vector<7x84xf32>
    %201 = tpu.matmul %198, %200, %cst_296 {dimension_numbers = #tpu.dot_dimension_numbers<[1], [0], [0], [1], [0, 0, 1, 1], [], []>} : vector<7x96xf32>, vector<96x84xf32>, vector<7x84xf32> -> vector<7x84xf32>
    %202 = arith.addf %196, %201 : vector<7x84xf32>
    %c0_297 = arith.constant 0 : index
    %c2_298 = arith.constant 2 : index
    %c1_299 = arith.constant 1 : index
    %c0_300 = arith.constant 0 : index
    %203 = vector.load %arg1[%c0_297, %c2_298, %c1_299, %c0_300] : memref<1x4x8x96xf32, #tpu.memory_space<vmem>>, vector<1x1x7x96xf32>
    %204 = vector.shape_cast %203 : vector<1x1x7x96xf32> to vector<7x96xf32>
    %c3_301 = arith.constant 3 : index
    %c0_302 = arith.constant 0 : index
    %c0_303 = arith.constant 0 : index
    %c0_304 = arith.constant 0 : index
    %205 = vector.load %arg2[%c3_301, %c0_302, %c0_303, %c0_304] : memref<5x2x96x84xf32, #tpu.memory_space<vmem>>, vector<1x1x96x84xf32>
    %206 = vector.shape_cast %205 : vector<1x1x96x84xf32> to vector<96x84xf32>
    %cst_305 = arith.constant dense<0.000000e+00> : vector<7x84xf32>
    %207 = tpu.matmul %204, %206, %cst_305 {dimension_numbers = #tpu.dot_dimension_numbers<[1], [0], [0], [1], [0, 0, 1, 1], [], []>} : vector<7x96xf32>, vector<96x84xf32>, vector<7x84xf32> -> vector<7x84xf32>
    %208 = arith.addf %202, %207 : vector<7x84xf32>
    %c0_306 = arith.constant 0 : index
    %c3_307 = arith.constant 3 : index
    %c1_308 = arith.constant 1 : index
    %c0_309 = arith.constant 0 : index
    %209 = vector.load %arg1[%c0_306, %c3_307, %c1_308, %c0_309] : memref<1x4x8x96xf32, #tpu.memory_space<vmem>>, vector<1x1x7x96xf32>
    %210 = vector.shape_cast %209 : vector<1x1x7x96xf32> to vector<7x96xf32>
    %c4_310 = arith.constant 4 : index
    %c0_311 = arith.constant 0 : index
    %c0_312 = arith.constant 0 : index
    %c0_313 = arith.constant 0 : index
    %211 = vector.load %arg2[%c4_310, %c0_311, %c0_312, %c0_313] : memref<5x2x96x84xf32, #tpu.memory_space<vmem>>, vector<1x1x96x84xf32>
    %212 = vector.shape_cast %211 : vector<1x1x96x84xf32> to vector<96x84xf32>
    %cst_314 = arith.constant dense<0.000000e+00> : vector<7x84xf32>
    %213 = tpu.matmul %210, %212, %cst_314 {dimension_numbers = #tpu.dot_dimension_numbers<[1], [0], [0], [1], [0, 0, 1, 1], [], []>} : vector<7x96xf32>, vector<96x84xf32>, vector<7x84xf32> -> vector<7x84xf32>
    %214 = arith.addf %208, %213 : vector<7x84xf32>
    %215 = arith.maximumf %185, %214 : vector<7x84xf32>
    %c0_315 = arith.constant 0 : index
    %c3_316 = arith.constant 3 : index
    %c0_317 = arith.constant 0 : index
    %c0_318 = arith.constant 0 : index
    %216 = vector.load %arg1[%c0_315, %c3_316, %c0_317, %c0_318] : memref<1x4x8x96xf32, #tpu.memory_space<vmem>>, vector<1x1x7x96xf32>
    %217 = vector.shape_cast %216 : vector<1x1x7x96xf32> to vector<7x96xf32>
    %c0_319 = arith.constant 0 : index
    %c1_320 = arith.constant 1 : index
    %c0_321 = arith.constant 0 : index
    %c0_322 = arith.constant 0 : index
    %218 = vector.load %arg2[%c0_319, %c1_320, %c0_321, %c0_322] : memref<5x2x96x84xf32, #tpu.memory_space<vmem>>, vector<1x1x96x84xf32>
    %219 = vector.shape_cast %218 : vector<1x1x96x84xf32> to vector<96x84xf32>
    %cst_323 = arith.constant dense<0.000000e+00> : vector<7x84xf32>
    %220 = tpu.matmul %217, %219, %cst_323 {dimension_numbers = #tpu.dot_dimension_numbers<[1], [0], [0], [1], [0, 0, 1, 1], [], []>} : vector<7x96xf32>, vector<96x84xf32>, vector<7x84xf32> -> vector<7x84xf32>
    %c0_324 = arith.constant 0 : index
    %c0_325 = arith.constant 0 : index
    %c1_326 = arith.constant 1 : index
    %c0_327 = arith.constant 0 : index
    %221 = vector.load %arg1[%c0_324, %c0_325, %c1_326, %c0_327] : memref<1x4x8x96xf32, #tpu.memory_space<vmem>>, vector<1x1x7x96xf32>
    %222 = vector.shape_cast %221 : vector<1x1x7x96xf32> to vector<7x96xf32>
    %c1_328 = arith.constant 1 : index
    %c1_329 = arith.constant 1 : index
    %c0_330 = arith.constant 0 : index
    %c0_331 = arith.constant 0 : index
    %223 = vector.load %arg2[%c1_328, %c1_329, %c0_330, %c0_331] : memref<5x2x96x84xf32, #tpu.memory_space<vmem>>, vector<1x1x96x84xf32>
    %224 = vector.shape_cast %223 : vector<1x1x96x84xf32> to vector<96x84xf32>
    %cst_332 = arith.constant dense<0.000000e+00> : vector<7x84xf32>
    %225 = tpu.matmul %222, %224, %cst_332 {dimension_numbers = #tpu.dot_dimension_numbers<[1], [0], [0], [1], [0, 0, 1, 1], [], []>} : vector<7x96xf32>, vector<96x84xf32>, vector<7x84xf32> -> vector<7x84xf32>
    %226 = arith.addf %220, %225 : vector<7x84xf32>
    %c0_333 = arith.constant 0 : index
    %c1_334 = arith.constant 1 : index
    %c1_335 = arith.constant 1 : index
    %c0_336 = arith.constant 0 : index
    %227 = vector.load %arg1[%c0_333, %c1_334, %c1_335, %c0_336] : memref<1x4x8x96xf32, #tpu.memory_space<vmem>>, vector<1x1x7x96xf32>
    %228 = vector.shape_cast %227 : vector<1x1x7x96xf32> to vector<7x96xf32>
    %c2_337 = arith.constant 2 : index
    %c1_338 = arith.constant 1 : index
    %c0_339 = arith.constant 0 : index
    %c0_340 = arith.constant 0 : index
    %229 = vector.load %arg2[%c2_337, %c1_338, %c0_339, %c0_340] : memref<5x2x96x84xf32, #tpu.memory_space<vmem>>, vector<1x1x96x84xf32>
    %230 = vector.shape_cast %229 : vector<1x1x96x84xf32> to vector<96x84xf32>
    %cst_341 = arith.constant dense<0.000000e+00> : vector<7x84xf32>
    %231 = tpu.matmul %228, %230, %cst_341 {dimension_numbers = #tpu.dot_dimension_numbers<[1], [0], [0], [1], [0, 0, 1, 1], [], []>} : vector<7x96xf32>, vector<96x84xf32>, vector<7x84xf32> -> vector<7x84xf32>
    %232 = arith.addf %226, %231 : vector<7x84xf32>
    %c0_342 = arith.constant 0 : index
    %c2_343 = arith.constant 2 : index
    %c1_344 = arith.constant 1 : index
    %c0_345 = arith.constant 0 : index
    %233 = vector.load %arg1[%c0_342, %c2_343, %c1_344, %c0_345] : memref<1x4x8x96xf32, #tpu.memory_space<vmem>>, vector<1x1x7x96xf32>
    %234 = vector.shape_cast %233 : vector<1x1x7x96xf32> to vector<7x96xf32>
    %c3_346 = arith.constant 3 : index
    %c1_347 = arith.constant 1 : index
    %c0_348 = arith.constant 0 : index
    %c0_349 = arith.constant 0 : index
    %235 = vector.load %arg2[%c3_346, %c1_347, %c0_348, %c0_349] : memref<5x2x96x84xf32, #tpu.memory_space<vmem>>, vector<1x1x96x84xf32>
    %236 = vector.shape_cast %235 : vector<1x1x96x84xf32> to vector<96x84xf32>
    %cst_350 = arith.constant dense<0.000000e+00> : vector<7x84xf32>
    %237 = tpu.matmul %234, %236, %cst_350 {dimension_numbers = #tpu.dot_dimension_numbers<[1], [0], [0], [1], [0, 0, 1, 1], [], []>} : vector<7x96xf32>, vector<96x84xf32>, vector<7x84xf32> -> vector<7x84xf32>
    %238 = arith.addf %232, %237 : vector<7x84xf32>
    %c0_351 = arith.constant 0 : index
    %c3_352 = arith.constant 3 : index
    %c1_353 = arith.constant 1 : index
    %c0_354 = arith.constant 0 : index
    %239 = vector.load %arg1[%c0_351, %c3_352, %c1_353, %c0_354] : memref<1x4x8x96xf32, #tpu.memory_space<vmem>>, vector<1x1x7x96xf32>
    %240 = vector.shape_cast %239 : vector<1x1x7x96xf32> to vector<7x96xf32>
    %c4_355 = arith.constant 4 : index
    %c1_356 = arith.constant 1 : index
    %c0_357 = arith.constant 0 : index
    %c0_358 = arith.constant 0 : index
    %241 = vector.load %arg2[%c4_355, %c1_356, %c0_357, %c0_358] : memref<5x2x96x84xf32, #tpu.memory_space<vmem>>, vector<1x1x96x84xf32>
    %242 = vector.shape_cast %241 : vector<1x1x96x84xf32> to vector<96x84xf32>
    %cst_359 = arith.constant dense<0.000000e+00> : vector<7x84xf32>
    %243 = tpu.matmul %240, %242, %cst_359 {dimension_numbers = #tpu.dot_dimension_numbers<[1], [0], [0], [1], [0, 0, 1, 1], [], []>} : vector<7x96xf32>, vector<96x84xf32>, vector<7x84xf32> -> vector<7x84xf32>
    %244 = arith.addf %238, %243 : vector<7x84xf32>
    %245 = arith.maximumf %215, %244 : vector<7x84xf32>
    %246 = vector.broadcast %0 : vector<1x84xf32> to vector<7x84xf32>
    %247 = arith.addf %245, %246 : vector<7x84xf32>
    %cst_360 = arith.constant 0.000000e+00 : f32
    %248 = vector.broadcast %cst_360 : f32 to vector<7x84xf32>
    %249 = arith.maximumf %247, %248 : vector<7x84xf32>
    %c1_361 = arith.constant 1 : index
    %c0_362 = arith.constant 0 : index
    %c0_363 = arith.constant 0 : index
    %250 = vector.load %arg13[%c1_361, %c0_362, %c0_363] : memref<2x7x84xf32, #tpu.memory_space<vmem>>, vector<1x7x84xf32>
    %251 = vector.shape_cast %250 : vector<1x7x84xf32> to vector<7x84xf32>
    %252 = vector.shape_cast %249 : vector<7x84xf32> to vector<1x7x84xf32>
    tpu.vector_store %arg13[%c1_361, %c0_362, %c0_363], %252 {strides = array<i32>} : memref<2x7x84xf32, #tpu.memory_space<vmem>>, vector<1x7x84xf32>,
    %c0_364 = arith.constant 0 : index
    %c0_365 = arith.constant 0 : index
    %253 = vector.load %arg5[%c0_364, %c0_365] : memref<1x80xf32, #tpu.memory_space<vmem>>, vector<1x80xf32>
    %c0_366 = arith.constant 0 : index
    %c0_367 = arith.constant 0 : index
    %c0_368 = arith.constant 0 : index
    %254 = vector.load %arg13[%c0_366, %c0_367, %c0_368] : memref<2x7x84xf32, #tpu.memory_space<vmem>>, vector<1x5x84xf32>
    %255 = vector.shape_cast %254 : vector<1x5x84xf32> to vector<5x84xf32>
    %c0_369 = arith.constant 0 : index
    %c0_370 = arith.constant 0 : index
    %c0_371 = arith.constant 0 : index
    %c0_372 = arith.constant 0 : index
    %256 = vector.load %arg4[%c0_369, %c0_370, %c0_371, %c0_372] : memref<5x2x84x80xf32, #tpu.memory_space<vmem>>, vector<1x1x84x80xf32>
    %257 = vector.shape_cast %256 : vector<1x1x84x80xf32> to vector<84x80xf32>
    %cst_373 = arith.constant dense<0.000000e+00> : vector<5x80xf32>
    %258 = tpu.matmul %255, %257, %cst_373 {dimension_numbers = #tpu.dot_dimension_numbers<[1], [0], [0], [1], [0, 0, 1, 1], [], []>} : vector<5x84xf32>, vector<84x80xf32>, vector<5x80xf32> -> vector<5x80xf32>
    %c1_374 = arith.constant 1 : index
    %c0_375 = arith.constant 0 : index
    %c0_376 = arith.constant 0 : index
    %259 = vector.load %arg13[%c1_374, %c0_375, %c0_376] : memref<2x7x84xf32, #tpu.memory_space<vmem>>, vector<1x5x84xf32>
    %260 = vector.shape_cast %259 : vector<1x5x84xf32> to vector<5x84xf32>
    %c1_377 = arith.constant 1 : index
    %c0_378 = arith.constant 0 : index
    %c0_379 = arith.constant 0 : index
    %c0_380 = arith.constant 0 : index
    %261 = vector.load %arg4[%c1_377, %c0_378, %c0_379, %c0_380] : memref<5x2x84x80xf32, #tpu.memory_space<vmem>>, vector<1x1x84x80xf32>
    %262 = vector.shape_cast %261 : vector<1x1x84x80xf32> to vector<84x80xf32>
    %cst_381 = arith.constant dense<0.000000e+00> : vector<5x80xf32>
    %263 = tpu.matmul %260, %262, %cst_381 {dimension_numbers = #tpu.dot_dimension_numbers<[1], [0], [0], [1], [0, 0, 1, 1], [], []>} : vector<5x84xf32>, vector<84x80xf32>, vector<5x80xf32> -> vector<5x80xf32>
    %264 = arith.addf %258, %263 : vector<5x80xf32>
    %c0_382 = arith.constant 0 : index
    %c1_383 = arith.constant 1 : index
    %c0_384 = arith.constant 0 : index
    %265 = vector.load %arg13[%c0_382, %c1_383, %c0_384] : memref<2x7x84xf32, #tpu.memory_space<vmem>>, vector<1x5x84xf32>
    %266 = vector.shape_cast %265 : vector<1x5x84xf32> to vector<5x84xf32>
    %c2_385 = arith.constant 2 : index
    %c0_386 = arith.constant 0 : index
    %c0_387 = arith.constant 0 : index
    %c0_388 = arith.constant 0 : index
    %267 = vector.load %arg4[%c2_385, %c0_386, %c0_387, %c0_388] : memref<5x2x84x80xf32, #tpu.memory_space<vmem>>, vector<1x1x84x80xf32>
    %268 = vector.shape_cast %267 : vector<1x1x84x80xf32> to vector<84x80xf32>
    %cst_389 = arith.constant dense<0.000000e+00> : vector<5x80xf32>
    %269 = tpu.matmul %266, %268, %cst_389 {dimension_numbers = #tpu.dot_dimension_numbers<[1], [0], [0], [1], [0, 0, 1, 1], [], []>} : vector<5x84xf32>, vector<84x80xf32>, vector<5x80xf32> -> vector<5x80xf32>
    %270 = arith.addf %264, %269 : vector<5x80xf32>
    %c1_390 = arith.constant 1 : index
    %c1_391 = arith.constant 1 : index
    %c0_392 = arith.constant 0 : index
    %271 = vector.load %arg13[%c1_390, %c1_391, %c0_392] : memref<2x7x84xf32, #tpu.memory_space<vmem>>, vector<1x5x84xf32>
    %272 = vector.shape_cast %271 : vector<1x5x84xf32> to vector<5x84xf32>
    %c3_393 = arith.constant 3 : index
    %c0_394 = arith.constant 0 : index
    %c0_395 = arith.constant 0 : index
    %c0_396 = arith.constant 0 : index
    %273 = vector.load %arg4[%c3_393, %c0_394, %c0_395, %c0_396] : memref<5x2x84x80xf32, #tpu.memory_space<vmem>>, vector<1x1x84x80xf32>
    %274 = vector.shape_cast %273 : vector<1x1x84x80xf32> to vector<84x80xf32>
    %cst_397 = arith.constant dense<0.000000e+00> : vector<5x80xf32>
    %275 = tpu.matmul %272, %274, %cst_397 {dimension_numbers = #tpu.dot_dimension_numbers<[1], [0], [0], [1], [0, 0, 1, 1], [], []>} : vector<5x84xf32>, vector<84x80xf32>, vector<5x80xf32> -> vector<5x80xf32>
    %276 = arith.addf %270, %275 : vector<5x80xf32>
    %c0_398 = arith.constant 0 : index
    %c2_399 = arith.constant 2 : index
    %c0_400 = arith.constant 0 : index
    %277 = vector.load %arg13[%c0_398, %c2_399, %c0_400] : memref<2x7x84xf32, #tpu.memory_space<vmem>>, vector<1x5x84xf32>
    %278 = vector.shape_cast %277 : vector<1x5x84xf32> to vector<5x84xf32>
    %c4_401 = arith.constant 4 : index
    %c0_402 = arith.constant 0 : index
    %c0_403 = arith.constant 0 : index
    %c0_404 = arith.constant 0 : index
    %279 = vector.load %arg4[%c4_401, %c0_402, %c0_403, %c0_404] : memref<5x2x84x80xf32, #tpu.memory_space<vmem>>, vector<1x1x84x80xf32>
    %280 = vector.shape_cast %279 : vector<1x1x84x80xf32> to vector<84x80xf32>
    %cst_405 = arith.constant dense<0.000000e+00> : vector<5x80xf32>
    %281 = tpu.matmul %278, %280, %cst_405 {dimension_numbers = #tpu.dot_dimension_numbers<[1], [0], [0], [1], [0, 0, 1, 1], [], []>} : vector<5x84xf32>, vector<84x80xf32>, vector<5x80xf32> -> vector<5x80xf32>
    %282 = arith.addf %276, %281 : vector<5x80xf32>
    %c0_406 = arith.constant 0 : index
    %c0_407 = arith.constant 0 : index
    %c0_408 = arith.constant 0 : index
    %283 = vector.load %arg13[%c0_406, %c0_407, %c0_408] : memref<2x7x84xf32, #tpu.memory_space<vmem>>, vector<1x5x84xf32>
    %284 = vector.shape_cast %283 : vector<1x5x84xf32> to vector<5x84xf32>
    %c0_409 = arith.constant 0 : index
    %c1_410 = arith.constant 1 : index
    %c0_411 = arith.constant 0 : index
    %c0_412 = arith.constant 0 : index
    %285 = vector.load %arg4[%c0_409, %c1_410, %c0_411, %c0_412] : memref<5x2x84x80xf32, #tpu.memory_space<vmem>>, vector<1x1x84x80xf32>
    %286 = vector.shape_cast %285 : vector<1x1x84x80xf32> to vector<84x80xf32>
    %cst_413 = arith.constant dense<0.000000e+00> : vector<5x80xf32>
    %287 = tpu.matmul %284, %286, %cst_413 {dimension_numbers = #tpu.dot_dimension_numbers<[1], [0], [0], [1], [0, 0, 1, 1], [], []>} : vector<5x84xf32>, vector<84x80xf32>, vector<5x80xf32> -> vector<5x80xf32>
    %c1_414 = arith.constant 1 : index
    %c0_415 = arith.constant 0 : index
    %c0_416 = arith.constant 0 : index
    %288 = vector.load %arg13[%c1_414, %c0_415, %c0_416] : memref<2x7x84xf32, #tpu.memory_space<vmem>>, vector<1x5x84xf32>
    %289 = vector.shape_cast %288 : vector<1x5x84xf32> to vector<5x84xf32>
    %c1_417 = arith.constant 1 : index
    %c1_418 = arith.constant 1 : index
    %c0_419 = arith.constant 0 : index
    %c0_420 = arith.constant 0 : index
    %290 = vector.load %arg4[%c1_417, %c1_418, %c0_419, %c0_420] : memref<5x2x84x80xf32, #tpu.memory_space<vmem>>, vector<1x1x84x80xf32>
    %291 = vector.shape_cast %290 : vector<1x1x84x80xf32> to vector<84x80xf32>
    %cst_421 = arith.constant dense<0.000000e+00> : vector<5x80xf32>
    %292 = tpu.matmul %289, %291, %cst_421 {dimension_numbers = #tpu.dot_dimension_numbers<[1], [0], [0], [1], [0, 0, 1, 1], [], []>} : vector<5x84xf32>, vector<84x80xf32>, vector<5x80xf32> -> vector<5x80xf32>
    %293 = arith.addf %287, %292 : vector<5x80xf32>
    %c0_422 = arith.constant 0 : index
    %c1_423 = arith.constant 1 : index
    %c0_424 = arith.constant 0 : index
    %294 = vector.load %arg13[%c0_422, %c1_423, %c0_424] : memref<2x7x84xf32, #tpu.memory_space<vmem>>, vector<1x5x84xf32>
    %295 = vector.shape_cast %294 : vector<1x5x84xf32> to vector<5x84xf32>
    %c2_425 = arith.constant 2 : index
    %c1_426 = arith.constant 1 : index
    %c0_427 = arith.constant 0 : index
    %c0_428 = arith.constant 0 : index
    %296 = vector.load %arg4[%c2_425, %c1_426, %c0_427, %c0_428] : memref<5x2x84x80xf32, #tpu.memory_space<vmem>>, vector<1x1x84x80xf32>
    %297 = vector.shape_cast %296 : vector<1x1x84x80xf32> to vector<84x80xf32>
    %cst_429 = arith.constant dense<0.000000e+00> : vector<5x80xf32>
    %298 = tpu.matmul %295, %297, %cst_429 {dimension_numbers = #tpu.dot_dimension_numbers<[1], [0], [0], [1], [0, 0, 1, 1], [], []>} : vector<5x84xf32>, vector<84x80xf32>, vector<5x80xf32> -> vector<5x80xf32>
    %299 = arith.addf %293, %298 : vector<5x80xf32>
    %c1_430 = arith.constant 1 : index
    %c1_431 = arith.constant 1 : index
    %c0_432 = arith.constant 0 : index
    %300 = vector.load %arg13[%c1_430, %c1_431, %c0_432] : memref<2x7x84xf32, #tpu.memory_space<vmem>>, vector<1x5x84xf32>
    %301 = vector.shape_cast %300 : vector<1x5x84xf32> to vector<5x84xf32>
    %c3_433 = arith.constant 3 : index
    %c1_434 = arith.constant 1 : index
    %c0_435 = arith.constant 0 : index
    %c0_436 = arith.constant 0 : index
    %302 = vector.load %arg4[%c3_433, %c1_434, %c0_435, %c0_436] : memref<5x2x84x80xf32, #tpu.memory_space<vmem>>, vector<1x1x84x80xf32>
    %303 = vector.shape_cast %302 : vector<1x1x84x80xf32> to vector<84x80xf32>
    %cst_437 = arith.constant dense<0.000000e+00> : vector<5x80xf32>
    %304 = tpu.matmul %301, %303, %cst_437 {dimension_numbers = #tpu.dot_dimension_numbers<[1], [0], [0], [1], [0, 0, 1, 1], [], []>} : vector<5x84xf32>, vector<84x80xf32>, vector<5x80xf32> -> vector<5x80xf32>
    %305 = arith.addf %299, %304 : vector<5x80xf32>
    %c0_438 = arith.constant 0 : index
    %c2_439 = arith.constant 2 : index
    %c0_440 = arith.constant 0 : index
    %306 = vector.load %arg13[%c0_438, %c2_439, %c0_440] : memref<2x7x84xf32, #tpu.memory_space<vmem>>, vector<1x5x84xf32>
    %307 = vector.shape_cast %306 : vector<1x5x84xf32> to vector<5x84xf32>
    %c4_441 = arith.constant 4 : index
    %c1_442 = arith.constant 1 : index
    %c0_443 = arith.constant 0 : index
    %c0_444 = arith.constant 0 : index
    %308 = vector.load %arg4[%c4_441, %c1_442, %c0_443, %c0_444] : memref<5x2x84x80xf32, #tpu.memory_space<vmem>>, vector<1x1x84x80xf32>
    %309 = vector.shape_cast %308 : vector<1x1x84x80xf32> to vector<84x80xf32>
    %cst_445 = arith.constant dense<0.000000e+00> : vector<5x80xf32>
    %310 = tpu.matmul %307, %309, %cst_445 {dimension_numbers = #tpu.dot_dimension_numbers<[1], [0], [0], [1], [0, 0, 1, 1], [], []>} : vector<5x84xf32>, vector<84x80xf32>, vector<5x80xf32> -> vector<5x80xf32>
    %311 = arith.addf %305, %310 : vector<5x80xf32>
    %312 = arith.maximumf %282, %311 : vector<5x80xf32>
    %c1_446 = arith.constant 1 : index
    %c0_447 = arith.constant 0 : index
    %c0_448 = arith.constant 0 : index
    %313 = vector.load %arg13[%c1_446, %c0_447, %c0_448] : memref<2x7x84xf32, #tpu.memory_space<vmem>>, vector<1x5x84xf32>
    %314 = vector.shape_cast %313 : vector<1x5x84xf32> to vector<5x84xf32>
    %c0_449 = arith.constant 0 : index
    %c0_450 = arith.constant 0 : index
    %c0_451 = arith.constant 0 : index
    %c0_452 = arith.constant 0 : index
    %315 = vector.load %arg4[%c0_449, %c0_450, %c0_451, %c0_452] : memref<5x2x84x80xf32, #tpu.memory_space<vmem>>, vector<1x1x84x80xf32>
    %316 = vector.shape_cast %315 : vector<1x1x84x80xf32> to vector<84x80xf32>
    %cst_453 = arith.constant dense<0.000000e+00> : vector<5x80xf32>
    %317 = tpu.matmul %314, %316, %cst_453 {dimension_numbers = #tpu.dot_dimension_numbers<[1], [0], [0], [1], [0, 0, 1, 1], [], []>} : vector<5x84xf32>, vector<84x80xf32>, vector<5x80xf32> -> vector<5x80xf32>
    %c0_454 = arith.constant 0 : index
    %c1_455 = arith.constant 1 : index
    %c0_456 = arith.constant 0 : index
    %318 = vector.load %arg13[%c0_454, %c1_455, %c0_456] : memref<2x7x84xf32, #tpu.memory_space<vmem>>, vector<1x5x84xf32>
    %319 = vector.shape_cast %318 : vector<1x5x84xf32> to vector<5x84xf32>
    %c1_457 = arith.constant 1 : index
    %c0_458 = arith.constant 0 : index
    %c0_459 = arith.constant 0 : index
    %c0_460 = arith.constant 0 : index
    %320 = vector.load %arg4[%c1_457, %c0_458, %c0_459, %c0_460] : memref<5x2x84x80xf32, #tpu.memory_space<vmem>>, vector<1x1x84x80xf32>
    %321 = vector.shape_cast %320 : vector<1x1x84x80xf32> to vector<84x80xf32>
    %cst_461 = arith.constant dense<0.000000e+00> : vector<5x80xf32>
    %322 = tpu.matmul %319, %321, %cst_461 {dimension_numbers = #tpu.dot_dimension_numbers<[1], [0], [0], [1], [0, 0, 1, 1], [], []>} : vector<5x84xf32>, vector<84x80xf32>, vector<5x80xf32> -> vector<5x80xf32>
    %323 = arith.addf %317, %322 : vector<5x80xf32>
    %c1_462 = arith.constant 1 : index
    %c1_463 = arith.constant 1 : index
    %c0_464 = arith.constant 0 : index
    %324 = vector.load %arg13[%c1_462, %c1_463, %c0_464] : memref<2x7x84xf32, #tpu.memory_space<vmem>>, vector<1x5x84xf32>
    %325 = vector.shape_cast %324 : vector<1x5x84xf32> to vector<5x84xf32>
    %c2_465 = arith.constant 2 : index
    %c0_466 = arith.constant 0 : index
    %c0_467 = arith.constant 0 : index
    %c0_468 = arith.constant 0 : index
    %326 = vector.load %arg4[%c2_465, %c0_466, %c0_467, %c0_468] : memref<5x2x84x80xf32, #tpu.memory_space<vmem>>, vector<1x1x84x80xf32>
    %327 = vector.shape_cast %326 : vector<1x1x84x80xf32> to vector<84x80xf32>
    %cst_469 = arith.constant dense<0.000000e+00> : vector<5x80xf32>
    %328 = tpu.matmul %325, %327, %cst_469 {dimension_numbers = #tpu.dot_dimension_numbers<[1], [0], [0], [1], [0, 0, 1, 1], [], []>} : vector<5x84xf32>, vector<84x80xf32>, vector<5x80xf32> -> vector<5x80xf32>
    %329 = arith.addf %323, %328 : vector<5x80xf32>
    %c0_470 = arith.constant 0 : index
    %c2_471 = arith.constant 2 : index
    %c0_472 = arith.constant 0 : index
    %330 = vector.load %arg13[%c0_470, %c2_471, %c0_472] : memref<2x7x84xf32, #tpu.memory_space<vmem>>, vector<1x5x84xf32>
    %331 = vector.shape_cast %330 : vector<1x5x84xf32> to vector<5x84xf32>
    %c3_473 = arith.constant 3 : index
    %c0_474 = arith.constant 0 : index
    %c0_475 = arith.constant 0 : index
    %c0_476 = arith.constant 0 : index
    %332 = vector.load %arg4[%c3_473, %c0_474, %c0_475, %c0_476] : memref<5x2x84x80xf32, #tpu.memory_space<vmem>>, vector<1x1x84x80xf32>
    %333 = vector.shape_cast %332 : vector<1x1x84x80xf32> to vector<84x80xf32>
    %cst_477 = arith.constant dense<0.000000e+00> : vector<5x80xf32>
    %334 = tpu.matmul %331, %333, %cst_477 {dimension_numbers = #tpu.dot_dimension_numbers<[1], [0], [0], [1], [0, 0, 1, 1], [], []>} : vector<5x84xf32>, vector<84x80xf32>, vector<5x80xf32> -> vector<5x80xf32>
    %335 = arith.addf %329, %334 : vector<5x80xf32>
    %c1_478 = arith.constant 1 : index
    %c2_479 = arith.constant 2 : index
    %c0_480 = arith.constant 0 : index
    %336 = vector.load %arg13[%c1_478, %c2_479, %c0_480] : memref<2x7x84xf32, #tpu.memory_space<vmem>>, vector<1x5x84xf32>
    %337 = vector.shape_cast %336 : vector<1x5x84xf32> to vector<5x84xf32>
    %c4_481 = arith.constant 4 : index
    %c0_482 = arith.constant 0 : index
    %c0_483 = arith.constant 0 : index
    %c0_484 = arith.constant 0 : index
    %338 = vector.load %arg4[%c4_481, %c0_482, %c0_483, %c0_484] : memref<5x2x84x80xf32, #tpu.memory_space<vmem>>, vector<1x1x84x80xf32>
    %339 = vector.shape_cast %338 : vector<1x1x84x80xf32> to vector<84x80xf32>
    %cst_485 = arith.constant dense<0.000000e+00> : vector<5x80xf32>
    %340 = tpu.matmul %337, %339, %cst_485 {dimension_numbers = #tpu.dot_dimension_numbers<[1], [0], [0], [1], [0, 0, 1, 1], [], []>} : vector<5x84xf32>, vector<84x80xf32>, vector<5x80xf32> -> vector<5x80xf32>
    %341 = arith.addf %335, %340 : vector<5x80xf32>
    %342 = arith.maximumf %312, %341 : vector<5x80xf32>
    %c1_486 = arith.constant 1 : index
    %c0_487 = arith.constant 0 : index
    %c0_488 = arith.constant 0 : index
    %343 = vector.load %arg13[%c1_486, %c0_487, %c0_488] : memref<2x7x84xf32, #tpu.memory_space<vmem>>, vector<1x5x84xf32>
    %344 = vector.shape_cast %343 : vector<1x5x84xf32> to vector<5x84xf32>
    %c0_489 = arith.constant 0 : index
    %c1_490 = arith.constant 1 : index
    %c0_491 = arith.constant 0 : index
    %c0_492 = arith.constant 0 : index
    %345 = vector.load %arg4[%c0_489, %c1_490, %c0_491, %c0_492] : memref<5x2x84x80xf32, #tpu.memory_space<vmem>>, vector<1x1x84x80xf32>
    %346 = vector.shape_cast %345 : vector<1x1x84x80xf32> to vector<84x80xf32>
    %cst_493 = arith.constant dense<0.000000e+00> : vector<5x80xf32>
    %347 = tpu.matmul %344, %346, %cst_493 {dimension_numbers = #tpu.dot_dimension_numbers<[1], [0], [0], [1], [0, 0, 1, 1], [], []>} : vector<5x84xf32>, vector<84x80xf32>, vector<5x80xf32> -> vector<5x80xf32>
    %c0_494 = arith.constant 0 : index
    %c1_495 = arith.constant 1 : index
    %c0_496 = arith.constant 0 : index
    %348 = vector.load %arg13[%c0_494, %c1_495, %c0_496] : memref<2x7x84xf32, #tpu.memory_space<vmem>>, vector<1x5x84xf32>
    %349 = vector.shape_cast %348 : vector<1x5x84xf32> to vector<5x84xf32>
    %c1_497 = arith.constant 1 : index
    %c1_498 = arith.constant 1 : index
    %c0_499 = arith.constant 0 : index
    %c0_500 = arith.constant 0 : index
    %350 = vector.load %arg4[%c1_497, %c1_498, %c0_499, %c0_500] : memref<5x2x84x80xf32, #tpu.memory_space<vmem>>, vector<1x1x84x80xf32>
    %351 = vector.shape_cast %350 : vector<1x1x84x80xf32> to vector<84x80xf32>
    %cst_501 = arith.constant dense<0.000000e+00> : vector<5x80xf32>
    %352 = tpu.matmul %349, %351, %cst_501 {dimension_numbers = #tpu.dot_dimension_numbers<[1], [0], [0], [1], [0, 0, 1, 1], [], []>} : vector<5x84xf32>, vector<84x80xf32>, vector<5x80xf32> -> vector<5x80xf32>
    %353 = arith.addf %347, %352 : vector<5x80xf32>
    %c1_502 = arith.constant 1 : index
    %c1_503 = arith.constant 1 : index
    %c0_504 = arith.constant 0 : index
    %354 = vector.load %arg13[%c1_502, %c1_503, %c0_504] : memref<2x7x84xf32, #tpu.memory_space<vmem>>, vector<1x5x84xf32>
    %355 = vector.shape_cast %354 : vector<1x5x84xf32> to vector<5x84xf32>
    %c2_505 = arith.constant 2 : index
    %c1_506 = arith.constant 1 : index
    %c0_507 = arith.constant 0 : index
    %c0_508 = arith.constant 0 : index
    %356 = vector.load %arg4[%c2_505, %c1_506, %c0_507, %c0_508] : memref<5x2x84x80xf32, #tpu.memory_space<vmem>>, vector<1x1x84x80xf32>
    %357 = vector.shape_cast %356 : vector<1x1x84x80xf32> to vector<84x80xf32>
    %cst_509 = arith.constant dense<0.000000e+00> : vector<5x80xf32>
    %358 = tpu.matmul %355, %357, %cst_509 {dimension_numbers = #tpu.dot_dimension_numbers<[1], [0], [0], [1], [0, 0, 1, 1], [], []>} : vector<5x84xf32>, vector<84x80xf32>, vector<5x80xf32> -> vector<5x80xf32>
    %359 = arith.addf %353, %358 : vector<5x80xf32>
    %c0_510 = arith.constant 0 : index
    %c2_511 = arith.constant 2 : index
    %c0_512 = arith.constant 0 : index
    %360 = vector.load %arg13[%c0_510, %c2_511, %c0_512] : memref<2x7x84xf32, #tpu.memory_space<vmem>>, vector<1x5x84xf32>
    %361 = vector.shape_cast %360 : vector<1x5x84xf32> to vector<5x84xf32>
    %c3_513 = arith.constant 3 : index
    %c1_514 = arith.constant 1 : index
    %c0_515 = arith.constant 0 : index
    %c0_516 = arith.constant 0 : index
    %362 = vector.load %arg4[%c3_513, %c1_514, %c0_515, %c0_516] : memref<5x2x84x80xf32, #tpu.memory_space<vmem>>, vector<1x1x84x80xf32>
    %363 = vector.shape_cast %362 : vector<1x1x84x80xf32> to vector<84x80xf32>
    %cst_517 = arith.constant dense<0.000000e+00> : vector<5x80xf32>
    %364 = tpu.matmul %361, %363, %cst_517 {dimension_numbers = #tpu.dot_dimension_numbers<[1], [0], [0], [1], [0, 0, 1, 1], [], []>} : vector<5x84xf32>, vector<84x80xf32>, vector<5x80xf32> -> vector<5x80xf32>
    %365 = arith.addf %359, %364 : vector<5x80xf32>
    %c1_518 = arith.constant 1 : index
    %c2_519 = arith.constant 2 : index
    %c0_520 = arith.constant 0 : index
    %366 = vector.load %arg13[%c1_518, %c2_519, %c0_520] : memref<2x7x84xf32, #tpu.memory_space<vmem>>, vector<1x5x84xf32>
    %367 = vector.shape_cast %366 : vector<1x5x84xf32> to vector<5x84xf32>
    %c4_521 = arith.constant 4 : index
    %c1_522 = arith.constant 1 : index
    %c0_523 = arith.constant 0 : index
    %c0_524 = arith.constant 0 : index
    %368 = vector.load %arg4[%c4_521, %c1_522, %c0_523, %c0_524] : memref<5x2x84x80xf32, #tpu.memory_space<vmem>>, vector<1x1x84x80xf32>
    %369 = vector.shape_cast %368 : vector<1x1x84x80xf32> to vector<84x80xf32>
    %cst_525 = arith.constant dense<0.000000e+00> : vector<5x80xf32>
    %370 = tpu.matmul %367, %369, %cst_525 {dimension_numbers = #tpu.dot_dimension_numbers<[1], [0], [0], [1], [0, 0, 1, 1], [], []>} : vector<5x84xf32>, vector<84x80xf32>, vector<5x80xf32> -> vector<5x80xf32>
    %371 = arith.addf %365, %370 : vector<5x80xf32>
    %372 = arith.maximumf %342, %371 : vector<5x80xf32>
    %373 = vector.broadcast %253 : vector<1x80xf32> to vector<5x80xf32>
    %374 = arith.addf %372, %373 : vector<5x80xf32>
    %cst_526 = arith.constant 0.000000e+00 : f32
    %375 = vector.broadcast %cst_526 : f32 to vector<5x80xf32>
    %376 = arith.maximumf %374, %375 : vector<5x80xf32>
    %c0_527 = arith.constant 0 : index
    %c0_528 = arith.constant 0 : index
    %377 = vector.load %arg14[%c0_527, %c0_528] : memref<5x80xf32, #tpu.memory_space<vmem>>, vector<5x80xf32>
    tpu.vector_store %arg14[%c0_527, %c0_528], %376 {strides = array<i32>} : memref<5x80xf32, #tpu.memory_space<vmem>>, vector<5x80xf32>,
    %c0_529 = arith.constant 0 : index
    %c0_530 = arith.constant 0 : index
    %378 = vector.load %arg7[%c0_529, %c0_530] : memref<1x128xf32, #tpu.memory_space<vmem>>, vector<1x128xf32>
    %c0_531 = arith.constant 0 : index
    %c0_532 = arith.constant 0 : index
    %379 = vector.load %arg14[%c0_531, %c0_532] : memref<5x80xf32, #tpu.memory_space<vmem>>, vector<1x80xf32>
    %c0_533 = arith.constant 0 : index
    %c0_534 = arith.constant 0 : index
    %c0_535 = arith.constant 0 : index
    %380 = vector.load %arg6[%c0_533, %c0_534, %c0_535] : memref<5x80x128xf32, #tpu.memory_space<vmem>>, vector<1x80x128xf32>
    %381 = vector.shape_cast %380 : vector<1x80x128xf32> to vector<80x128xf32>
    %cst_536 = arith.constant dense<0.000000e+00> : vector<1x128xf32>
    %382 = tpu.matmul %379, %381, %cst_536 {dimension_numbers = #tpu.dot_dimension_numbers<[1], [0], [0], [1], [0, 0, 1, 1], [], []>} : vector<1x80xf32>, vector<80x128xf32>, vector<1x128xf32> -> vector<1x128xf32>
    %383 = arith.addf %378, %382 : vector<1x128xf32>
    %c1_537 = arith.constant 1 : index
    %c0_538 = arith.constant 0 : index
    %384 = vector.load %arg14[%c1_537, %c0_538] : memref<5x80xf32, #tpu.memory_space<vmem>>, vector<1x80xf32>
    %c1_539 = arith.constant 1 : index
    %c0_540 = arith.constant 0 : index
    %c0_541 = arith.constant 0 : index
    %385 = vector.load %arg6[%c1_539, %c0_540, %c0_541] : memref<5x80x128xf32, #tpu.memory_space<vmem>>, vector<1x80x128xf32>
    %386 = vector.shape_cast %385 : vector<1x80x128xf32> to vector<80x128xf32>
    %cst_542 = arith.constant dense<0.000000e+00> : vector<1x128xf32>
    %387 = tpu.matmul %384, %386, %cst_542 {dimension_numbers = #tpu.dot_dimension_numbers<[1], [0], [0], [1], [0, 0, 1, 1], [], []>} : vector<1x80xf32>, vector<80x128xf32>, vector<1x128xf32> -> vector<1x128xf32>
    %388 = arith.addf %383, %387 : vector<1x128xf32>
    %c2_543 = arith.constant 2 : index
    %c0_544 = arith.constant 0 : index
    %389 = vector.load %arg14[%c2_543, %c0_544] : memref<5x80xf32, #tpu.memory_space<vmem>>, vector<1x80xf32>
    %c2_545 = arith.constant 2 : index
    %c0_546 = arith.constant 0 : index
    %c0_547 = arith.constant 0 : index
    %390 = vector.load %arg6[%c2_545, %c0_546, %c0_547] : memref<5x80x128xf32, #tpu.memory_space<vmem>>, vector<1x80x128xf32>
    %391 = vector.shape_cast %390 : vector<1x80x128xf32> to vector<80x128xf32>
    %cst_548 = arith.constant dense<0.000000e+00> : vector<1x128xf32>
    %392 = tpu.matmul %389, %391, %cst_548 {dimension_numbers = #tpu.dot_dimension_numbers<[1], [0], [0], [1], [0, 0, 1, 1], [], []>} : vector<1x80xf32>, vector<80x128xf32>, vector<1x128xf32> -> vector<1x128xf32>
    %393 = arith.addf %388, %392 : vector<1x128xf32>
    %c3_549 = arith.constant 3 : index
    %c0_550 = arith.constant 0 : index
    %394 = vector.load %arg14[%c3_549, %c0_550] : memref<5x80xf32, #tpu.memory_space<vmem>>, vector<1x80xf32>
    %c3_551 = arith.constant 3 : index
    %c0_552 = arith.constant 0 : index
    %c0_553 = arith.constant 0 : index
    %395 = vector.load %arg6[%c3_551, %c0_552, %c0_553] : memref<5x80x128xf32, #tpu.memory_space<vmem>>, vector<1x80x128xf32>
    %396 = vector.shape_cast %395 : vector<1x80x128xf32> to vector<80x128xf32>
    %cst_554 = arith.constant dense<0.000000e+00> : vector<1x128xf32>
    %397 = tpu.matmul %394, %396, %cst_554 {dimension_numbers = #tpu.dot_dimension_numbers<[1], [0], [0], [1], [0, 0, 1, 1], [], []>} : vector<1x80xf32>, vector<80x128xf32>, vector<1x128xf32> -> vector<1x128xf32>
    %398 = arith.addf %393, %397 : vector<1x128xf32>
    %c4_555 = arith.constant 4 : index
    %c0_556 = arith.constant 0 : index
    %399 = vector.load %arg14[%c4_555, %c0_556] : memref<5x80xf32, #tpu.memory_space<vmem>>, vector<1x80xf32>
    %c4_557 = arith.constant 4 : index
    %c0_558 = arith.constant 0 : index
    %c0_559 = arith.constant 0 : index
    %400 = vector.load %arg6[%c4_557, %c0_558, %c0_559] : memref<5x80x128xf32, #tpu.memory_space<vmem>>, vector<1x80x128xf32>
    %401 = vector.shape_cast %400 : vector<1x80x128xf32> to vector<80x128xf32>
    %cst_560 = arith.constant dense<0.000000e+00> : vector<1x128xf32>
    %402 = tpu.matmul %399, %401, %cst_560 {dimension_numbers = #tpu.dot_dimension_numbers<[1], [0], [0], [1], [0, 0, 1, 1], [], []>} : vector<1x80xf32>, vector<80x128xf32>, vector<1x128xf32> -> vector<1x128xf32>
    %403 = arith.addf %398, %402 : vector<1x128xf32>
    %cst_561 = arith.constant 0.000000e+00 : f32
    %404 = vector.broadcast %cst_561 : f32 to vector<1x128xf32>
    %405 = arith.maximumf %403, %404 : vector<1x128xf32>
    %c0_562 = arith.constant 0 : index
    %c0_563 = arith.constant 0 : index
    %406 = vector.load %arg8[%c0_562, %c0_563] : memref<128x128xf32, #tpu.memory_space<vmem>>, vector<128x128xf32>
    %cst_564 = arith.constant dense<0.000000e+00> : vector<1x128xf32>
    %407 = tpu.matmul %405, %406, %cst_564 {dimension_numbers = #tpu.dot_dimension_numbers<[1], [0], [0], [1], [0, 0, 1, 1], [], []>} : vector<1x128xf32>, vector<128x128xf32>, vector<1x128xf32> -> vector<1x128xf32>
    %c0_565 = arith.constant 0 : index
    %c0_566 = arith.constant 0 : index
    %408 = vector.load %arg9[%c0_565, %c0_566] : memref<1x128xf32, #tpu.memory_space<vmem>>, vector<1x128xf32>
    %409 = arith.addf %407, %408 : vector<1x128xf32>
    %cst_567 = arith.constant 0.000000e+00 : f32
    %410 = vector.broadcast %cst_567 : f32 to vector<1x128xf32>
    %411 = arith.maximumf %409, %410 : vector<1x128xf32>
    %c0_568 = arith.constant 0 : index
    %c0_569 = arith.constant 0 : index
    %412 = vector.load %arg10[%c0_568, %c0_569] : memref<128x128xf32, #tpu.memory_space<vmem>>, vector<128x128xf32>
    %cst_570 = arith.constant dense<0.000000e+00> : vector<1x128xf32>
    %413 = tpu.matmul %411, %412, %cst_570 {dimension_numbers = #tpu.dot_dimension_numbers<[1], [0], [0], [1], [0, 0, 1, 1], [], []>} : vector<1x128xf32>, vector<128x128xf32>, vector<1x128xf32> -> vector<1x128xf32>
    %c0_571 = arith.constant 0 : index
    %c0_572 = arith.constant 0 : index
    %414 = vector.load %arg11[%c0_571, %c0_572] : memref<1x128xf32, #tpu.memory_space<vmem>>, vector<1x128xf32>
    %415 = arith.addf %413, %414 : vector<1x128xf32>
    %c0_573 = arith.constant 0 : index
    %c0_574 = arith.constant 0 : index
    %c0_575 = arith.constant 0 : index
    %416 = vector.load %arg12[%c0_573, %c0_574, %c0_575] : memref<1x1x128xf32, #tpu.memory_space<vmem>>, vector<1x1x128xf32>
    %417 = vector.shape_cast %416 : vector<1x1x128xf32> to vector<1x128xf32>
    %418 = vector.shape_cast %415 : vector<1x128xf32> to vector<1x1x128xf32>
    tpu.vector_store %arg12[%c0_573, %c0_574, %c0_575], %418 {strides = array<i32>} : memref<1x1x128xf32, #tpu.memory_space<vmem>>, vector<1x1x128xf32>,
    return
  }
  func.func @transform_0(%arg0: i32) -> (i32, i32, i32, i32) {
    %c0_i32 = arith.constant 0 : i32
    %c0_i32_0 = arith.constant 0 : i32
    %c0_i32_1 = arith.constant 0 : i32
    %c0_i32_2 = arith.constant 0 : i32
    return %arg0, %c0_i32, %c0_i32_0, %c0_i32_1 : i32, i32, i32, i32
  }
  func.func @transform_1(%arg0: i32) -> (i32, i32, i32, i32) {
    %c0_i32 = arith.constant 0 : i32
    %c0_i32_0 = arith.constant 0 : i32
    %c0_i32_1 = arith.constant 0 : i32
    %c0_i32_2 = arith.constant 0 : i32
    %c0_i32_3 = arith.constant 0 : i32
    return %c0_i32, %c0_i32_0, %c0_i32_1, %c0_i32_2 : i32, i32, i32, i32
  }
  func.func @transform_2(%arg0: i32) -> (i32, i32) {
    %c0_i32 = arith.constant 0 : i32
    %c0_i32_0 = arith.constant 0 : i32
    %c0_i32_1 = arith.constant 0 : i32
    return %c0_i32, %c0_i32_0 : i32, i32
  }
  func.func @transform_3(%arg0: i32) -> (i32, i32, i32, i32) {
    %c0_i32 = arith.constant 0 : i32
    %c0_i32_0 = arith.constant 0 : i32
    %c0_i32_1 = arith.constant 0 : i32
    %c0_i32_2 = arith.constant 0 : i32
    %c0_i32_3 = arith.constant 0 : i32
    return %c0_i32, %c0_i32_0, %c0_i32_1, %c0_i32_2 : i32, i32, i32, i32
  }
  func.func @transform_4(%arg0: i32) -> (i32, i32) {
    %c0_i32 = arith.constant 0 : i32
    %c0_i32_0 = arith.constant 0 : i32
    %c0_i32_1 = arith.constant 0 : i32
    return %c0_i32, %c0_i32_0 : i32, i32
  }
  func.func @transform_5(%arg0: i32) -> (i32, i32, i32) {
    %c0_i32 = arith.constant 0 : i32
    %c0_i32_0 = arith.constant 0 : i32
    %c0_i32_1 = arith.constant 0 : i32
    %c0_i32_2 = arith.constant 0 : i32
    return %c0_i32, %c0_i32_0, %c0_i32_1 : i32, i32, i32
  }
  func.func @transform_6(%arg0: i32) -> (i32, i32) {
    %c0_i32 = arith.constant 0 : i32
    %c0_i32_0 = arith.constant 0 : i32
    %c0_i32_1 = arith.constant 0 : i32
    return %c0_i32, %c0_i32_0 : i32, i32
  }
  func.func @transform_7(%arg0: i32) -> (i32, i32) {
    %c0_i32 = arith.constant 0 : i32
    %c0_i32_0 = arith.constant 0 : i32
    %c0_i32_1 = arith.constant 0 : i32
    return %c0_i32, %c0_i32_0 : i32, i32
  }
  func.func @transform_8(%arg0: i32) -> (i32, i32) {
    %c0_i32 = arith.constant 0 : i32
    %c0_i32_0 = arith.constant 0 : i32
    %c0_i32_1 = arith.constant 0 : i32
    return %c0_i32, %c0_i32_0 : i32, i32
  }
  func.func @transform_9(%arg0: i32) -> (i32, i32) {
    %c0_i32 = arith.constant 0 : i32
    %c0_i32_0 = arith.constant 0 : i32
    %c0_i32_1 = arith.constant 0 : i32
    return %c0_i32, %c0_i32_0 : i32, i32
  }
  func.func @transform_10(%arg0: i32) -> (i32, i32) {
    %c0_i32 = arith.constant 0 : i32
    %c0_i32_0 = arith.constant 0 : i32
    %c0_i32_1 = arith.constant 0 : i32
    return %c0_i32, %c0_i32_0 : i32, i32
  }
  func.func @transform_11(%arg0: i32) -> (i32, i32, i32) {
    %c0_i32 = arith.constant 0 : i32
    %c0_i32_0 = arith.constant 0 : i32
    %c0_i32_1 = arith.constant 0 : i32
    return %arg0, %c0_i32, %c0_i32_0 : i32, i32, i32
  }
}

</mosaic_0001>

<bundles_post_ra>
// kernel: tile.13
= control target key start
LH: loop header
LB: loop body
LE: loop exit
PB: predicated region body
PF: predicated region fallthrough
CT: control target
= control target key end

     0   :  { %s40_s0 = inlined_call_operand.vmem [shape: f32[3], index: 0, kind: input, shape index: {}]   ;;  %s41_s1 = inlined_call_operand.vmem [shape: f32[32,3], index: 1, kind: output, shape index: {}]  }
   0x1   :  { %v4_v0 = vld [vmem:[%s40_s0] ss:$0 sm:$0xff] }
   0x2   :  { %5 = vst [vmem:[%s41_s1] sm:$0xff] %v4_v0  ;;  %12 = vst [vmem:[%s41_s1 + $0x8] sm:$0xff] %v4_v0 }
   0x3   :  { %13 = vst [vmem:[%s41_s1 + $0x10] sm:$0xff] %v4_v0  ;;  %14 = vst [vmem:[%s41_s1 + $0x18] sm:$0xff] %v4_v0 }

// kernel: mul.9
= control target key start
LH: loop header
LB: loop body
LE: loop exit
PB: predicated region body
PF: predicated region fallthrough
CT: control target
= control target key end

     0   :  { %s259_s10 = smov 93   ;;  %s260_s11 = smov 87   ;;  %vm3_vm0 = vcmask 23552   ;;  %vm9_vm1 = vcmask 786152   ;;  %vm15_vm2 = vcmask 761552   ;;  %vm21_vm3 = vcmask 736952   ;;  %s399_s0 = inlined_call_operand.vmem [shape: f32[32,3], index: 0, kind: input, shape index: {}]   ;;  %s400_s1 = inlined_call_operand.vmem [shape: f32[96], index: 1, kind: output, shape index: {}]  }
   0x1   :  { %v197_v0 = vld [vmem:[%s399_s0 + $0x1f] sm:$0x1]   ;;  %v199_v1 = vld [vmem:[%s399_s0 + $0x1d] sm:$0x1]   ;;  %v198_v2 = vld [vmem:[%s399_s0 + $0x1e] sm:$0x1]  }
   0x2   :  { %7 = vrot.lane.b32.xlu0 %v197_v0, %s259_s10  ;;  %19 = vrot.lane.b32.xlu1 %v199_v1, %s260_s11  ;;  %v200_v3 = vld [vmem:[%s399_s0 + $0x1c] sm:$0x1]   ;;  %s261_s16 = smov 90   ;;  %s262_s17 = smov 84   ;;  %v201_v4 = vld [vmem:[%s399_s0 + $0x1b] sm:$0x1]  }
   0x3   :  { %v202_v5 = vld [vmem:[%s399_s0 + $0x1a] sm:$0x1]   ;;  %s263_s22 = smov 81   ;;  %s264_s23 = smov 78   ;;  %v203_v6 = vld [vmem:[%s399_s0 + $0x19] sm:$0x1]  }
   0x4   :  { %v204_v7 = vld [vmem:[%s399_s0 + $0x18] sm:$0x1]   ;;  %s265_s28 = smov 75   ;;  %s266_s29 = smov 72   ;;  %v205_v8 = vld [vmem:[%s399_s0 + $0x17] sm:$0x1]  }
   0x5   :  { %v206_v9 = vld [vmem:[%s399_s0 + $0x16] sm:$0x1]   ;;  %v2_v10 = vld [vmem:[%s399_s0] sm:$0x1]   ;;  %s267_s7 = smov 69   ;;  %s268_s8 = smov 66  }
   0x6   :  { %13 = vrot.lane.b32.xlu0 %v198_v2, %s261_s16  ;;  %25 = vrot.lane.b32.xlu1 %v200_v3, %s262_s17  ;;  %4 = vst.msk [vmem:[#allocation0] sm:$0x1] %vm3_vm0, %v2_v10   ;;  %v207_v11 = vld [vmem:[%s399_s0 + $0x15] sm:$0x1]   ;;  %v208_v12 = vld [vmem:[%s399_s0 + $0x14] sm:$0x1]  }
   0x7   :  { %s269_s13 = smov 63   ;;  %s270_s14 = smov 60   ;;  %v209_v13 = vld [vmem:[%s399_s0 + $0x13] sm:$0x1]   ;;  %v210_v14 = vld [vmem:[%s399_s0 + $0x12] sm:$0x1]  }
   0x8   :  { %s271_s19 = smov 57   ;;  %s272_s20 = smov 54   ;;  %v211_v15 = vld [vmem:[%s399_s0 + $0x11] sm:$0x1]   ;;  %v212_v16 = vld [vmem:[%s399_s0 + $0x10] sm:$0x1]  }
   0x9   :  { %s273_s25 = smov 51   ;;  %s274_s26 = smov 48   ;;  %v213_v17 = vld [vmem:[%s399_s0 + $0xf] sm:$0x1]   ;;  %v214_v18 = vld [vmem:[%s399_s0 + $0xe] sm:$0x1]  }
   0xa   :  { %31 = vrot.lane.b32.xlu0 %v201_v4, %s263_s22  ;;  %37 = vrot.lane.b32.xlu1 %v202_v5, %s264_s23  ;;  %s275_s2 = smov 45   ;;  %s276_s3 = smov 42   ;;  %v215_v19 = vld [vmem:[%s399_s0 + $0xd] sm:$0x1]   ;;  %v216_v20 = vld [vmem:[%s399_s0 + $0xc] sm:$0x1]  }
   0xb   :  { %s278_s9 = smov 36   ;;  %v217_v21 = vld [vmem:[%s399_s0 + $0xb] sm:$0x1]   ;;  %v218_v22 = vld [vmem:[%s399_s0 + $0xa] sm:$0x1]   ;;  %s280_s15 = smov 30  }
   0xc   :  { %v219_v23 = vld [vmem:[%s399_s0 + $0x9] sm:$0x1]   ;;  %v220_v24 = vld [vmem:[%s399_s0 + $0x8] sm:$0x1]   ;;  %s282_s21 = smov 24   ;;  %s284_s27 = smov 18  }
   0xd   :  { %v221_v25 = vld [vmem:[%s399_s0 + $0x7] sm:$0x1]   ;;  %v222_v26 = vld [vmem:[%s399_s0 + $0x6] sm:$0x1]   ;;  %v223_v27 = vld [vmem:[%s399_s0 + $0x5] sm:$0x1]  }
   0xe   :  { %43 = vrot.lane.b32.xlu0 %v203_v6, %s265_s28  ;;  %49 = vrot.lane.b32.xlu1 %v204_v7, %s266_s29  ;;  %v224_v28 = vld [vmem:[%s399_s0 + $0x4] sm:$0x1]   ;;  %s286_s4 = smov 12   ;;  %v225_v29 = vld [vmem:[%s399_s0 + $0x3] sm:$0x1]   ;;  %s288_s10 = smov 6  }
   0xf   :  { %v226_v30 = vld [vmem:[%s399_s0 + $0x2] sm:$0x1]   ;;  %v227_v31 = vld [vmem:[%s399_s0 + $0x1] sm:$0x1]   ;;  %s289_s0 = smov 3   ;;  %vm27_vm4 = vcmask 712352  }
  0x10   :  { %vm33_vm5 = vcmask 687752   ;;  %vm39_vm6 = vcmask 663152   ;;  %vm45_vm7 = vcmask 638552   ;;  %vm51_vm8 = vcmask 613952  }
  0x11   :  { %vm57_vm9 = vcmask 589352   ;;  %vm63_vm10 = vcmask 564752   ;;  %vm69_vm11 = vcmask 540152   ;;  %vm75_vm12 = vcmask 515552  }
  0x12   :  { %55 = vrot.lane.b32.xlu0 %v205_v8, %s267_s7  ;;  %61 = vrot.lane.b32.xlu1 %v206_v9, %s268_s8  ;;  %s277_s8 = smov 39   ;;  %vm81_vm13 = vcmask 490952   ;;  %vm87_vm14 = vcmask 466352   ;;  %vm93_vm15 = vcmask 441752   ;;  %vm99_vm0 = vcmask 417152  }
  0x16   :  { %67 = vrot.lane.b32.xlu0 %v207_v11, %s269_s13  ;;  %73 = vrot.lane.b32.xlu1 %v208_v12, %s270_s14  ;;  %s279_s14 = smov 33  }
  0x1a   :  { %79 = vrot.lane.b32.xlu0 %v209_v13, %s271_s19  ;;  %85 = vrot.lane.b32.xlu1 %v210_v14, %s272_s20  ;;  %s281_s20 = smov 27  }
  0x1e   :  { %91 = vrot.lane.b32.xlu0 %v211_v15, %s273_s25  ;;  %97 = vrot.lane.b32.xlu1 %v212_v16, %s274_s26  ;;  %s283_s26 = smov 21  }
  0x22   :  { %103 = vrot.lane.b32.xlu0 %v213_v17, %s275_s2  ;;  %109 = vrot.lane.b32.xlu1 %v214_v18, %s276_s3  ;;  %s285_s3 = smov 15  }
  0x26   :  { %115 = vrot.lane.b32.xlu0 %v215_v19, %s277_s8  ;;  %121 = vrot.lane.b32.xlu1 %v216_v20, %s278_s9  ;;  %s287_s9 = smov 9  }
  0x2a   :  { %127 = vrot.lane.b32.xlu0 %v217_v21, %s279_s14  ;;  %133 = vrot.lane.b32.xlu1 %v218_v22, %s280_s15 }
  0x2e   :  { %139 = vrot.lane.b32.xlu0 %v219_v23, %s281_s20  ;;  %145 = vrot.lane.b32.xlu1 %v220_v24, %s282_s21 }
  0x32   :  { %151 = vrot.lane.b32.xlu0 %v221_v25, %s283_s26  ;;  %157 = vrot.lane.b32.xlu1 %v222_v26, %s284_s27 }
  0x36   :  { %163 = vrot.lane.b32.xlu0 %v223_v27, %s285_s3  ;;  %169 = vrot.lane.b32.xlu1 %v224_v28, %s286_s4 }
  0x3a   :  { %175 = vrot.lane.b32.xlu0 %v225_v29, %s287_s9  ;;  %181 = vrot.lane.b32.xlu1 %v226_v30, %s288_s10 }
  0x3e   :  { %187 = vrot.lane.b32.xlu0 %v227_v31, %s289_s0 }
  0x74   :  { %v8_v32 = vpop.permute.xlu0 %7   ;;  %v20_v33 = vpop.permute.xlu1 %19  }
  0x75   :  { %10 = vst.msk [vmem:[#allocation0] sm:$0x1] %vm9_vm1, %v8_v32   ;;  %vm105_vm1 = vcmask 392552  }
  0x78   :  { %v14_v34 = vpop.permute.xlu0 %13   ;;  %v26_v35 = vpop.permute.xlu1 %25  }
  0x79   :  { %16 = vst.msk [vmem:[#allocation0] sm:$0x1] %vm15_vm2, %v14_v34   ;;  %vm111_vm2 = vcmask 367952  }
  0x7a   :  { %22 = vst.msk [vmem:[#allocation0] sm:$0x1] %vm21_vm3, %v20_v33   ;;  %vm117_vm3 = vcmask 343352  }
  0x7b   :  { %28 = vst.msk [vmem:[#allocation0] sm:$0x1] %vm27_vm4, %v26_v35   ;;  %vm123_vm4 = vcmask 318752  }
  0x7c   :  { %v32_v36 = vpop.permute.xlu0 %31   ;;  %v38_v37 = vpop.permute.xlu1 %37  }
  0x7d   :  { %34 = vst.msk [vmem:[#allocation0] sm:$0x1] %vm33_vm5, %v32_v36   ;;  %vm129_vm5 = vcmask 294152  }
  0x7e   :  { %40 = vst.msk [vmem:[#allocation0] sm:$0x1] %vm39_vm6, %v38_v37   ;;  %vm135_vm6 = vcmask 269552  }
  0x80   :  { %v44_v38 = vpop.permute.xlu0 %43   ;;  %v50_v39 = vpop.permute.xlu1 %49  }
  0x81   :  { %46 = vst.msk [vmem:[#allocation0] sm:$0x1] %vm45_vm7, %v44_v38   ;;  %vm141_vm7 = vcmask 244952  }
  0x82   :  { %52 = vst.msk [vmem:[#allocation0] sm:$0x1] %vm51_vm8, %v50_v39   ;;  %vm147_vm8 = vcmask 220352  }
  0x84   :  { %v56_v40 = vpop.permute.xlu0 %55   ;;  %v62_v41 = vpop.permute.xlu1 %61  }
  0x85   :  { %58 = vst.msk [vmem:[#allocation0] sm:$0x1] %vm57_vm9, %v56_v40   ;;  %vm153_vm9 = vcmask 195752  }
  0x86   :  { %64 = vst.msk [vmem:[#allocation0] sm:$0x1] %vm63_vm10, %v62_v41   ;;  %vm159_vm10 = vcmask 171152  }
  0x88   :  { %v68_v42 = vpop.permute.xlu0 %67   ;;  %v74_v43 = vpop.permute.xlu1 %73  }
  0x89   :  { %70 = vst.msk [vmem:[#allocation0] sm:$0x1] %vm69_vm11, %v68_v42   ;;  %vm165_vm11 = vcmask 146552  }
  0x8a   :  { %76 = vst.msk [vmem:[#allocation0] sm:$0x1] %vm75_vm12, %v74_v43   ;;  %vm171_vm12 = vcmask 121952  }
  0x8c   :  { %v80_v44 = vpop.permute.xlu0 %79   ;;  %v86_v45 = vpop.permute.xlu1 %85  }
  0x8d   :  { %82 = vst.msk [vmem:[#allocation0] sm:$0x1] %vm81_vm13, %v80_v44   ;;  %vm177_vm13 = vcmask 97352  }
  0x8e   :  { %88 = vst.msk [vmem:[#allocation0] sm:$0x1] %vm87_vm14, %v86_v45   ;;  %vm183_vm14 = vcmask 72752  }
  0x90   :  { %v92_v46 = vpop.permute.xlu0 %91   ;;  %v98_v47 = vpop.permute.xlu1 %97  }
  0x91   :  { %94 = vst.msk [vmem:[#allocation0] sm:$0x1] %vm93_vm15, %v92_v46   ;;  %vm189_vm15 = vcmask 48152  }
  0x92   :  { %100 = vst.msk [vmem:[#allocation0] sm:$0x1] %vm99_vm0, %v98_v47  }
  0x94   :  { %v104_v48 = vpop.permute.xlu0 %103   ;;  %v110_v49 = vpop.permute.xlu1 %109  }
  0x95   :  { %106 = vst.msk [vmem:[#allocation0] sm:$0x1] %vm105_vm1, %v104_v48  }
  0x96   :  { %112 = vst.msk [vmem:[#allocation0] sm:$0x1] %vm111_vm2, %v110_v49  }
  0x98   :  { %v116_v50 = vpop.permute.xlu0 %115   ;;  %v122_v51 = vpop.permute.xlu1 %121  }
  0x99   :  { %118 = vst.msk [vmem:[#allocation0] sm:$0x1] %vm117_vm3, %v116_v50  }
  0x9a   :  { %124 = vst.msk [vmem:[#allocation0] sm:$0x1] %vm123_vm4, %v122_v51  }
  0x9c   :  { %v128_v52 = vpop.permute.xlu0 %127   ;;  %v134_v53 = vpop.permute.xlu1 %133  }
  0x9d   :  { %130 = vst.msk [vmem:[#allocation0] sm:$0x1] %vm129_vm5, %v128_v52  }
  0x9e   :  { %136 = vst.msk [vmem:[#allocation0] sm:$0x1] %vm135_vm6, %v134_v53  }
  0xa0   :  { %v140_v54 = vpop.permute.xlu0 %139   ;;  %v146_v55 = vpop.permute.xlu1 %145  }
  0xa1   :  { %142 = vst.msk [vmem:[#allocation0] sm:$0x1] %vm141_vm7, %v140_v54  }
  0xa2   :  { %148 = vst.msk [vmem:[#allocation0] sm:$0x1] %vm147_vm8, %v146_v55  }
  0xa4   :  { %v152_v56 = vpop.permute.xlu0 %151   ;;  %v158_v57 = vpop.permute.xlu1 %157  }
  0xa5   :  { %154 = vst.msk [vmem:[#allocation0] sm:$0x1] %vm153_vm9, %v152_v56  }
  0xa6   :  { %160 = vst.msk [vmem:[#allocation0] sm:$0x1] %vm159_vm10, %v158_v57  }
  0xa8   :  { %v164_v58 = vpop.permute.xlu0 %163   ;;  %v170_v59 = vpop.permute.xlu1 %169  }
  0xa9   :  { %166 = vst.msk [vmem:[#allocation0] sm:$0x1] %vm165_vm11, %v164_v58  }
  0xaa   :  { %172 = vst.msk [vmem:[#allocation0] sm:$0x1] %vm171_vm12, %v170_v59  }
  0xac   :  { %v176_v60 = vpop.permute.xlu0 %175   ;;  %v182_v61 = vpop.permute.xlu1 %181  }
  0xad   :  { %178 = vst.msk [vmem:[#allocation0] sm:$0x1] %vm177_vm13, %v176_v60  }
  0xae   :  { %184 = vst.msk [vmem:[#allocation0] sm:$0x1] %vm183_vm14, %v182_v61  }
  0xb0   :  { %v188_v62 = vpop.permute.xlu0 %187  }
  0xb1   :  { %190 = vst.msk [vmem:[#allocation0] sm:$0x1] %vm189_vm15, %v188_v62  }
  0xb8   :  { %v194_v63 = vld [vmem:[#allocation0] sm:$0x1] }
  0xb9   :  { %196 = vst [vmem:[%s400_s1] sm:$0x1] %v194_v63 }

// kernel: tile.18
= control target key start
LH: loop header
LB: loop body
LE: loop exit
PB: predicated region body
PF: predicated region fallthrough
CT: control target
= control target key end

     0   :  { %s28_s0 = inlined_call_operand.vmem [shape: f32[6], index: 0, kind: input, shape index: {}]   ;;  %s29_s1 = inlined_call_operand.vmem [shape: f32[14,6], index: 1, kind: output, shape index: {}]  }
   0x1   :  { %v4_v0 = vld [vmem:[%s28_s0] ss:$0 sm:$0xff] }
   0x2   :  { %5 = vst [vmem:[%s29_s1] sm:$0xff] %v4_v0  ;;  %8 = vst [vmem:[%s29_s1 + $0x8] sm:$0xff] %v4_v0 }

// kernel: tile.19
= control target key start
LH: loop header
LB: loop body
LE: loop exit
PB: predicated region body
PF: predicated region fallthrough
CT: control target
= control target key end

     0   :  { %s115_s10 = smov 78   ;;  %s116_s11 = smov 66   ;;  %vm3_vm0 = vcmask 48128   ;;  %vm9_vm1 = vcmask 687728   ;;  %vm15_vm2 = vcmask 638528   ;;  %vm21_vm3 = vcmask 589328   ;;  %s183_s0 = inlined_call_operand.vmem [shape: f32[14,6], index: 0, kind: input, shape index: {}]   ;;  %s184_s1 = inlined_call_operand.vmem [shape: f32[1,84], index: 1, kind: output, shape index: {}]  }
   0x1   :  { %v89_v0 = vld [vmem:[%s183_s0 + $0xd] sm:$0x1]   ;;  %v91_v1 = vld [vmem:[%s183_s0 + $0xb] sm:$0x1]   ;;  %v90_v2 = vld [vmem:[%s183_s0 + $0xc] sm:$0x1]  }
   0x2   :  { %7 = vrot.lane.b32.xlu0 %v89_v0, %s115_s10  ;;  %19 = vrot.lane.b32.xlu1 %v91_v1, %s116_s11  ;;  %v92_v3 = vld [vmem:[%s183_s0 + $0xa] sm:$0x1]   ;;  %s117_s16 = smov 72   ;;  %s118_s17 = smov 60   ;;  %v93_v4 = vld [vmem:[%s183_s0 + $0x9] sm:$0x1]  }
   0x3   :  { %v94_v5 = vld [vmem:[%s183_s0 + $0x8] sm:$0x1]   ;;  %v2_v6 = vld [vmem:[%s183_s0] sm:$0x1]   ;;  %s119_s24 = smov 54   ;;  %s120_s25 = smov 48  }
   0x4   :  { %4 = vst.msk [vmem:[#allocation0] sm:$0x1] %vm3_vm0, %v2_v6   ;;  %v95_v7 = vld [vmem:[%s183_s0 + $0x7] sm:$0x1]   ;;  %v96_v8 = vld [vmem:[%s183_s0 + $0x6] sm:$0x1]  }
   0x5   :  { %s121_s30 = smov 42   ;;  %s122_s2 = smov 36   ;;  %v97_v9 = vld [vmem:[%s183_s0 + $0x5] sm:$0x1]   ;;  %v98_v10 = vld [vmem:[%s183_s0 + $0x4] sm:$0x1]  }
   0x6   :  { %13 = vrot.lane.b32.xlu0 %v90_v2, %s117_s16  ;;  %25 = vrot.lane.b32.xlu1 %v92_v3, %s118_s17  ;;  %s123_s7 = smov 30   ;;  %s124_s8 = smov 24   ;;  %v99_v11 = vld [vmem:[%s183_s0 + $0x3] sm:$0x1]   ;;  %v100_v12 = vld [vmem:[%s183_s0 + $0x2] sm:$0x1]  }
   0x7   :  { %s125_s13 = smov 18   ;;  %s126_s14 = smov 12   ;;  %v101_v13 = vld [vmem:[%s183_s0 + $0x1] sm:$0x1]   ;;  %vm27_vm4 = vcmask 540128   ;;  %vm33_vm5 = vcmask 490928  }
   0x8   :  { %s127_s0 = smov 6   ;;  %vm39_vm6 = vcmask 441728   ;;  %vm45_vm7 = vcmask 392528   ;;  %vm51_vm8 = vcmask 343328   ;;  %vm57_vm9 = vcmask 294128  }
   0x9   :  { %vm63_vm10 = vcmask 244928   ;;  %vm69_vm11 = vcmask 195728   ;;  %vm75_vm12 = vcmask 146528   ;;  %vm81_vm13 = vcmask 97328  }
   0xa   :  { %31 = vrot.lane.b32.xlu0 %v93_v4, %s119_s24  ;;  %37 = vrot.lane.b32.xlu1 %v94_v5, %s120_s25 }
   0xe   :  { %43 = vrot.lane.b32.xlu0 %v95_v7, %s121_s30  ;;  %49 = vrot.lane.b32.xlu1 %v96_v8, %s122_s2 }
  0x12   :  { %55 = vrot.lane.b32.xlu0 %v97_v9, %s123_s7  ;;  %61 = vrot.lane.b32.xlu1 %v98_v10, %s124_s8 }
  0x16   :  { %67 = vrot.lane.b32.xlu0 %v99_v11, %s125_s13  ;;  %73 = vrot.lane.b32.xlu1 %v100_v12, %s126_s14 }
  0x1a   :  { %79 = vrot.lane.b32.xlu0 %v101_v13, %s127_s0 }
  0x74   :  { %v8_v14 = vpop.permute.xlu0 %7   ;;  %v20_v15 = vpop.permute.xlu1 %19  }
  0x75   :  { %10 = vst.msk [vmem:[#allocation0] sm:$0x1] %vm9_vm1, %v8_v14  }
  0x78   :  { %v14_v16 = vpop.permute.xlu0 %13   ;;  %v26_v17 = vpop.permute.xlu1 %25  }
  0x79   :  { %16 = vst.msk [vmem:[#allocation0] sm:$0x1] %vm15_vm2, %v14_v16  }
  0x7a   :  { %22 = vst.msk [vmem:[#allocation0] sm:$0x1] %vm21_vm3, %v20_v15  }
  0x7b   :  { %28 = vst.msk [vmem:[#allocation0] sm:$0x1] %vm27_vm4, %v26_v17  }
  0x7c   :  { %v32_v18 = vpop.permute.xlu0 %31   ;;  %v38_v19 = vpop.permute.xlu1 %37  }
  0x7d   :  { %34 = vst.msk [vmem:[#allocation0] sm:$0x1] %vm33_vm5, %v32_v18  }
  0x7e   :  { %40 = vst.msk [vmem:[#allocation0] sm:$0x1] %vm39_vm6, %v38_v19  }
  0x80   :  { %v44_v20 = vpop.permute.xlu0 %43   ;;  %v50_v21 = vpop.permute.xlu1 %49  }
  0x81   :  { %46 = vst.msk [vmem:[#allocation0] sm:$0x1] %vm45_vm7, %v44_v20  }
  0x82   :  { %52 = vst.msk [vmem:[#allocation0] sm:$0x1] %vm51_vm8, %v50_v21  }
  0x84   :  { %v56_v22 = vpop.permute.xlu0 %55   ;;  %v62_v23 = vpop.permute.xlu1 %61  }
  0x85   :  { %58 = vst.msk [vmem:[#allocation0] sm:$0x1] %vm57_vm9, %v56_v22  }
  0x86   :  { %64 = vst.msk [vmem:[#allocation0] sm:$0x1] %vm63_vm10, %v62_v23  }
  0x88   :  { %v68_v24 = vpop.permute.xlu0 %67   ;;  %v74_v25 = vpop.permute.xlu1 %73  }
  0x89   :  { %70 = vst.msk [vmem:[#allocation0] sm:$0x1] %vm69_vm11, %v68_v24  }
  0x8a   :  { %76 = vst.msk [vmem:[#allocation0] sm:$0x1] %vm75_vm12, %v74_v25  }
  0x8c   :  { %v80_v26 = vpop.permute.xlu0 %79  }
  0x8d   :  { %82 = vst.msk [vmem:[#allocation0] sm:$0x1] %vm81_vm13, %v80_v26  }
  0x94   :  { %v86_v27 = vld [vmem:[#allocation0] sm:$0x1] }
  0x95   :  { %88 = vst [vmem:[%s184_s1] sm:$0x1] %v86_v27 }

// kernel: lenet_forward.1
= control target key start
LH: loop header
LB: loop body
LE: loop exit
PB: predicated region body
PF: predicated region fallthrough
CT: control target
= control target key end

     0   :  { %16 = vsyncpa [#allocation5], 0  ;;  %s12671_s0 = inlined_call_operand.vmem [shape: f32[2,4,8,96], index: 0, kind: input, shape index: {}]   ;;  %s12672_s1 = inlined_call_operand.vmem [shape: f32[5,2,96,84], index: 1, kind: input, shape index: {}]   ;;  %s12673_s2 = inlined_call_operand.vmem [shape: f32[1,84], index: 2, kind: input, shape index: {}]   ;;  %s12674_s3 = inlined_call_operand.vmem [shape: f32[5,2,84,80], index: 3, kind: input, shape index: {}]   ;;  %s12675_s4 = inlined_call_operand.vmem [shape: f32[1,80], index: 4, kind: input, shape index: {}]   ;;  %s12676_s5 = inlined_call_operand.vmem [shape: f32[5,80,128], index: 5, kind: input, shape index: {}]   ;;  %s12677_s6 = inlined_call_operand.vmem [shape: f32[1,128], index: 6, kind: input, shape index: {}]   ;;  %s12678_s7 = inlined_call_operand.vmem [shape: f32[128,128], index: 7, kind: input, shape index: {}]   ;;  %s12679_s8 = inlined_call_operand.vmem [shape: f32[1,128], index: 8, kind: input, shape index: {}]   ;;  %s12680_s9 = inlined_call_operand.vmem [shape: f32[128,128], index: 9, kind: input, shape index: {}]   ;;  %s12681_s10 = inlined_call_operand.vmem [shape: f32[1,128], index: 10, kind: input, shape index: {}]   ;;  %s12682_s11 = inlined_call_operand.hbm [shape: f32[2,1,128], index: 11, kind: output, shape index: {}]  }
   0x1   :  { %18 = vsyncpa [#allocation5 + $0x1], 0  ;;  %s10299_s17 = smov 0   ;;  %s10301_s18 = smov 0  }
   0x2   :  { %s10303_s19 = smov 0   ;;  %s10305_s20 = smov 0  }
   0x3 LB: > { %12706 = sst [smem:[#allocation7_spill]] %s10229_s19  ;;  %s10320_s21 = sadd.s32 4294967295, %s10233_s20   ;;  %s10233_s20 = sphi %s10305_s20, %s12745_s20   ;;  %s10229_s19 = sphi %s10303_s19, %s12742_s19   ;;  %s10225_s18 = sphi %s10301_s18, %s12744_s18   ;;  %s10221_s17 = sphi %s10299_s17, %s12743_s17  }
   0x4   : > { %s5807_s22 = sadd.s32 4294967294, %s10233_s20   ;;  %s10324_s23 = sadd.s32 1, %s10233_s20  }
   0x5   : > { %s267_s24 = sadd.s32 1, %s10229_s19  ;;  %s264_s25 = ssub.s32 %s10233_s20, %s10324_s23 }
   0x6   : > { %p277_p0 = scmp.ne.s32.totalorder %s10229_s19, %s10225_s18  ;;  %p265_p1 = scmp.eq.s32.totalorder %s264_s25, 0 }
   0x7   : > { %p278_p2 = scmp.eq.s32.totalorder %s10320_s21, 1  ;;  %p283_p3 = scmp.ne.s32.totalorder %s10225_s18, %s10221_s17 }
   0x8   : > { %p284_p4 = scmp.eq.s32.totalorder %s5807_s22, 1  ;;  %p5810_p7 = scmp.ge.s32.totalorder %s10233_s20, 1 }
   0x9   : > { %s10335_s26 = scalar_select %p265_p1, %s10229_s19, %s267_s24  }
   0xa   : > { %p10337_p5 = por %p278_p2, %p277_p0  ;;  %p10341_p6 = por %p284_p4, %p283_p3 }
   0xb   : > { %12707 = sst [smem:[#allocation8_spill]] %s10335_s26  ;;  %p340_p8 = scmp.lt.s32.totalorder %s10233_s20, 3 }
   0xd   : > { %p341_p9 = pnand %p5810_p7, %p340_p8 }
   0xf   : > { %344 = sbr.rel (%p341_p9) target bundleno = 1886 (0x75e), region = 64 }
  0x16   : > { %v5814_v0 = vld [vmem:[%s12672_s1 + $0xc0] sm:$0xff]  ;;  %v5815_v1 = vld [vmem:[%s12672_s1 + $0xc8] sm:$0xff]  ;;  %v10235_v3 = vmov 0.0|0.0   ;;  %v5816_v6 = vld [vmem:[%s12672_s1 + $0xd0] sm:$0xff]  ;;  %vm10236_vm0 = vmmov 0   ;;  %v12686_v11 = vmov 0.0  }
  0x17   : > { %v5881_v2 = vld [vmem:[%s12672_s1 + $0x120] sm:$0xff]  ;;  %8882 = vmatprep.subr.bf16.mxu0 %v10235_v3  ;;  %8972 = vmatprep.subr.bf16.mxu1 %v10235_v3  ;;  %v10358_v4 = vpack.c.bf16 %v5815_v1, %v5814_v0  ;;  %v5882_v5 = vld [vmem:[%s12672_s1 + $0x128] sm:$0xff]  ;;  %v5817_v7 = vld [vmem:[%s12672_s1 + $0xd8] sm:$0xff]  ;;  %p379_p10 = scmp.lt.s32.totalorder %s10320_s21, 1  ;;  %vm413_vm1 = vcmask 785408   ;;  %vm1965_vm2 = vcmask 686080  }
  0x18   : > { %v10369_v8 = vpack.c.bf16 %v5882_v5, %v5881_v2  ;;  %v5883_v9 = vld [vmem:[%s12672_s1 + $0x130] sm:$0xff]  ;;  %v5884_v10 = vld [vmem:[%s12672_s1 + $0x138] sm:$0xff]  ;;  %7141 = vmatprep.mubr.msk.f32.mxu0 %vm10236_vm0, %v12686_v11  ;;  %7276 = vmatprep.mubr.msk.f32.mxu1 %vm10236_vm0, %v12686_v11  ;;  %v10382_v12 = vpack.c.bf16 %v5817_v7, %v5816_v6  ;;  %v5818_v14 = vld [vmem:[%s12672_s1 + $0xe0] sm:$0xff]  ;;  %vm3560_vm3 = vcmask 1043456   ;;  %vm3556_vm4 = vcmask 687104   ;;  %s377_s14 = sand.u32 1, %s10225_s18  }
  0x19   : > { %8884 = vmatpush3.bf16.msra.mxu0 %v10358_v4  ;;  %v10386_v13 = vpack.c.bf16 %v5884_v10, %v5883_v9  ;;  %v5819_v15 = vld [vmem:[%s12672_s1 + $0xe8] sm:$0xff]  ;;  %v5885_v16 = vld [vmem:[%s12672_s1 + $0x140] sm:$0xff]  ;;  %v5820_v20 = vld [vmem:[%s12672_s1 + $0xf0] sm:$0xff]  ;;  %s380_s29 = scalar_select %p379_p10, %s10320_s21, 1  ;;  %vm5129_vm5 = vcmask 651264   ;;  %vm5143_vm6 = vcmask 654336  }
  0x1a   : > { %8974 = vmatpush3.bf16.msra.mxu1 %v10369_v8  ;;  %8885 = vmatprep.subr.bf16.mxu0 %v10235_v3  ;;  %v5886_v17 = vld [vmem:[%s12672_s1 + $0x148] sm:$0xff]  ;;  %v10402_v18 = vpack.c.bf16 %v5819_v15, %v5818_v14  ;;  %v5821_v21 = vld [vmem:[%s12672_s1 + $0xf8] sm:$0xff]  ;;  %v5887_v22 = vld [vmem:[%s12672_s1 + $0x150] sm:$0xff]  ;;  %s6264_s16 = sshll.u32 %s10320_s21, 4  ;;  %s378_s22 = scalar_lea.vmem [#allocation4], %s377_s14 }
  0x1b   : > { %8975 = vmatprep.subr.bf16.mxu1 %v10235_v3  ;;  %v10406_v19 = vpack.c.bf16 %v5886_v17, %v5885_v16  ;;  %v5888_v23 = vld [vmem:[%s12672_s1 + $0x158] sm:$0xff]  ;;  %v10423_v24 = vpack.c.bf16 %v5821_v21, %v5820_v20  ;;  %v5822_v26 = vld [vmem:[%s12672_s1 + $0x100] sm:$0xff]  ;;  %v5823_v27 = vld [vmem:[%s12672_s1 + $0x108] sm:$0xff]  ;;  %s6267_s25 = sshll.u32 %s380_s29, 5  ;;  %s5752_s24 = sshll.u32 %s378_s22, 4  ;;  %s12631_s24 = int_to_ptr.vmem [resolvable:$true] %s5752_s24 }
  0x1c   : > { %v10427_v25 = vpack.c.bf16 %v5888_v23, %v5887_v22  ;;  %v5889_v28 = vld [vmem:[%s12672_s1 + $0x160] sm:$0xff]  ;;  %v5890_v29 = vld [vmem:[%s12672_s1 + $0x168] sm:$0xff]  ;;  %v10444_v30 = vpack.c.bf16 %v5823_v27, %v5822_v26  ;;  %v5824_v32 = vld [vmem:[%s12672_s1 + $0x110] sm:$0xff]  ;;  %s10473_s13 = scalar_lea.vmem %s12671_s0, %s6267_s25  ;;  %s12629_s30 = scalar_lea.hbm %s12682_s11, %s6264_s16 }
  0x1d   : > { %8887 = vmatpush3.bf16.msra.mxu0 %v10382_v12  ;;  %v10448_v31 = vpack.c.bf16 %v5890_v29, %v5889_v28  ;;  %v5825_v33 = vld [vmem:[%s12672_s1 + $0x118] sm:$0xff]  ;;  %v5891_v34 = vld [vmem:[%s12672_s1 + $0x170] sm:$0xff]  ;;  %v386_v38 = vld [vmem:[%s12672_s1] sm:$0xff]  ;;  %s5740_s12 = scalar_lea.sflag [#allocation5], %s377_s14  ;;  %s10171_s19 = scalar_lea.vmem %s12631_s24, 16 }
  0x1e   : > { %8977 = vmatpush3.bf16.msra.mxu1 %v10386_v13  ;;  %8888 = vmatprep.subr.bf16.mxu0 %v10235_v3  ;;  %v5892_v35 = vld [vmem:[%s12672_s1 + $0x178] sm:$0xff]  ;;  %v10464_v36 = vpack.c.bf16 %v5825_v33, %v5824_v32  ;;  %v387_v39 = vld [vmem:[%s12672_s1 + $0x8] sm:$0xff]  ;;  %v5869_v40 = vld [vmem:[%s12672_s1 + $0x60] sm:$0xff]  ;;  %p10172_p11 = scmp.ne.s32.totalorder %s12631_s24, %s10171_s19  ;;  %s10238_s21 = smov [#allocation4]  }
  0x1f   : > { %8978 = vmatprep.subr.bf16.mxu1 %v10235_v3  ;;  %v10468_v37 = vpack.c.bf16 %v5892_v35, %v5891_v34  ;;  %v5870_v41 = vld [vmem:[%s12672_s1 + $0x68] sm:$0xff]  ;;  %v10492_v43 = vpack.c.bf16 %v387_v39, %v386_v38  ;;  %v388_v45 = vld [vmem:[%s12672_s1 + $0x10] sm:$0xff]  ;;  %v389_v46 = vld [vmem:[%s12672_s1 + $0x18] sm:$0xff]  ;;  %s10175_s26 = sshll.u32 %s10238_s21, 4  ;;  %s10176_s26 = int_to_ptr.vmem [resolvable:$false] %s10175_s26 }
  0x20   : > { %v10490_v42 = vld [vmem:[%s10473_s13 + $0x8] sm:$0x7f]  ;;  %v10496_v44 = vpack.c.bf16 %v5870_v41, %v5869_v40  ;;  %v5871_v47 = vld [vmem:[%s12672_s1 + $0x70] sm:$0xff]  ;;  %v5872_v48 = vld [vmem:[%s12672_s1 + $0x78] sm:$0xff]  ;;  %v10516_v49 = vpack.c.bf16 %v389_v46, %v388_v45  ;;  %p10173_p12 = pnand %p10172_p11, %p10337_p5  ;;  %s10177_s15 = scalar_lea.vmem %s10176_s26, 32 }
  0x21   : > { %8890 = vmatpush3.bf16.msra.mxu0 %v10402_v18  ;;  %v10520_v50 = vpack.c.bf16 %v5872_v48, %v5871_v47  ;;  %v390_v51 = vld [vmem:[%s12672_s1 + $0x20] sm:$0xff]  ;;  %v391_v52 = vld [vmem:[%s12672_s1 + $0x28] sm:$0xff]  ;;  %v392_v57 = vld [vmem:[%s12672_s1 + $0x30] sm:$0xff]  ;;  %p10178_p0 = scmp.lt.s32.totalorder %s12631_s24, %s10176_s26  ;;  %p10179_p1 = scmp.lt.s32.totalorder %s10177_s15, %s10171_s19 }
  0x22   : > { %8980 = vmatpush3.bf16.msra.mxu1 %v10406_v19  ;;  %8891 = vmatprep.subr.bf16.mxu0 %v10235_v3  ;;  %v5873_v53 = vld [vmem:[%s12672_s1 + $0x80] sm:$0xff]  ;;  %v5874_v54 = vld [vmem:[%s12672_s1 + $0x88] sm:$0xff]  ;;  %v10540_v55 = vpack.c.bf16 %v391_v52, %v390_v51  ;;  %v393_v58 = vld [vmem:[%s12672_s1 + $0x38] sm:$0xff]  ;;  %p10174_p13 = pneg %p10173_p12 }
  0x23   : > { %8981 = vmatprep.subr.bf16.mxu1 %v10235_v3  ;;  %v10544_v56 = vpack.c.bf16 %v5874_v54, %v5873_v53  ;;  %v5875_v59 = vld [vmem:[%s12672_s1 + $0x90] sm:$0xff]  ;;  %v5876_v60 = vld [vmem:[%s12672_s1 + $0x98] sm:$0xff]  ;;  %v10560_v61 = vpack.c.bf16 %v393_v58, %v392_v57  ;;  %v394_v63 = vld [vmem:[%s12672_s1 + $0x40] sm:$0xff]  ;;  %p10180_p2 = por %p10179_p1, %p10178_p0 }
  0x24   : > { %v10564_v62 = vpack.c.bf16 %v5876_v60, %v5875_v59  ;;  %v395_v0 = vld [vmem:[%s12672_s1 + $0x48] sm:$0xff]  ;;  %v5877_v1 = vld [vmem:[%s12672_s1 + $0xa0] sm:$0xff]  ;;  %v396_v7 = vld [vmem:[%s12672_s1 + $0x50] sm:$0xff] }
  0x25   : > { %8893 = vmatpush3.bf16.msra.mxu0 %v10423_v24  ;;  %v5878_v2 = vld [vmem:[%s12672_s1 + $0xa8] sm:$0xff]  ;;  %v10580_v5 = vpack.c.bf16 %v395_v0, %v394_v63  ;;  %v397_v9 = vld [vmem:[%s12672_s1 + $0x58] sm:$0xff]  ;;  %v5879_v10 = vld [vmem:[%s12672_s1 + $0xb0] sm:$0xff]  ;;  %p10181_p3 = pnand %p10180_p2, %p10174_p13 }
  0x26   : > { %8983 = vmatpush3.bf16.msra.mxu1 %v10427_v25  ;;  %8894 = vmatprep.subr.bf16.mxu0 %v10235_v3  ;;  %v10584_v6 = vpack.c.bf16 %v5878_v2, %v5877_v1  ;;  %v5880_v14 = vld [vmem:[%s12672_s1 + $0xb8] sm:$0xff]  ;;  %v10600_v15 = vpack.c.bf16 %v397_v9, %v396_v7  ;;  %v5829_v17 = vld [vmem:[%s12672_s1 + $0x180] sm:$0xff]  ;;  %v5830_v20 = vld [vmem:[%s12672_s1 + $0x188] sm:$0xff] }
  0x27   : > { %8984 = vmatprep.subr.bf16.mxu1 %v10235_v3  ;;  %v10604_v16 = vpack.c.bf16 %v5880_v14, %v5879_v10  ;;  %v5895_v21 = vld [vmem:[%s12672_s1 + $0x1e0] sm:$0xff]  ;;  %v5896_v22 = vld [vmem:[%s12672_s1 + $0x1e8] sm:$0xff]  ;;  %v10621_v26 = vpack.c.bf16 %v5830_v20, %v5829_v17  ;;  %v5831_v28 = vld [vmem:[%s12672_s1 + $0x190] sm:$0xff] }
  0x28   : > { %v385_v23 = vld [vmem:[%s10473_s13] sm:$0x7f]  ;;  %v10625_v27 = vpack.c.bf16 %v5896_v22, %v5895_v21  ;;  %v5832_v29 = vld [vmem:[%s12672_s1 + $0x198] sm:$0xff]  ;;  %v5897_v32 = vld [vmem:[%s12672_s1 + $0x1f0] sm:$0xff] }
  0x29   : > { %8896 = vmatpush3.bf16.msra.mxu0 %v10444_v30  ;;  %v5898_v33 = vld [vmem:[%s12672_s1 + $0x1f8] sm:$0xff]  ;;  %v10643_v34 = vpack.c.bf16 %v5832_v29, %v5831_v28  ;;  %v5833_v38 = vld [vmem:[%s12672_s1 + $0x1a0] sm:$0xff]  ;;  %v5834_v39 = vld [vmem:[%s12672_s1 + $0x1a8] sm:$0xff] }
  0x2a   : > { %8986 = vmatpush3.bf16.msra.mxu1 %v10448_v31  ;;  %8897 = vmatprep.subr.bf16.mxu0 %v10235_v3  ;;  %v10647_v35 = vpack.c.bf16 %v5898_v33, %v5897_v32  ;;  %v5899_v40 = vld [vmem:[%s12672_s1 + $0x200] sm:$0xff]  ;;  %v5900_v41 = vld [vmem:[%s12672_s1 + $0x208] sm:$0xff]  ;;  %v10667_v45 = vpack.c.bf16 %v5834_v39, %v5833_v38  ;;  %v5835_v47 = vld [vmem:[%s12672_s1 + $0x1b0] sm:$0xff] }
  0x2b   : > { %8987 = vmatprep.subr.bf16.mxu1 %v10235_v3  ;;  %v10671_v46 = vpack.c.bf16 %v5900_v41, %v5899_v40  ;;  %v5836_v48 = vld [vmem:[%s12672_s1 + $0x1b8] sm:$0xff]  ;;  %v5901_v51 = vld [vmem:[%s12672_s1 + $0x210] sm:$0xff]  ;;  %v5837_v57 = vld [vmem:[%s12672_s1 + $0x1c0] sm:$0xff] }
  0x2c   : > { %v5902_v52 = vld [vmem:[%s12672_s1 + $0x218] sm:$0xff]  ;;  %v10687_v53 = vpack.c.bf16 %v5836_v48, %v5835_v47  ;;  %v5838_v58 = vld [vmem:[%s12672_s1 + $0x1c8] sm:$0xff]  ;;  %v5903_v59 = vld [vmem:[%s12672_s1 + $0x220] sm:$0xff] }
  0x2d   : > { %8899 = vmatpush3.bf16.msra.mxu0 %v10464_v36  ;;  %v10691_v54 = vpack.c.bf16 %v5902_v52, %v5901_v51  ;;  %v5904_v60 = vld [vmem:[%s12672_s1 + $0x228] sm:$0xff]  ;;  %v10707_v63 = vpack.c.bf16 %v5838_v58, %v5837_v57  ;;  %v5839_v1 = vld [vmem:[%s12672_s1 + $0x1d0] sm:$0xff]  ;;  %v5840_v2 = vld [vmem:[%s12672_s1 + $0x1d8] sm:$0xff] }
  0x2e   : > { %8989 = vmatpush3.bf16.msra.mxu1 %v10468_v37  ;;  %8900 = vmatprep.subr.bf16.mxu0 %v10235_v3  ;;  %v10711_v0 = vpack.c.bf16 %v5904_v60, %v5903_v59  ;;  %v5905_v7 = vld [vmem:[%s12672_s1 + $0x230] sm:$0xff]  ;;  %v5906_v9 = vld [vmem:[%s12672_s1 + $0x238] sm:$0xff]  ;;  %v10727_v10 = vpack.c.bf16 %v5840_v2, %v5839_v1  ;;  %v5843_v17 = vld [vmem:[%s12672_s1 + $0x240] sm:$0xff] }
  0x2f   : > { %8990 = vmatprep.subr.bf16.mxu1 %v10235_v3  ;;  %v10731_v14 = vpack.c.bf16 %v5906_v9, %v5905_v7  ;;  %v5844_v20 = vld [vmem:[%s12672_s1 + $0x248] sm:$0xff]  ;;  %v5908_v21 = vld [vmem:[%s12672_s1 + $0x2a0] sm:$0xff]  ;;  %v5845_v32 = vld [vmem:[%s12672_s1 + $0x250] sm:$0xff] }
  0x30   : > { %7142 = vmatmul.mubr.msk.f32.vlgmr.msra.gmra.mrb[0].mxu0 %vm413_vm1, %v10490_v42  ;;  %v5909_v22 = vld [vmem:[%s12672_s1 + $0x2a8] sm:$0xff]  ;;  %v10750_v28 = vpack.c.bf16 %v5844_v20, %v5843_v17  ;;  %v5846_v33 = vld [vmem:[%s12672_s1 + $0x258] sm:$0xff]  ;;  %v5910_v38 = vld [vmem:[%s12672_s1 + $0x2b0] sm:$0xff] }
  0x31   : > { %8902 = vmatpush3.bf16.msra.mxu0 %v10492_v43  ;;  %7277 = vmatmul.mubr.msk.f32.vlgmr.msra.gmra.mrb[0].mxu1 %vm413_vm1, %v10490_v42  ;;  %v10754_v29 = vpack.c.bf16 %v5909_v22, %v5908_v21  ;;  %v5911_v39 = vld [vmem:[%s12672_s1 + $0x2b8] sm:$0xff]  ;;  %v10774_v40 = vpack.c.bf16 %v5846_v33, %v5845_v32  ;;  %v5847_v47 = vld [vmem:[%s12672_s1 + $0x260] sm:$0xff]  ;;  %v5848_v48 = vld [vmem:[%s12672_s1 + $0x268] sm:$0xff] }
  0x32   : > { %8992 = vmatpush3.bf16.msra.mxu1 %v10496_v44  ;;  %8903 = vmatprep.subr.bf16.mxu0 %v10235_v3  ;;  %v10778_v41 = vpack.c.bf16 %v5911_v39, %v5910_v38  ;;  %v5912_v51 = vld [vmem:[%s12672_s1 + $0x2c0] sm:$0xff]  ;;  %v5913_v52 = vld [vmem:[%s12672_s1 + $0x2c8] sm:$0xff]  ;;  %v10798_v57 = vpack.c.bf16 %v5848_v48, %v5847_v47  ;;  %v5849_v59 = vld [vmem:[%s12672_s1 + $0x270] sm:$0xff] }
  0x33   : > { %8993 = vmatprep.subr.bf16.mxu1 %v10235_v3  ;;  %7168 = vmatprep.mubr.msk.f32.mxu0 %vm10236_vm0, %v12686_v11  ;;  %12710 = vst [vmem:[#allocation9_spill] sm:$0xff] %v10774_v40  ;;  %v10802_v58 = vpack.c.bf16 %v5913_v52, %v5912_v51  ;;  %v5850_v60 = vld [vmem:[%s12672_s1 + $0x278] sm:$0xff]  ;;  %v5914_v1 = vld [vmem:[%s12672_s1 + $0x2d0] sm:$0xff]  ;;  %v5851_v17 = vld [vmem:[%s12672_s1 + $0x280] sm:$0xff] }
  0x34   : > { %7303 = vmatprep.mubr.msk.f32.mxu1 %vm10236_vm0, %v12686_v11  ;;  %12711 = vst [vmem:[#allocation10_spill] sm:$0xff] %v10778_v41  ;;  %12712 = vst [vmem:[#allocation11_spill] sm:$0xff] %v10798_v57  ;;  %v5915_v2 = vld [vmem:[%s12672_s1 + $0x2d8] sm:$0xff]  ;;  %v10818_v7 = vpack.c.bf16 %v5850_v60, %v5849_v59  ;;  %v5852_v20 = vld [vmem:[%s12672_s1 + $0x288] sm:$0xff] }
  0x35   : > { %8905 = vmatpush3.bf16.msra.mxu0 %v10516_v49  ;;  %12713 = vst [vmem:[#allocation12_spill] sm:$0xff] %v10802_v58  ;;  %v10822_v9 = vpack.c.bf16 %v5915_v2, %v5914_v1  ;;  %v5916_v21 = vld [vmem:[%s12672_s1 + $0x2e0] sm:$0xff]  ;;  %v5917_v22 = vld [vmem:[%s12672_s1 + $0x2e8] sm:$0xff]  ;;  %v10838_v32 = vpack.c.bf16 %v5852_v20, %v5851_v17  ;;  %v5853_v38 = vld [vmem:[%s12672_s1 + $0x290] sm:$0xff] }
  0x36   : > { %8995 = vmatpush3.bf16.msra.mxu1 %v10520_v50  ;;  %8906 = vmatprep.subr.bf16.mxu0 %v10235_v3  ;;  %12714 = vst [vmem:[#allocation13_spill] sm:$0xff] %v10818_v7  ;;  %v10842_v33 = vpack.c.bf16 %v5917_v22, %v5916_v21  ;;  %v5854_v39 = vld [vmem:[%s12672_s1 + $0x298] sm:$0xff]  ;;  %v5918_v47 = vld [vmem:[%s12672_s1 + $0x2f0] sm:$0xff]  ;;  %v5856_v59 = vld [vmem:[%s12672_s1 + $0x300] sm:$0xff] }
  0x37   : > { %8996 = vmatprep.subr.bf16.mxu1 %v10235_v3  ;;  %12715 = vst [vmem:[#allocation14_spill] sm:$0xff] %v10822_v9  ;;  %v5919_v48 = vld [vmem:[%s12672_s1 + $0x2f8] sm:$0xff]  ;;  %v10858_v51 = vpack.c.bf16 %v5854_v39, %v5853_v38  ;;  %v5857_v60 = vld [vmem:[%s12672_s1 + $0x308] sm:$0xff]  ;;  %v5921_v1 = vld [vmem:[%s12672_s1 + $0x360] sm:$0xff] }
  0x38   : > { %v10862_v52 = vpack.c.bf16 %v5919_v48, %v5918_v47  ;;  %v5922_v2 = vld [vmem:[%s12672_s1 + $0x368] sm:$0xff]  ;;  %v10879_v17 = vld [vmem:[%s10473_s13 + $0x18] sm:$0x7f]  ;;  %v10881_v20 = vpack.c.bf16 %v5857_v60, %v5856_v59  ;;  %v5858_v22 = vld [vmem:[%s12672_s1 + $0x310] sm:$0xff] }
  0x39   : > { %8908 = vmatpush3.bf16.msra.mxu0 %v10540_v55  ;;  %v10885_v21 = vpack.c.bf16 %v5922_v2, %v5921_v1  ;;  %v5859_v38 = vld [vmem:[%s12672_s1 + $0x318] sm:$0xff]  ;;  %v5923_v39 = vld [vmem:[%s12672_s1 + $0x370] sm:$0xff]  ;;  %v5860_v60 = vld [vmem:[%s12672_s1 + $0x320] sm:$0xff] }
  0x3a   : > { %8998 = vmatpush3.bf16.msra.mxu1 %v10544_v56  ;;  %8909 = vmatprep.subr.bf16.mxu0 %v10235_v3  ;;  %v5924_v47 = vld [vmem:[%s12672_s1 + $0x378] sm:$0xff]  ;;  %v10905_v48 = vpack.c.bf16 %v5859_v38, %v5858_v22  ;;  %v5861_v1 = vld [vmem:[%s12672_s1 + $0x328] sm:$0xff]  ;;  %v5925_v2 = vld [vmem:[%s12672_s1 + $0x380] sm:$0xff] }
  0x3b   : > { %8999 = vmatprep.subr.bf16.mxu1 %v10235_v3  ;;  %12716 = vst [vmem:[#allocation15_spill] sm:$0xff] %v10885_v21  ;;  %v10909_v59 = vpack.c.bf16 %v5924_v47, %v5923_v39  ;;  %v5926_v22 = vld [vmem:[%s12672_s1 + $0x388] sm:$0xff]  ;;  %v10929_v38 = vpack.c.bf16 %v5861_v1, %v5860_v60  ;;  %v5862_v47 = vld [vmem:[%s12672_s1 + $0x330] sm:$0xff]  ;;  %v5928_v1 = vld [vmem:[%s12672_s1 + $0x398] sm:$0xff] }
  0x3c   : > { %v10933_v39 = vpack.c.bf16 %v5926_v22, %v5925_v2  ;;  %v5927_v60 = vld [vmem:[%s12672_s1 + $0x390] sm:$0xff] }
  0x3d   : > { %8911 = vmatpush3.bf16.msra.mxu0 %v10560_v61  ;;  %12717 = vst [vmem:[#allocation16_spill] sm:$0xff] %v10909_v59  ;;  %12718 = vst [vmem:[#allocation17_spill] sm:$0xff] %v10929_v38  ;;  %v10953_v22 = vpack.c.bf16 %v5928_v1, %v5927_v60 }
  0x3e   : > { %9001 = vmatpush3.bf16.msra.mxu1 %v10564_v62  ;;  %8912 = vmatprep.subr.bf16.mxu0 %v10235_v3  ;;  %12719 = vst [vmem:[#allocation18_spill] sm:$0xff] %v10933_v39 }
  0x3f   : > { %9002 = vmatprep.subr.bf16.mxu1 %v10235_v3  ;;  %12720 = vst [vmem:[#allocation19_spill] sm:$0xff] %v10953_v22 }
  0x41   : > { %8914 = vmatpush3.bf16.msra.mxu0 %v10580_v5 }
  0x42   : > { %9004 = vmatpush3.bf16.msra.mxu1 %v10584_v6  ;;  %8915 = vmatprep.subr.bf16.mxu0 %v10235_v3 }
  0x43   : > { %9005 = vmatprep.subr.bf16.mxu1 %v10235_v3 }
  0x45   : > { %8917 = vmatpush3.bf16.msra.mxu0 %v10600_v15 }
  0x46   : > { %9007 = vmatpush3.bf16.msra.mxu1 %v10604_v16  ;;  %8918 = vmatprep.subr.bf16.mxu0 %v10235_v3 }
  0x47   : > { %9008 = vmatprep.subr.bf16.mxu1 %v10235_v3 }
  0x48   : > { %7169 = vmatmul.mubr.msk.f32.vlgmr.msra.gmra.mrb[0].mxu0 %vm413_vm1, %v385_v23 }
  0x49   : > { %8920 = vmatpush3.bf16.msra.mxu0 %v10621_v26  ;;  %7304 = vmatmul.mubr.msk.f32.vlgmr.msra.gmra.mrb[0].mxu1 %vm413_vm1, %v385_v23  ;;  %v10748_v23 = vld [vmem:[%s10473_s13 + $0x10] sm:$0x7f] }
  0x4a   : > { %9010 = vmatpush3.bf16.msra.mxu1 %v10625_v27  ;;  %8921 = vmatprep.subr.bf16.mxu0 %v10235_v3 }
  0x4b   : > { %9011 = vmatprep.subr.bf16.mxu1 %v10235_v3  ;;  %7195 = vmatprep.mubr.msk.f32.mxu0 %vm10236_vm0, %v12686_v11 }
  0x4c   : > { %7330 = vmatprep.mubr.msk.f32.mxu1 %vm10236_vm0, %v12686_v11 }
  0x4d   : > { %8923 = vmatpush3.bf16.msra.mxu0 %v10643_v34 }
  0x4e   : > { %9013 = vmatpush3.bf16.msra.mxu1 %v10647_v35  ;;  %8924 = vmatprep.subr.bf16.mxu0 %v10235_v3 }
  0x4f   : > { %9014 = vmatprep.subr.bf16.mxu1 %v10235_v3 }
  0x51   : > { %8926 = vmatpush3.bf16.msra.mxu0 %v10667_v45 }
  0x52   : > { %9016 = vmatpush3.bf16.msra.mxu1 %v10671_v46  ;;  %8927 = vmatprep.subr.bf16.mxu0 %v10235_v3 }
  0x53   : > { %9017 = vmatprep.subr.bf16.mxu1 %v10235_v3 }
  0x55   : > { %8929 = vmatpush3.bf16.msra.mxu0 %v10687_v53 }
  0x56   : > { %9019 = vmatpush3.bf16.msra.mxu1 %v10691_v54  ;;  %8930 = vmatprep.subr.bf16.mxu0 %v10235_v3 }
  0x57   : > { %9020 = vmatprep.subr.bf16.mxu1 %v10235_v3 }
  0x59   : > { %8932 = vmatpush3.bf16.msra.mxu0 %v10707_v63 }
  0x5a   : > { %9022 = vmatpush3.bf16.msra.mxu1 %v10711_v0  ;;  %8933 = vmatprep.subr.bf16.mxu0 %v10235_v3 }
  0x5b   : > { %9023 = vmatprep.subr.bf16.mxu1 %v10235_v3 }
  0x5d   : > { %8935 = vmatpush3.bf16.msra.mxu0 %v10727_v10 }
  0x5e   : > { %9025 = vmatpush3.bf16.msra.mxu1 %v10731_v14  ;;  %8936 = vmatprep.subr.bf16.mxu0 %v10235_v3 }
  0x5f   : > { %9026 = vmatprep.subr.bf16.mxu1 %v10235_v3 }
  0x60   : > { %7196 = vmatmul.mubr.msk.f32.vlgmr.msra.gmra.mrb[0].mxu0 %vm413_vm1, %v10748_v23 }
  0x61   : > { %8938 = vmatpush3.bf16.msra.mxu0 %v10750_v28  ;;  %7331 = vmatmul.mubr.msk.f32.vlgmr.msra.gmra.mrb[0].mxu1 %vm413_vm1, %v10748_v23 }
  0x62   : > { %9028 = vmatpush3.bf16.msra.mxu1 %v10754_v29  ;;  %8939 = vmatprep.subr.bf16.mxu0 %v10235_v3 }
  0x63   : > { %9029 = vmatprep.subr.bf16.mxu1 %v10235_v3  ;;  %7222 = vmatprep.mubr.msk.f32.mxu0 %vm10236_vm0, %v12686_v11 }
  0x64   : > { %7357 = vmatprep.mubr.msk.f32.mxu1 %vm10236_vm0, %v12686_v11 }
  0x65   : > { %8941 = vmatpush3.bf16.msra.mxu0 %v10774_v40 }
  0x66   : > { %9031 = vmatpush3.bf16.msra.mxu1 %v10778_v41  ;;  %8942 = vmatprep.subr.bf16.mxu0 %v10235_v3 }
  0x67   : > { %9032 = vmatprep.subr.bf16.mxu1 %v10235_v3 }
  0x69   : > { %8944 = vmatpush3.bf16.msra.mxu0 %v10798_v57 }
  0x6a   : > { %9034 = vmatpush3.bf16.msra.mxu1 %v10802_v58  ;;  %8945 = vmatprep.subr.bf16.mxu0 %v10235_v3 }
  0x6b   : > { %9035 = vmatprep.subr.bf16.mxu1 %v10235_v3 }
  0x6d   : > { %8947 = vmatpush3.bf16.msra.mxu0 %v10818_v7 }
  0x6e   : > { %9037 = vmatpush3.bf16.msra.mxu1 %v10822_v9  ;;  %8948 = vmatprep.subr.bf16.mxu0 %v10235_v3 }
  0x6f   : > { %9038 = vmatprep.subr.bf16.mxu1 %v10235_v3 }
  0x71   : > { %8950 = vmatpush3.bf16.msra.mxu0 %v10838_v32 }
  0x72   : > { %9040 = vmatpush3.bf16.msra.mxu1 %v10842_v33  ;;  %8951 = vmatprep.subr.bf16.mxu0 %v10235_v3 }
  0x73   : > { %9041 = vmatprep.subr.bf16.mxu1 %v10235_v3 }
  0x75   : > { %8953 = vmatpush3.bf16.msra.mxu0 %v10858_v51 }
  0x76   : > { %9043 = vmatpush3.bf16.msra.mxu1 %v10862_v52  ;;  %8954 = vmatprep.subr.bf16.mxu0 %v10235_v3 }
  0x77   : > { %9044 = vmatprep.subr.bf16.mxu1 %v10235_v3 }
  0x78   : > { %7223 = vmatmul.mubr.msk.f32.vlgmr.msra.gmra.mrb[0].mxu0 %vm413_vm1, %v10879_v17 }
  0x79   : > { %8956 = vmatpush3.bf16.msra.mxu0 %v10881_v20  ;;  %7358 = vmatmul.mubr.msk.f32.vlgmr.msra.gmra.mrb[0].mxu1 %vm413_vm1, %v10879_v17 }
  0x7a   : > { %9046 = vmatpush3.bf16.msra.mxu1 %v10885_v21  ;;  %8957 = vmatprep.subr.bf16.mxu0 %v10235_v3  ;;  %v5863_v21 = vld [vmem:[%s12672_s1 + $0x338] sm:$0xff] }
  0x7b   : > { %9047 = vmatprep.subr.bf16.mxu1 %v10235_v3  ;;  %7249 = vmatprep.mubr.msk.f32.mxu0 %vm10236_vm0, %v12686_v11  ;;  %v10949_v2 = vpack.c.bf16 %v5863_v21, %v5862_v47  ;;  %v5929_v21 = vld [vmem:[%s12672_s1 + $0x3a0] sm:$0xff]  ;;  %v5930_v47 = vld [vmem:[%s12672_s1 + $0x3a8] sm:$0xff] }
  0x7c   : > { %7384 = vmatprep.mubr.msk.f32.mxu1 %vm10236_vm0, %v12686_v11  ;;  %v5864_v11 = vld [vmem:[%s12672_s1 + $0x340] sm:$0xff]  ;;  %v10973_v1 = vpack.c.bf16 %v5930_v47, %v5929_v21 }
  0x7d   : > { %8959 = vmatpush3.bf16.msra.mxu0 %v10905_v48 }
  0x7e   : > { %9049 = vmatpush3.bf16.msra.mxu1 %v10909_v59  ;;  %8960 = vmatprep.subr.bf16.mxu0 %v10235_v3  ;;  %v5865_v59 = vld [vmem:[%s12672_s1 + $0x348] sm:$0xff] }
  0x7f   : > { %9050 = vmatprep.subr.bf16.mxu1 %v10235_v3  ;;  %v10969_v60 = vpack.c.bf16 %v5865_v59, %v5864_v11  ;;  %v5931_v11 = vld [vmem:[%s12672_s1 + $0x3b0] sm:$0xff]  ;;  %v5932_v59 = vld [vmem:[%s12672_s1 + $0x3b8] sm:$0xff] }
  0x80   : > { %v10993_v47 = vpack.c.bf16 %v5932_v59, %v5931_v11  ;;  %v5938_v11 = vld [vmem:[%s10473_s13 + $0x9] sm:$0x7f]  ;;  %v11192_v59 = vld [vmem:[%s10473_s13 + $0x18] sm:$0x7f] }
  0x81   : > { %8962 = vmatpush3.bf16.msra.mxu0 %v10929_v38  ;;  %v5867_v38 = vld [vmem:[%s12672_s1 + $0x358] sm:$0xff] }
  0x82   : > { %9052 = vmatpush3.bf16.msra.mxu1 %v10933_v39  ;;  %8963 = vmatprep.subr.bf16.mxu0 %v10235_v3  ;;  %v5866_v39 = vld [vmem:[%s12672_s1 + $0x350] sm:$0xff] }
  0x83   : > { %9053 = vmatprep.subr.bf16.mxu1 %v10235_v3  ;;  %v10989_v21 = vpack.c.bf16 %v5867_v38, %v5866_v39  ;;  %v12721_v38 = vmov 0.0   ;;  %v12725_v39 = vld [vmem:[#allocation18_spill] sm:$0xff] }
  0x85   : > { %8965 = vmatpush3.bf16.msra.mxu0 %v10949_v2 }
  0x86   : > { %9055 = vmatpush3.bf16.msra.mxu1 %v10953_v22  ;;  %8966 = vmatprep.subr.bf16.mxu0 %v10235_v3  ;;  %v10998_v22 = vld [vmem:[%s10473_s13 + $0x1] sm:$0x7f] }
  0x87   : > { %9056 = vmatprep.subr.bf16.mxu1 %v10235_v3 }
  0x89   : > { %8968 = vmatpush3.bf16.msra.mxu0 %v10969_v60 }
  0x8a   : > { %9058 = vmatpush3.bf16.msra.mxu1 %v10973_v1  ;;  %8969 = vmatprep.subr.bf16.mxu0 %v10235_v3 }
  0x8b   : > { %9059 = vmatprep.subr.bf16.mxu1 %v10235_v3 }
  0x8d   : > { %8971 = vmatpush3.bf16.msra.mxu0 %v10989_v21 }
  0x8e   : > { %9061 = vmatpush3.bf16.msra.mxu1 %v10993_v47  ;;  %9062 = vmatprep.subr.bf16.mxu0 %v10235_v3 }
  0x8f   : > { %9152 = vmatprep.subr.bf16.mxu1 %v10235_v3 }
  0x90   : > { %7250 = vmatmul.mubr.msk.f32.vlgmr.msra.gmra.mrb[0].mxu0 %vm413_vm1, %v10998_v22 }
  0x91   : > { %7385 = vmatmul.mubr.msk.f32.vlgmr.msra.gmra.mrb[0].mxu1 %vm413_vm1, %v10998_v22  ;;  %9064 = vmatpush3.bf16.msra.mxu0 %v10358_v4 }
  0x92   : > { %9154 = vmatpush3.bf16.msra.mxu1 %v10369_v8  ;;  %9065 = vmatprep.subr.bf16.mxu0 %v10235_v3 }
  0x93   : > { %9155 = vmatprep.subr.bf16.mxu1 %v10235_v3  ;;  %7411 = vmatprep.mubr.msk.f32.mxu0 %vm10236_vm0, %v12721_v38 }
  0x94   : > { %7546 = vmatprep.mubr.msk.f32.mxu1 %vm10236_vm0, %v12721_v38 }
  0x95   : > { %9067 = vmatpush3.bf16.msra.mxu0 %v10382_v12 }
  0x96   : > { %9157 = vmatpush3.bf16.msra.mxu1 %v10386_v13  ;;  %9068 = vmatprep.subr.bf16.mxu0 %v10235_v3 }
  0x97   : > { %9158 = vmatprep.subr.bf16.mxu1 %v10235_v3 }
  0x99   : > { %9070 = vmatpush3.bf16.msra.mxu0 %v10402_v18 }
  0x9a   : > { %9160 = vmatpush3.bf16.msra.mxu1 %v10406_v19  ;;  %9071 = vmatprep.subr.bf16.mxu0 %v10235_v3 }
  0x9b   : > { %9161 = vmatprep.subr.bf16.mxu1 %v10235_v3 }
  0x9d   : > { %9073 = vmatpush3.bf16.msra.mxu0 %v10423_v24 }
  0x9e   : > { %9163 = vmatpush3.bf16.msra.mxu1 %v10427_v25  ;;  %9074 = vmatprep.subr.bf16.mxu0 %v10235_v3 }
  0x9f   : > { %9164 = vmatprep.subr.bf16.mxu1 %v10235_v3 }
  0xa1   : > { %9076 = vmatpush3.bf16.msra.mxu0 %v10444_v30 }
  0xa2   : > { %9166 = vmatpush3.bf16.msra.mxu1 %v10448_v31  ;;  %9077 = vmatprep.subr.bf16.mxu0 %v10235_v3 }
  0xa3   : > { %9167 = vmatprep.subr.bf16.mxu1 %v10235_v3 }
  0xa5   : > { %9079 = vmatpush3.bf16.msra.mxu0 %v10464_v36 }
  0xa6   : > { %9169 = vmatpush3.bf16.msra.mxu1 %v10468_v37  ;;  %9080 = vmatprep.subr.bf16.mxu0 %v10235_v3 }
  0xa7   : > { %9170 = vmatprep.subr.bf16.mxu1 %v10235_v3 }
  0xa8   : > { %7412 = vmatmul.mubr.msk.f32.vlgmr.msra.gmra.mrb[2].mxu0 %vm413_vm1, %v10748_v23 }
  0xa9   : > { %9082 = vmatpush3.bf16.msra.mxu0 %v10492_v43  ;;  %7547 = vmatmul.mubr.msk.f32.vlgmr.msra.gmra.mrb[2].mxu1 %vm413_vm1, %v10748_v23  ;;  %v12723_v23 = vld [vmem:[#allocation16_spill] sm:$0xff] }
  0xaa   : > { %9172 = vmatpush3.bf16.msra.mxu1 %v10496_v44  ;;  %9083 = vmatprep.subr.bf16.mxu0 %v10235_v3 }
  0xab   : > { %9173 = vmatprep.subr.bf16.mxu1 %v10235_v3  ;;  %7438 = vmatprep.mubr.msk.f32.mxu0 %vm10236_vm0, %v12721_v38 }
  0xac   : > { %7573 = vmatprep.mubr.msk.f32.mxu1 %vm10236_vm0, %v12721_v38 }
  0xad   : > { %9085 = vmatpush3.bf16.msra.mxu0 %v10516_v49 }
  0xae   : > { %9175 = vmatpush3.bf16.msra.mxu1 %v10520_v50  ;;  %9086 = vmatprep.subr.bf16.mxu0 %v10235_v3 }
  0xaf   : > { %9176 = vmatprep.subr.bf16.mxu1 %v10235_v3 }
  0xb1   : > { %9088 = vmatpush3.bf16.msra.mxu0 %v10540_v55 }
  0xb2   : > { %9178 = vmatpush3.bf16.msra.mxu1 %v10544_v56  ;;  %9089 = vmatprep.subr.bf16.mxu0 %v10235_v3 }
  0xb3   : > { %9179 = vmatprep.subr.bf16.mxu1 %v10235_v3 }
  0xb5   : > { %9091 = vmatpush3.bf16.msra.mxu0 %v10560_v61 }
  0xb6   : > { %9181 = vmatpush3.bf16.msra.mxu1 %v10564_v62  ;;  %9092 = vmatprep.subr.bf16.mxu0 %v10235_v3 }
  0xb7   : > { %9182 = vmatprep.subr.bf16.mxu1 %v10235_v3 }
  0xb9   : > { %9094 = vmatpush3.bf16.msra.mxu0 %v10580_v5 }
  0xba   : > { %9184 = vmatpush3.bf16.msra.mxu1 %v10584_v6  ;;  %9095 = vmatprep.subr.bf16.mxu0 %v10235_v3 }
  0xbb   : > { %9185 = vmatprep.subr.bf16.mxu1 %v10235_v3 }
  0xbd   : > { %9097 = vmatpush3.bf16.msra.mxu0 %v10600_v15 }
  0xbe   : > { %9187 = vmatpush3.bf16.msra.mxu1 %v10604_v16  ;;  %9098 = vmatprep.subr.bf16.mxu0 %v10235_v3 }
  0xbf   : > { %9188 = vmatprep.subr.bf16.mxu1 %v10235_v3 }
  0xc0   : > { %7439 = vmatmul.mubr.msk.f32.vlgmr.msra.gmra.mrb[2].mxu0 %vm413_vm1, %v10490_v42 }
  0xc1   : > { %9100 = vmatpush3.bf16.msra.mxu0 %v10621_v26  ;;  %7574 = vmatmul.mubr.msk.f32.vlgmr.msra.gmra.mrb[2].mxu1 %vm413_vm1, %v10490_v42  ;;  %v12722_v42 = vld [vmem:[#allocation15_spill] sm:$0xff] }
  0xc2   : > { %9190 = vmatpush3.bf16.msra.mxu1 %v10625_v27  ;;  %9101 = vmatprep.subr.bf16.mxu0 %v10235_v3 }
  0xc3   : > { %9191 = vmatprep.subr.bf16.mxu1 %v10235_v3  ;;  %7465 = vmatprep.mubr.msk.f32.mxu0 %vm10236_vm0, %v12721_v38 }
  0xc4   : > { %7600 = vmatprep.mubr.msk.f32.mxu1 %vm10236_vm0, %v12721_v38 }
  0xc5   : > { %9103 = vmatpush3.bf16.msra.mxu0 %v10643_v34 }
  0xc6   : > { %9193 = vmatpush3.bf16.msra.mxu1 %v10647_v35  ;;  %9104 = vmatprep.subr.bf16.mxu0 %v10235_v3 }
  0xc7   : > { %9194 = vmatprep.subr.bf16.mxu1 %v10235_v3 }
  0xc9   : > { %9106 = vmatpush3.bf16.msra.mxu0 %v10667_v45 }
  0xca   : > { %9196 = vmatpush3.bf16.msra.mxu1 %v10671_v46  ;;  %9107 = vmatprep.subr.bf16.mxu0 %v10235_v3 }
  0xcb   : > { %9197 = vmatprep.subr.bf16.mxu1 %v10235_v3 }
  0xcd   : > { %9109 = vmatpush3.bf16.msra.mxu0 %v10687_v53 }
  0xce   : > { %9199 = vmatpush3.bf16.msra.mxu1 %v10691_v54  ;;  %9110 = vmatprep.subr.bf16.mxu0 %v10235_v3 }
  0xcf   : > { %9200 = vmatprep.subr.bf16.mxu1 %v10235_v3 }
  0xd1   : > { %9112 = vmatpush3.bf16.msra.mxu0 %v10707_v63 }
  0xd2   : > { %9202 = vmatpush3.bf16.msra.mxu1 %v10711_v0  ;;  %9113 = vmatprep.subr.bf16.mxu0 %v10235_v3 }
  0xd3   : > { %9203 = vmatprep.subr.bf16.mxu1 %v10235_v3 }
  0xd5   : > { %9115 = vmatpush3.bf16.msra.mxu0 %v10727_v10 }
  0xd6   : > { %9205 = vmatpush3.bf16.msra.mxu1 %v10731_v14  ;;  %9116 = vmatprep.subr.bf16.mxu0 %v10235_v3 }
  0xd7   : > { %9206 = vmatprep.subr.bf16.mxu1 %v10235_v3 }
  0xd8   : > { %7466 = vmatmul.mubr.msk.f32.vlgmr.msra.gmra.mrb[2].mxu0 %vm413_vm1, %v10879_v17 }
  0xd9   : > { %9118 = vmatpush3.bf16.msra.mxu0 %v10750_v28  ;;  %7601 = vmatmul.mubr.msk.f32.vlgmr.msra.gmra.mrb[2].mxu1 %vm413_vm1, %v10879_v17  ;;  %v12724_v17 = vld [vmem:[#allocation17_spill] sm:$0xff] }
  0xda   : > { %9208 = vmatpush3.bf16.msra.mxu1 %v10754_v29  ;;  %9119 = vmatprep.subr.bf16.mxu0 %v10235_v3 }
  0xdb   : > { %9209 = vmatprep.subr.bf16.mxu1 %v10235_v3  ;;  %7492 = vmatprep.mubr.msk.f32.mxu0 %vm10236_vm0, %v12721_v38 }
  0xdc   : > { %7627 = vmatprep.mubr.msk.f32.mxu1 %vm10236_vm0, %v12721_v38 }
  0xdd   : > { %9121 = vmatpush3.bf16.msra.mxu0 %v10774_v40 }
  0xde   : > { %9211 = vmatpush3.bf16.msra.mxu1 %v10778_v41  ;;  %9122 = vmatprep.subr.bf16.mxu0 %v10235_v3 }
  0xdf   : > { %9212 = vmatprep.subr.bf16.mxu1 %v10235_v3 }
  0xe1   : > { %9124 = vmatpush3.bf16.msra.mxu0 %v10798_v57 }
  0xe2   : > { %9214 = vmatpush3.bf16.msra.mxu1 %v10802_v58  ;;  %9125 = vmatprep.subr.bf16.mxu0 %v10235_v3 }
  0xe3   : > { %9215 = vmatprep.subr.bf16.mxu1 %v10235_v3 }
  0xe5   : > { %9127 = vmatpush3.bf16.msra.mxu0 %v10818_v7 }
  0xe6   : > { %9217 = vmatpush3.bf16.msra.mxu1 %v10822_v9  ;;  %9128 = vmatprep.subr.bf16.mxu0 %v10235_v3 }
  0xe7   : > { %9218 = vmatprep.subr.bf16.mxu1 %v10235_v3 }
  0xe9   : > { %9130 = vmatpush3.bf16.msra.mxu0 %v10838_v32 }
  0xea   : > { %9220 = vmatpush3.bf16.msra.mxu1 %v10842_v33  ;;  %9131 = vmatprep.subr.bf16.mxu0 %v10235_v3 }
  0xeb   : > { %9221 = vmatprep.subr.bf16.mxu1 %v10235_v3 }
  0xed   : > { %9133 = vmatpush3.bf16.msra.mxu0 %v10858_v51 }
  0xee   : > { %9223 = vmatpush3.bf16.msra.mxu1 %v10862_v52  ;;  %9134 = vmatprep.subr.bf16.mxu0 %v10235_v3 }
  0xef   : > { %9224 = vmatprep.subr.bf16.mxu1 %v10235_v3 }
  0xf0   : > { %7493 = vmatmul.mubr.msk.f32.vlgmr.msra.gmra.mrb[2].mxu0 %vm413_vm1, %v10998_v22 }
  0xf1   : > { %9136 = vmatpush3.bf16.msra.mxu0 %v10881_v20  ;;  %7628 = vmatmul.mubr.msk.f32.vlgmr.msra.gmra.mrb[2].mxu1 %vm413_vm1, %v10998_v22  ;;  %v12726_v22 = vld [vmem:[#allocation19_spill] sm:$0xff] }
  0xf2   : > { %9226 = vmatpush3.bf16.msra.mxu1 %v12722_v42  ;;  %9137 = vmatprep.subr.bf16.mxu0 %v10235_v3 }
  0xf3   : > { %9227 = vmatprep.subr.bf16.mxu1 %v10235_v3  ;;  %7519 = vmatprep.mubr.msk.f32.mxu0 %vm10236_vm0, %v12721_v38 }
  0xf4   : > { %7654 = vmatprep.mubr.msk.f32.mxu1 %vm10236_vm0, %v12721_v38 }
  0xf5   : > { %9139 = vmatpush3.bf16.msra.mxu0 %v10905_v48 }
  0xf6   : > { %9229 = vmatpush3.bf16.msra.mxu1 %v12723_v23  ;;  %9140 = vmatprep.subr.bf16.mxu0 %v10235_v3 }
  0xf7   : > { %9230 = vmatprep.subr.bf16.mxu1 %v10235_v3 }
  0xf9   : > { %9142 = vmatpush3.bf16.msra.mxu0 %v12724_v17 }
  0xfa   : > { %9232 = vmatpush3.bf16.msra.mxu1 %v12725_v39  ;;  %9143 = vmatprep.subr.bf16.mxu0 %v10235_v3 }
  0xfb   : > { %9233 = vmatprep.subr.bf16.mxu1 %v10235_v3 }
  0xfd   : > { %9145 = vmatpush3.bf16.msra.mxu0 %v10949_v2 }
  0xfe   : > { %9235 = vmatpush3.bf16.msra.mxu1 %v12726_v22  ;;  %9146 = vmatprep.subr.bf16.mxu0 %v10235_v3 }
  0xff   : > { %9236 = vmatprep.subr.bf16.mxu1 %v10235_v3 }
 0x101   : > { %9148 = vmatpush3.bf16.msra.mxu0 %v10969_v60 }
 0x102   : > { %9238 = vmatpush3.bf16.msra.mxu1 %v10973_v1  ;;  %9149 = vmatprep.subr.bf16.mxu0 %v10235_v3 }
 0x103   : > { %9239 = vmatprep.subr.bf16.mxu1 %v10235_v3 }
 0x105   : > { %9151 = vmatpush3.bf16.msra.mxu0 %v10989_v21 }
 0x106   : > { %9241 = vmatpush3.bf16.msra.mxu1 %v10993_v47  ;;  %9242 = vmatprep.subr.bf16.mxu0 %v10235_v3 }
 0x107   : > { %9332 = vmatprep.subr.bf16.mxu1 %v10235_v3 }
 0x108   : > { %7520 = vmatmul.mubr.msk.f32.vlgmr.msra.gmra.mrb[2].mxu0 %vm413_vm1, %v5938_v11 }
 0x109   : > { %7655 = vmatmul.mubr.msk.f32.vlgmr.msra.gmra.mrb[2].mxu1 %vm413_vm1, %v5938_v11  ;;  %9244 = vmatpush3.bf16.msra.mxu0 %v10358_v4  ;;  %v5946_v11 = vld [vmem:[%s10473_s13 + $0x10] sm:$0x7f] }
 0x10a   : > { %9334 = vmatpush3.bf16.msra.mxu1 %v10369_v8  ;;  %9245 = vmatprep.subr.bf16.mxu0 %v10235_v3 }
 0x10b   : > { %9335 = vmatprep.subr.bf16.mxu1 %v10235_v3  ;;  %7681 = vmatprep.mubr.msk.f32.mxu0 %vm10236_vm0, %v12721_v38 }
 0x10c   : > { %7816 = vmatprep.mubr.msk.f32.mxu1 %vm10236_vm0, %v12721_v38 }
 0x10d   : > { %9247 = vmatpush3.bf16.msra.mxu0 %v10382_v12 }
 0x10e   : > { %9337 = vmatpush3.bf16.msra.mxu1 %v10386_v13  ;;  %9248 = vmatprep.subr.bf16.mxu0 %v10235_v3 }
 0x10f   : > { %9338 = vmatprep.subr.bf16.mxu1 %v10235_v3 }
 0x111   : > { %9250 = vmatpush3.bf16.msra.mxu0 %v10402_v18 }
 0x112   : > { %9340 = vmatpush3.bf16.msra.mxu1 %v10406_v19  ;;  %9251 = vmatprep.subr.bf16.mxu0 %v10235_v3 }
 0x113   : > { %9341 = vmatprep.subr.bf16.mxu1 %v10235_v3 }
 0x115   : > { %9253 = vmatpush3.bf16.msra.mxu0 %v10423_v24 }
 0x116   : > { %9343 = vmatpush3.bf16.msra.mxu1 %v10427_v25  ;;  %9254 = vmatprep.subr.bf16.mxu0 %v10235_v3 }
 0x117   : > { %9344 = vmatprep.subr.bf16.mxu1 %v10235_v3 }
 0x119   : > { %9256 = vmatpush3.bf16.msra.mxu0 %v10444_v30 }
 0x11a   : > { %9346 = vmatpush3.bf16.msra.mxu1 %v10448_v31  ;;  %9257 = vmatprep.subr.bf16.mxu0 %v10235_v3 }
 0x11b   : > { %9347 = vmatprep.subr.bf16.mxu1 %v10235_v3 }
 0x11d   : > { %9259 = vmatpush3.bf16.msra.mxu0 %v10464_v36 }
 0x11e   : > { %9349 = vmatpush3.bf16.msra.mxu1 %v10468_v37  ;;  %9260 = vmatprep.subr.bf16.mxu0 %v10235_v3 }
 0x11f   : > { %9350 = vmatprep.subr.bf16.mxu1 %v10235_v3 }
 0x120   : > { %7682 = vmatmul.mubr.msk.f32.vlgmr.msra.gmra.mrb[4].mxu0 %vm413_vm1, %v11192_v59 }
 0x121   : > { %9262 = vmatpush3.bf16.msra.mxu0 %v10492_v43  ;;  %7817 = vmatmul.mubr.msk.f32.vlgmr.msra.gmra.mrb[4].mxu1 %vm413_vm1, %v11192_v59 }
 0x122   : > { %9352 = vmatpush3.bf16.msra.mxu1 %v10496_v44  ;;  %9263 = vmatprep.subr.bf16.mxu0 %v10235_v3 }
 0x123   : > { %9353 = vmatprep.subr.bf16.mxu1 %v10235_v3  ;;  %7708 = vmatprep.mubr.msk.f32.mxu0 %vm10236_vm0, %v12721_v38 }
 0x124   : > { %7843 = vmatprep.mubr.msk.f32.mxu1 %vm10236_vm0, %v12721_v38 }
 0x125   : > { %9265 = vmatpush3.bf16.msra.mxu0 %v10516_v49 }
 0x126   : > { %9355 = vmatpush3.bf16.msra.mxu1 %v10520_v50  ;;  %9266 = vmatprep.subr.bf16.mxu0 %v10235_v3 }
 0x127   : > { %9356 = vmatprep.subr.bf16.mxu1 %v10235_v3 }
 0x129   : > { %9268 = vmatpush3.bf16.msra.mxu0 %v10540_v55 }
 0x12a   : > { %9358 = vmatpush3.bf16.msra.mxu1 %v10544_v56  ;;  %9269 = vmatprep.subr.bf16.mxu0 %v10235_v3 }
 0x12b   : > { %9359 = vmatprep.subr.bf16.mxu1 %v10235_v3 }
 0x12d   : > { %9271 = vmatpush3.bf16.msra.mxu0 %v10560_v61 }
 0x12e   : > { %9361 = vmatpush3.bf16.msra.mxu1 %v10564_v62  ;;  %9272 = vmatprep.subr.bf16.mxu0 %v10235_v3 }
 0x12f   : > { %9362 = vmatprep.subr.bf16.mxu1 %v10235_v3 }
 0x131   : > { %9274 = vmatpush3.bf16.msra.mxu0 %v10580_v5 }
 0x132   : > { %9364 = vmatpush3.bf16.msra.mxu1 %v10584_v6  ;;  %9275 = vmatprep.subr.bf16.mxu0 %v10235_v3 }
 0x133   : > { %9365 = vmatprep.subr.bf16.mxu1 %v10235_v3 }
 0x135   : > { %9277 = vmatpush3.bf16.msra.mxu0 %v10600_v15 }
 0x136   : > { %9367 = vmatpush3.bf16.msra.mxu1 %v10604_v16  ;;  %9278 = vmatprep.subr.bf16.mxu0 %v10235_v3 }
 0x137   : > { %9368 = vmatprep.subr.bf16.mxu1 %v10235_v3 }
 0x138   : > { %7709 = vmatmul.mubr.msk.f32.vlgmr.msra.gmra.mrb[4].mxu0 %vm413_vm1, %v5946_v11 }
 0x139   : > { %9280 = vmatpush3.bf16.msra.mxu0 %v10621_v26  ;;  %7844 = vmatmul.mubr.msk.f32.vlgmr.msra.gmra.mrb[4].mxu1 %vm413_vm1, %v5946_v11  ;;  %v11258_v11 = vld [vmem:[%s10473_s13 + $0x1] sm:$0x7f] }
 0x13a   : > { %9370 = vmatpush3.bf16.msra.mxu1 %v10625_v27  ;;  %9281 = vmatprep.subr.bf16.mxu0 %v10235_v3 }
 0x13b   : > { %9371 = vmatprep.subr.bf16.mxu1 %v10235_v3  ;;  %7735 = vmatprep.mubr.msk.f32.mxu0 %vm10236_vm0, %v12721_v38 }
 0x13c   : > { %7870 = vmatprep.mubr.msk.f32.mxu1 %vm10236_vm0, %v12721_v38 }
 0x13d   : > { %9283 = vmatpush3.bf16.msra.mxu0 %v10643_v34 }
 0x13e   : > { %9373 = vmatpush3.bf16.msra.mxu1 %v10647_v35  ;;  %9284 = vmatprep.subr.bf16.mxu0 %v10235_v3 }
 0x13f   : > { %9374 = vmatprep.subr.bf16.mxu1 %v10235_v3 }
 0x141   : > { %9286 = vmatpush3.bf16.msra.mxu0 %v10667_v45 }
 0x142   : > { %9376 = vmatpush3.bf16.msra.mxu1 %v10671_v46  ;;  %9287 = vmatprep.subr.bf16.mxu0 %v10235_v3 }
 0x143   : > { %9377 = vmatprep.subr.bf16.mxu1 %v10235_v3 }
 0x145   : > { %9289 = vmatpush3.bf16.msra.mxu0 %v10687_v53 }
 0x146   : > { %9379 = vmatpush3.bf16.msra.mxu1 %v10691_v54  ;;  %9290 = vmatprep.subr.bf16.mxu0 %v10235_v3 }
 0x147   : > { %9380 = vmatprep.subr.bf16.mxu1 %v10235_v3 }
 0x149   : > { %9292 = vmatpush3.bf16.msra.mxu0 %v10707_v63 }
 0x14a   : > { %9382 = vmatpush3.bf16.msra.mxu1 %v10711_v0  ;;  %9293 = vmatprep.subr.bf16.mxu0 %v10235_v3 }
 0x14b   : > { %9383 = vmatprep.subr.bf16.mxu1 %v10235_v3 }
 0x14d   : > { %9295 = vmatpush3.bf16.msra.mxu0 %v10727_v10 }
 0x14e   : > { %9385 = vmatpush3.bf16.msra.mxu1 %v10731_v14  ;;  %9296 = vmatprep.subr.bf16.mxu0 %v10235_v3 }
 0x14f   : > { %9386 = vmatprep.subr.bf16.mxu1 %v10235_v3 }
 0x150   : > { %7736 = vmatmul.mubr.msk.f32.vlgmr.msra.gmra.mrb[4].mxu0 %vm413_vm1, %v11258_v11 }
 0x151   : > { %9298 = vmatpush3.bf16.msra.mxu0 %v10750_v28  ;;  %7871 = vmatmul.mubr.msk.f32.vlgmr.msra.gmra.mrb[4].mxu1 %vm413_vm1, %v11258_v11 }
 0x152   : > { %9388 = vmatpush3.bf16.msra.mxu1 %v10754_v29  ;;  %9299 = vmatprep.subr.bf16.mxu0 %v10235_v3 }
 0x153   : > { %9389 = vmatprep.subr.bf16.mxu1 %v10235_v3  ;;  %7762 = vmatprep.mubr.msk.f32.mxu0 %vm10236_vm0, %v12721_v38 }
 0x154   : > { %7897 = vmatprep.mubr.msk.f32.mxu1 %vm10236_vm0, %v12721_v38 }
 0x155   : > { %9301 = vmatpush3.bf16.msra.mxu0 %v10774_v40  ;;  %v11299_v40 = vld [vmem:[%s10473_s13 + $0x9] sm:$0x7f] }
 0x156   : > { %9391 = vmatpush3.bf16.msra.mxu1 %v10778_v41  ;;  %9302 = vmatprep.subr.bf16.mxu0 %v10235_v3 }
 0x157   : > { %9392 = vmatprep.subr.bf16.mxu1 %v10235_v3 }
 0x159   : > { %9304 = vmatpush3.bf16.msra.mxu0 %v10798_v57 }
 0x15a   : > { %9394 = vmatpush3.bf16.msra.mxu1 %v10802_v58  ;;  %9305 = vmatprep.subr.bf16.mxu0 %v10235_v3 }
 0x15b   : > { %9395 = vmatprep.subr.bf16.mxu1 %v10235_v3 }
 0x15d   : > { %9307 = vmatpush3.bf16.msra.mxu0 %v10818_v7 }
 0x15e   : > { %9397 = vmatpush3.bf16.msra.mxu1 %v10822_v9  ;;  %9308 = vmatprep.subr.bf16.mxu0 %v10235_v3 }
 0x15f   : > { %9398 = vmatprep.subr.bf16.mxu1 %v10235_v3 }
 0x161   : > { %9310 = vmatpush3.bf16.msra.mxu0 %v10838_v32 }
 0x162   : > { %9400 = vmatpush3.bf16.msra.mxu1 %v10842_v33  ;;  %9311 = vmatprep.subr.bf16.mxu0 %v10235_v3 }
 0x163   : > { %v11290_v58 = vpop.f32.mrb[0].mxu0  ;;  %9401 = vmatprep.subr.bf16.mxu1 %v10235_v3 }
 0x164   : > { %v11293_v57 = vpop.f32.mrb[0].mxu1  ;;  %v7251_v41 = vpop.f32.mrb[1].mxu0 }
 0x165   : > { %v1244_v9 = vmax.f32 %v11290_v58, %v11293_v57  ;;  %v7386_v7 = vpop.f32.mrb[1].mxu1  ;;  %9313 = vmatpush3.bf16.msra.mxu0 %v10858_v51  ;;  %v11334_v41 = vld [vmem:[%s10473_s13 + $0x11] sm:$0x7f] }
 0x166   : > { %9403 = vmatpush3.bf16.msra.mxu1 %v10862_v52  ;;  %9314 = vmatprep.subr.bf16.mxu0 %v10235_v3 }
 0x167   : > { %9404 = vmatprep.subr.bf16.mxu1 %v10235_v3 }
 0x168   : > { %7763 = vmatmul.mubr.msk.f32.vlgmr.msra.gmra.mrb[4].mxu0 %vm413_vm1, %v11299_v40 }
 0x169   : > { %9316 = vmatpush3.bf16.msra.mxu0 %v10881_v20  ;;  %7898 = vmatmul.mubr.msk.f32.vlgmr.msra.gmra.mrb[4].mxu1 %vm413_vm1, %v11299_v40 }
 0x16a   : > { %9406 = vmatpush3.bf16.msra.mxu1 %v12722_v42  ;;  %9317 = vmatprep.subr.bf16.mxu0 %v10235_v3 }
 0x16b   : > { %9407 = vmatprep.subr.bf16.mxu1 %v10235_v3  ;;  %7789 = vmatprep.mubr.msk.f32.mxu0 %vm10236_vm0, %v12721_v38 }
 0x16c   : > { %7924 = vmatprep.mubr.msk.f32.mxu1 %vm10236_vm0, %v12721_v38 }
 0x16d   : > { %9319 = vmatpush3.bf16.msra.mxu0 %v10905_v48 }
 0x16e   : > { %9409 = vmatpush3.bf16.msra.mxu1 %v12723_v23  ;;  %9320 = vmatprep.subr.bf16.mxu0 %v10235_v3 }
 0x16f   : > { %9410 = vmatprep.subr.bf16.mxu1 %v10235_v3 }
 0x171   : > { %9322 = vmatpush3.bf16.msra.mxu0 %v12724_v17 }
 0x172   : > { %9412 = vmatpush3.bf16.msra.mxu1 %v12725_v39  ;;  %9323 = vmatprep.subr.bf16.mxu0 %v10235_v3 }
 0x173   : > { %9413 = vmatprep.subr.bf16.mxu1 %v10235_v3 }
 0x175   : > { %9325 = vmatpush3.bf16.msra.mxu0 %v10949_v2 }
 0x176   : > { %9415 = vmatpush3.bf16.msra.mxu1 %v12726_v22  ;;  %9326 = vmatprep.subr.bf16.mxu0 %v10235_v3 }
 0x177   : > { %9416 = vmatprep.subr.bf16.mxu1 %v10235_v3 }
 0x179   : > { %9328 = vmatpush3.bf16.msra.mxu0 %v10969_v60 }
 0x17a   : > { %9418 = vmatpush3.bf16.msra.mxu1 %v10973_v1  ;;  %9329 = vmatprep.subr.bf16.mxu0 %v10235_v3 }
 0x17b   : > { %9419 = vmatprep.subr.bf16.mxu1 %v10235_v3 }
 0x17d   : > { %9331 = vmatpush3.bf16.msra.mxu0 %v10989_v21 }
 0x17e   : > { %9421 = vmatpush3.bf16.msra.mxu1 %v10993_v47  ;;  %9422 = vmatprep.subr.bf16.mxu0 %v10235_v3 }
 0x17f   : > { %9512 = vmatprep.subr.bf16.mxu1 %v10235_v3 }
 0x180   : > { %7790 = vmatmul.mubr.msk.f32.vlgmr.msra.gmra.mrb[4].mxu0 %vm413_vm1, %v11334_v41 }
 0x181   : > { %7925 = vmatmul.mubr.msk.f32.vlgmr.msra.gmra.mrb[4].mxu1 %vm413_vm1, %v11334_v41  ;;  %9424 = vmatpush3.bf16.msra.mxu0 %v10358_v4  ;;  %v12727_v4 = vld [vmem:[#allocation9_spill] sm:$0xff] }
 0x182   : > { %9514 = vmatpush3.bf16.msra.mxu1 %v10369_v8  ;;  %9425 = vmatprep.subr.bf16.mxu0 %v10235_v3  ;;  %v12728_v8 = vld [vmem:[#allocation10_spill] sm:$0xff] }
 0x183   : > { %9515 = vmatprep.subr.bf16.mxu1 %v10235_v3  ;;  %7951 = vmatprep.mubr.msk.f32.mxu0 %vm10236_vm0, %v12721_v38 }
 0x184   : > { %8086 = vmatprep.mubr.msk.f32.mxu1 %vm10236_vm0, %v12721_v38 }
 0x185   : > { %9427 = vmatpush3.bf16.msra.mxu0 %v10382_v12  ;;  %v12729_v12 = vld [vmem:[#allocation11_spill] sm:$0xff] }
 0x186   : > { %9517 = vmatpush3.bf16.msra.mxu1 %v10386_v13  ;;  %9428 = vmatprep.subr.bf16.mxu0 %v10235_v3  ;;  %v12730_v13 = vld [vmem:[#allocation12_spill] sm:$0xff] }
 0x187   : > { %9518 = vmatprep.subr.bf16.mxu1 %v10235_v3 }
 0x189   : > { %9430 = vmatpush3.bf16.msra.mxu0 %v10402_v18  ;;  %v12731_v18 = vld [vmem:[#allocation13_spill] sm:$0xff] }
 0x18a   : > { %9520 = vmatpush3.bf16.msra.mxu1 %v10406_v19  ;;  %9431 = vmatprep.subr.bf16.mxu0 %v10235_v3  ;;  %v12732_v19 = vld [vmem:[#allocation14_spill] sm:$0xff] }
 0x18b   : > { %9521 = vmatprep.subr.bf16.mxu1 %v10235_v3 }
 0x18d   : > { %9433 = vmatpush3.bf16.msra.mxu0 %v10423_v24 }
 0x18e   : > { %9523 = vmatpush3.bf16.msra.mxu1 %v10427_v25  ;;  %9434 = vmatprep.subr.bf16.mxu0 %v10235_v3 }
 0x18f   : > { %9524 = vmatprep.subr.bf16.mxu1 %v10235_v3 }
 0x191   : > { %9436 = vmatpush3.bf16.msra.mxu0 %v10444_v30 }
 0x192   : > { %9526 = vmatpush3.bf16.msra.mxu1 %v10448_v31  ;;  %9437 = vmatprep.subr.bf16.mxu0 %v10235_v3 }
 0x193   : > { %9527 = vmatprep.subr.bf16.mxu1 %v10235_v3 }
 0x195   : > { %9439 = vmatpush3.bf16.msra.mxu0 %v10464_v36  ;;  %v11469_v36 = vld [vmem:[%s12673_s2] ss:$0 sm:$0xff] }
 0x196   : > { %9529 = vmatpush3.bf16.msra.mxu1 %v10468_v37  ;;  %9440 = vmatprep.subr.bf16.mxu0 %v10235_v3 }
 0x197   : > { %9530 = vmatprep.subr.bf16.mxu1 %v10235_v3 }
 0x198   : > { %7952 = vmatmul.mubr.msk.f32.vlgmr.msra.gmra.mrb[6].mxu0 %vm413_vm1, %v11258_v11 }
 0x199   : > { %9442 = vmatpush3.bf16.msra.mxu0 %v10492_v43  ;;  %8087 = vmatmul.mubr.msk.f32.vlgmr.msra.gmra.mrb[6].mxu1 %vm413_vm1, %v11258_v11 }
 0x19a   : > { %9532 = vmatpush3.bf16.msra.mxu1 %v10496_v44  ;;  %9443 = vmatprep.subr.bf16.mxu0 %v10235_v3 }
 0x19b   : > { %9533 = vmatprep.subr.bf16.mxu1 %v10235_v3  ;;  %7978 = vmatprep.mubr.msk.f32.mxu0 %vm10236_vm0, %v12721_v38 }
 0x19c   : > { %8113 = vmatprep.mubr.msk.f32.mxu1 %vm10236_vm0, %v12721_v38 }
 0x19d   : > { %9445 = vmatpush3.bf16.msra.mxu0 %v10516_v49 }
 0x19e   : > { %9535 = vmatpush3.bf16.msra.mxu1 %v10520_v50  ;;  %9446 = vmatprep.subr.bf16.mxu0 %v10235_v3  ;;  %v6079_v50 = vld [vmem:[%s12674_s3 + $0xb0] sm:$0xff] }
 0x19f   : > { %9536 = vmatprep.subr.bf16.mxu1 %v10235_v3 }
 0x1a1   : > { %9448 = vmatpush3.bf16.msra.mxu0 %v10540_v55  ;;  %v6080_v55 = vld [vmem:[%s12674_s3 + $0xb8] sm:$0xff] }
 0x1a2   : > { %9538 = vmatpush3.bf16.msra.mxu1 %v10544_v56  ;;  %9449 = vmatprep.subr.bf16.mxu0 %v10235_v3  ;;  %v6144_v56 = vld [vmem:[%s12674_s3 + $0x108] sm:$0xff] }
 0x1a3   : > { %9539 = vmatprep.subr.bf16.mxu1 %v10235_v3 }
 0x1a5   : > { %9451 = vmatpush3.bf16.msra.mxu0 %v10560_v61  ;;  %v6145_v61 = vld [vmem:[%s12674_s3 + $0x110] sm:$0xff] }
 0x1a6   : > { %9541 = vmatpush3.bf16.msra.mxu1 %v10564_v62  ;;  %9452 = vmatprep.subr.bf16.mxu0 %v10235_v3  ;;  %v6072_v62 = vld [vmem:[%s10473_s13 + $0x19] sm:$0x7f] }
 0x1a7   : > { %9542 = vmatprep.subr.bf16.mxu1 %v10235_v3 }
 0x1a9   : > { %9454 = vmatpush3.bf16.msra.mxu0 %v10580_v5  ;;  %v11519_v5 = vpack.c.bf16 %v6080_v55, %v6079_v50  ;;  %v6138_v50 = vld [vmem:[%s12674_s3 + $0x80] sm:$0xff] }
 0x1aa   : > { %9544 = vmatpush3.bf16.msra.mxu1 %v10584_v6  ;;  %9455 = vmatprep.subr.bf16.mxu0 %v10235_v3  ;;  %v11523_v6 = vpack.c.bf16 %v6145_v61, %v6144_v56  ;;  %v3538_v61 = vld [vmem:[%s12674_s3 + $0x30] sm:$0xff] }
 0x1ab   : > { %9545 = vmatprep.subr.bf16.mxu1 %v10235_v3 }
 0x1ad   : > { %9457 = vmatpush3.bf16.msra.mxu0 %v10600_v15  ;;  %v6081_v15 = vld [vmem:[%s12674_s3 + $0xc0] sm:$0xff] }
 0x1ae   : > { %9547 = vmatpush3.bf16.msra.mxu1 %v10604_v16  ;;  %9458 = vmatprep.subr.bf16.mxu0 %v10235_v3  ;;  %v6082_v16 = vld [vmem:[%s12674_s3 + $0xc8] sm:$0xff] }
 0x1af   : > { %9548 = vmatprep.subr.bf16.mxu1 %v10235_v3 }
 0x1b0   : > { %7979 = vmatmul.mubr.msk.f32.vlgmr.msra.gmra.mrb[6].mxu0 %vm413_vm1, %v11192_v59 }
 0x1b1   : > { %9460 = vmatpush3.bf16.msra.mxu0 %v10621_v26  ;;  %8114 = vmatmul.mubr.msk.f32.vlgmr.msra.gmra.mrb[6].mxu1 %vm413_vm1, %v11192_v59  ;;  %v6146_v26 = vld [vmem:[%s12674_s3 + $0x118] sm:$0xff] }
 0x1b2   : > { %9550 = vmatpush3.bf16.msra.mxu1 %v10625_v27  ;;  %9461 = vmatprep.subr.bf16.mxu0 %v10235_v3  ;;  %v6147_v27 = vld [vmem:[%s12674_s3 + $0x120] sm:$0xff] }
 0x1b3   : > { %9551 = vmatprep.subr.bf16.mxu1 %v10235_v3  ;;  %8005 = vmatprep.mubr.msk.f32.mxu0 %vm10236_vm0, %v12721_v38 }
 0x1b4   : > { %8140 = vmatprep.mubr.msk.f32.mxu1 %vm10236_vm0, %v12721_v38 }
 0x1b5   : > { %9463 = vmatpush3.bf16.msra.mxu0 %v10643_v34  ;;  %v11541_v34 = vpack.c.bf16 %v6082_v16, %v6081_v15  ;;  %v6139_v15 = vld [vmem:[%s12674_s3 + $0x88] sm:$0xff]  ;;  %v6140_v16 = vld [vmem:[%s12674_s3 + $0x90] sm:$0xff] }
 0x1b6   : > { %9553 = vmatpush3.bf16.msra.mxu1 %v10647_v35  ;;  %9464 = vmatprep.subr.bf16.mxu0 %v10235_v3  ;;  %v11545_v35 = vpack.c.bf16 %v6147_v27, %v6146_v26  ;;  %v11716_v27 = vpack.c.bf16 %v6140_v16, %v6139_v15  ;;  %v6107_v15 = vld [vmem:[%s12674_s3 + $0x210] sm:$0xff]  ;;  %v6108_v16 = vld [vmem:[%s12674_s3 + $0x218] sm:$0xff] }
 0x1b7   : > { %9554 = vmatprep.subr.bf16.mxu1 %v10235_v3 }
 0x1b9   : > { %9466 = vmatpush3.bf16.msra.mxu0 %v10667_v45  ;;  %v6083_v45 = vld [vmem:[%s12674_s3 + $0xd0] sm:$0xff] }
 0x1ba   : > { %9556 = vmatpush3.bf16.msra.mxu1 %v10671_v46  ;;  %9467 = vmatprep.subr.bf16.mxu0 %v10235_v3  ;;  %v6084_v46 = vld [vmem:[%s12674_s3 + $0xd8] sm:$0xff] }
 0x1bb   : > { %9557 = vmatprep.subr.bf16.mxu1 %v10235_v3 }
 0x1bd   : > { %9469 = vmatpush3.bf16.msra.mxu0 %v10687_v53  ;;  %v6148_v53 = vld [vmem:[%s12674_s3 + $0x128] sm:$0xff] }
 0x1be   : > { %9559 = vmatpush3.bf16.msra.mxu1 %v10691_v54  ;;  %9470 = vmatprep.subr.bf16.mxu0 %v10235_v3  ;;  %v11565_v54 = vpack.c.bf16 %v6084_v46, %v6083_v45  ;;  %v3540_v45 = vld [vmem:[%s12674_s3 + $0x40] sm:$0xff]  ;;  %v3541_v46 = vld [vmem:[%s12674_s3 + $0x48] sm:$0xff] }
 0x1bf   : > { %9560 = vmatprep.subr.bf16.mxu1 %v10235_v3 }
 0x1c1   : > { %9472 = vmatpush3.bf16.msra.mxu0 %v10707_v63  ;;  %v6149_v63 = vld [vmem:[%s12674_s3 + $0x130] sm:$0xff] }
 0x1c2   : > { %9562 = vmatpush3.bf16.msra.mxu1 %v10711_v0  ;;  %9473 = vmatprep.subr.bf16.mxu0 %v10235_v3  ;;  %v11570_v0 = vpack.c.bf16 %v6149_v63, %v6148_v53  ;;  %v6141_v53 = vld [vmem:[%s12674_s3 + $0x98] sm:$0xff]  ;;  %v6142_v63 = vld [vmem:[%s12674_s3 + $0xa0] sm:$0xff] }
 0x1c3   : > { %9563 = vmatprep.subr.bf16.mxu1 %v10235_v3 }
 0x1c5   : > { %9475 = vmatpush3.bf16.msra.mxu0 %v10727_v10  ;;  %v6085_v10 = vld [vmem:[%s12674_s3 + $0xe0] sm:$0xff] }
 0x1c6   : > { %9565 = vmatpush3.bf16.msra.mxu1 %v10731_v14  ;;  %9476 = vmatprep.subr.bf16.mxu0 %v10235_v3  ;;  %v6086_v14 = vld [vmem:[%s12674_s3 + $0xe8] sm:$0xff] }
 0x1c7   : > { %9566 = vmatprep.subr.bf16.mxu1 %v10235_v3 }
 0x1c8   : > { %8006 = vmatmul.mubr.msk.f32.vlgmr.msra.gmra.mrb[6].mxu0 %vm413_vm1, %v11299_v40 }
 0x1c9   : > { %9478 = vmatpush3.bf16.msra.mxu0 %v10750_v28  ;;  %8141 = vmatmul.mubr.msk.f32.vlgmr.msra.gmra.mrb[6].mxu1 %vm413_vm1, %v11299_v40  ;;  %v6150_v28 = vld [vmem:[%s12674_s3 + $0x138] sm:$0xff]  ;;  %v6151_v40 = vld [vmem:[%s12674_s3 + $0x140] sm:$0xff] }
 0x1ca   : > { %9568 = vmatpush3.bf16.msra.mxu1 %v10754_v29  ;;  %9479 = vmatprep.subr.bf16.mxu0 %v10235_v3  ;;  %v11585_v29 = vpack.c.bf16 %v6086_v14, %v6085_v10  ;;  %v11590_v57 = vpack.c.bf16 %v6151_v40, %v6150_v28  ;;  %v11734_v10 = vpack.c.bf16 %v3541_v46, %v3540_v45  ;;  %v6094_v28 = vld [vmem:[%s12674_s3 + $0x160] sm:$0xff]  ;;  %v6095_v40 = vld [vmem:[%s12674_s3 + $0x168] sm:$0xff]  ;;  %v6173_v46 = vld [vmem:[%s12674_s3 + $0x270] sm:$0xff] }
 0x1cb   : > { %9569 = vmatprep.subr.bf16.mxu1 %v10235_v3  ;;  %8032 = vmatprep.mubr.msk.f32.mxu0 %vm10236_vm0, %v12721_v38  ;;  %v11736_v14 = vpack.c.bf16 %v6142_v63, %v6141_v53  ;;  %v6172_v45 = vld [vmem:[%s12674_s3 + $0x268] sm:$0xff]  ;;  %v11881_v53 = vld [vmem:[%s12674_s3 + $0x1b0] sm:$0xf] }
 0x1cc   : > { %8167 = vmatprep.mubr.msk.f32.mxu1 %vm10236_vm0, %v12721_v38  ;;  %v11886_v63 = vld [vmem:[%s12674_s3 + $0x208] sm:$0xf] }
 0x1cd   : > { %9481 = vmatpush3.bf16.msra.mxu0 %v12727_v4  ;;  %v3533_v4 = vld [vmem:[%s12674_s3 + $0x8] sm:$0xff] }
 0x1ce   : > { %9571 = vmatpush3.bf16.msra.mxu1 %v12728_v8  ;;  %9482 = vmatprep.subr.bf16.mxu0 %v10235_v3  ;;  %v6133_v8 = vld [vmem:[%s12674_s3 + $0x58] sm:$0xff] }
 0x1cf   : > { %9572 = vmatprep.subr.bf16.mxu1 %v10235_v3 }
 0x1d1   : > { %9484 = vmatpush3.bf16.msra.mxu0 %v12729_v12  ;;  %v6134_v12 = vld [vmem:[%s12674_s3 + $0x60] sm:$0xff] }
 0x1d2   : > { %9574 = vmatpush3.bf16.msra.mxu1 %v12730_v13  ;;  %9485 = vmatprep.subr.bf16.mxu0 %v10235_v3 }
 0x1d3   : > { %9575 = vmatprep.subr.bf16.mxu1 %v10235_v3 }
 0x1d5   : > { %9487 = vmatpush3.bf16.msra.mxu0 %v12731_v18  ;;  %v11648_v18 = vpack.c.bf16 %v6134_v12, %v6133_v8  ;;  %v6100_v8 = vld [vmem:[%s12674_s3 + $0x190] sm:$0xff]  ;;  %v6101_v12 = vld [vmem:[%s12674_s3 + $0x198] sm:$0xff] }
 0x1d6   : > { %9577 = vmatpush3.bf16.msra.mxu1 %v12732_v19  ;;  %9488 = vmatprep.subr.bf16.mxu0 %v10235_v3  ;;  %v3534_v19 = vld [vmem:[%s12674_s3 + $0x10] sm:$0xff] }
 0x1d7   : > { %9578 = vmatprep.subr.bf16.mxu1 %v10235_v3 }
 0x1d9   : > { %9490 = vmatpush3.bf16.msra.mxu0 %v10838_v32  ;;  %v6087_v32 = vld [vmem:[%s12674_s3 + $0xf0] sm:$0xff] }
 0x1da   : > { %9580 = vmatpush3.bf16.msra.mxu1 %v10842_v33  ;;  %9491 = vmatprep.subr.bf16.mxu0 %v10235_v3  ;;  %v6088_v33 = vld [vmem:[%s12674_s3 + $0xf8] sm:$0xff] }
 0x1db   : > { %v1597_v24 = vpop.f32.mrb[2].mxu0  ;;  %9581 = vmatprep.subr.bf16.mxu1 %v10235_v3 }
 0x1dc   : > { %v1602_v25 = vmax.f32 %v1244_v9, %v1597_v24  ;;  %v1951_v30 = vpop.f32.mrb[2].mxu1  ;;  %v7521_v31 = vpop.f32.mrb[3].mxu0  ;;  %v3535_v24 = vld [vmem:[%s12674_s3 + $0x18] sm:$0xff] }
 0x1dd   : > { %v7656_v37 = vpop.f32.mrb[3].mxu1  ;;  %9493 = vmatpush3.bf16.msra.mxu0 %v10858_v51  ;;  %v6152_v51 = vld [vmem:[%s12674_s3 + $0x148] sm:$0xff] }
 0x1de   : > { %v1956_v43 = vmax.f32 %v1602_v25, %v1951_v30  ;;  %9583 = vmatpush3.bf16.msra.mxu1 %v10862_v52  ;;  %9494 = vmatprep.subr.bf16.mxu0 %v10235_v3  ;;  %v6135_v25 = vld [vmem:[%s12674_s3 + $0x68] sm:$0xff]  ;;  %v6136_v30 = vld [vmem:[%s12674_s3 + $0x70] sm:$0xff] }
 0x1df   : > { %9584 = vmatprep.subr.bf16.mxu1 %v10235_v3  ;;  %v11672_v37 = vpack.c.bf16 %v6136_v30, %v6135_v25  ;;  %v11836_v25 = vpack.c.bf16 %v6101_v12, %v6100_v8 }
 0x1e0   : > { %v1963_v44 = vadd.f32 %v11469_v36, %v1956_v43  ;;  %8033 = vmatmul.mubr.msk.f32.vlgmr.msra.gmra.mrb[6].mxu0 %vm413_vm1, %v11334_v41  ;;  %v3536_v43 = vld [vmem:[%s12674_s3 + $0x20] sm:$0xff] }
 0x1e1   : > { %9496 = vmatpush3.bf16.msra.mxu0 %v10881_v20  ;;  %8168 = vmatmul.mubr.msk.f32.vlgmr.msra.gmra.mrb[6].mxu1 %vm413_vm1, %v11334_v41  ;;  %v3532_v41 = vld [vmem:[%s12674_s3] sm:$0xff] }
 0x1e2   : > { %v1964_v49 = vmax.f32 %v1963_v44, 0.0  ;;  %9586 = vmatpush3.bf16.msra.mxu1 %v12722_v42  ;;  %9497 = vmatprep.subr.bf16.mxu0 %v10235_v3  ;;  %v11646_v13 = vpack.c.bf16 %v3533_v4, %v3532_v41  ;;  %v3537_v44 = vld [vmem:[%s12674_s3 + $0x28] sm:$0xff] }
 0x1e3   : > { %9587 = vmatprep.subr.bf16.mxu1 %v10235_v3  ;;  %8059 = vmatprep.mubr.msk.f32.mxu0 %vm10236_vm0, %v12721_v38  ;;  %v11694_v55 = vpack.c.bf16 %v3537_v44, %v3536_v43  ;;  %v6102_v43 = vld [vmem:[%s12674_s3 + $0x1a0] sm:$0xff]  ;;  %v6103_v44 = vld [vmem:[%s12674_s3 + $0x1a8] sm:$0xff] }
 0x1e4   : > { %1966 = vst.msk [vmem:[#allocation2] sm:$0x7f] %vm1965_vm2, %v1964_v49  ;;  %8194 = vmatprep.mubr.msk.f32.mxu1 %vm10236_vm0, %v12721_v38  ;;  %v6137_v49 = vld [vmem:[%s12674_s3 + $0x78] sm:$0xff] }
 0x1e5   : > { %9499 = vmatpush3.bf16.msra.mxu0 %v10905_v48  ;;  %v11605_v48 = vpack.c.bf16 %v6088_v33, %v6087_v32  ;;  %v11696_v56 = vpack.c.bf16 %v6138_v50, %v6137_v49  ;;  %v11764_v32 = vld [vmem:[%s12674_s3 + $0xa8] sm:$0xf]  ;;  %v6167_v49 = vld [vmem:[%s12674_s3 + $0x1f8] sm:$0xff]  ;;  %v6168_v50 = vld [vmem:[%s12674_s3 + $0x200] sm:$0xff] }
 0x1e6   : > { %9589 = vmatpush3.bf16.msra.mxu1 %v12723_v23  ;;  %9500 = vmatprep.subr.bf16.mxu0 %v10235_v3 }
 0x1e7   : > { %9590 = vmatprep.subr.bf16.mxu1 %v10235_v3 }
 0x1e9   : > { %9502 = vmatpush3.bf16.msra.mxu0 %v12724_v17 }
 0x1ea   : > { %9592 = vmatpush3.bf16.msra.mxu1 %v12725_v39  ;;  %9503 = vmatprep.subr.bf16.mxu0 %v10235_v3 }
 0x1eb   : > { %9593 = vmatprep.subr.bf16.mxu1 %v10235_v3  ;;  %v3531_v33 = vld [vmem:[#allocation2] sm:$0x1f] }
 0x1ed   : > { %9505 = vmatpush3.bf16.msra.mxu0 %v10949_v2  ;;  %v6153_v2 = vld [vmem:[%s12674_s3 + $0x150] sm:$0xff] }
 0x1ee   : > { %9595 = vmatpush3.bf16.msra.mxu1 %v12726_v22  ;;  %9506 = vmatprep.subr.bf16.mxu0 %v10235_v3 }
 0x1ef   : > { %9596 = vmatprep.subr.bf16.mxu1 %v10235_v3 }
 0x1f1   : > { %9508 = vmatpush3.bf16.msra.mxu0 %v10969_v60  ;;  %v11610_v60 = vpack.c.bf16 %v6153_v2, %v6152_v51  ;;  %v11766_v51 = vpack.c.bf16 %v6095_v40, %v6094_v28  ;;  %v6097_v2 = vld [vmem:[%s12674_s3 + $0x178] sm:$0xff]  ;;  %v11888_v28 = vld [vmem:[#allocation2 + $0x1] sm:$0x1f]  ;;  %v11890_v40 = vpack.c.bf16 %v6108_v16, %v6107_v15  ;;  %v6115_v15 = vld [vmem:[%s12674_s3 + $0x250] sm:$0xff] }
 0x1f2   : > { %9598 = vmatpush3.bf16.msra.mxu1 %v10973_v1  ;;  %9509 = vmatprep.subr.bf16.mxu0 %v10235_v3  ;;  %v11618_v1 = vld [vmem:[%s12674_s3 + $0x100] sm:$0xf]  ;;  %v6116_v16 = vld [vmem:[%s12674_s3 + $0x258] sm:$0xff] }
 0x1f3   : > { %9599 = vmatprep.subr.bf16.mxu1 %v10235_v3 }
 0x1f5   : > { %9511 = vmatpush3.bf16.msra.mxu0 %v10989_v21  ;;  %v11624_v21 = vld [vmem:[%s12674_s3 + $0x158] sm:$0xf] }
 0x1f6   : > { %9601 = vmatpush3.bf16.msra.mxu1 %v10993_v47  ;;  %9602 = vmatprep.subr.bf16.mxu0 %v10235_v3 }
 0x1f7   : > { %9677 = vmatprep.subr.bf16.mxu1 %v10235_v3 }
 0x1f8   : > { %8060 = vmatmul.mubr.msk.f32.vlgmr.msra.gmra.mrb[6].mxu0 %vm413_vm1, %v6072_v62 }
 0x1f9   : > { %8195 = vmatmul.mubr.msk.f32.vlgmr.msra.gmra.mrb[6].mxu1 %vm413_vm1, %v6072_v62  ;;  %9604 = vmatpush3.bf16.msra.mxu0 %v11519_v5  ;;  %v3539_v62 = vld [vmem:[%s12674_s3 + $0x38] sm:$0xff] }
 0x1fa   : > { %9679 = vmatpush3.bf16.msra.mxu1 %v11523_v6  ;;  %9605 = vmatprep.subr.bf16.mxu0 %v10235_v3  ;;  %v11714_v26 = vpack.c.bf16 %v3539_v62, %v3538_v61  ;;  %v11856_v61 = vpack.c.bf16 %v6103_v44, %v6102_v43  ;;  %v11858_v62 = vpack.c.bf16 %v6168_v50, %v6167_v49  ;;  %v6178_v43 = vld [vmem:[%s12674_s3 + $0x298] sm:$0xff]  ;;  %v6179_v44 = vld [vmem:[%s12674_s3 + $0x2a0] sm:$0xff] }
 0x1fb   : > { %9680 = vmatprep.subr.bf16.mxu1 %v10235_v3  ;;  %8219 = vmatprep.mubr.msk.f32.mxu0 %vm10236_vm0, %v12721_v38  ;;  %v11964_v50 = vpack.c.bf16 %v6179_v44, %v6178_v43  ;;  %v6122_v43 = vld [vmem:[%s12674_s3 + $0x2d0] sm:$0xff]  ;;  %v6123_v44 = vld [vmem:[%s12674_s3 + $0x2d8] sm:$0xff] }
 0x1fc   : > { %8344 = vmatprep.mubr.msk.f32.mxu1 %vm10236_vm0, %v12721_v38 }
 0x1fd   : > { %9607 = vmatpush3.bf16.msra.mxu0 %v11541_v34 }
 0x1fe   : > { %9682 = vmatpush3.bf16.msra.mxu1 %v11545_v35  ;;  %9608 = vmatprep.subr.bf16.mxu0 %v10235_v3 }
 0x1ff   : > { %9683 = vmatprep.subr.bf16.mxu1 %v10235_v3 }
 0x201   : > { %9610 = vmatpush3.bf16.msra.mxu0 %v11565_v54 }
 0x202   : > { %9685 = vmatpush3.bf16.msra.mxu1 %v11570_v0  ;;  %9611 = vmatprep.subr.bf16.mxu0 %v10235_v3 }
 0x203   : > { %9686 = vmatprep.subr.bf16.mxu1 %v10235_v3 }
 0x205   : > { %9613 = vmatpush3.bf16.msra.mxu0 %v11585_v29 }
 0x206   : > { %9688 = vmatpush3.bf16.msra.mxu1 %v11590_v57  ;;  %9614 = vmatprep.subr.bf16.mxu0 %v10235_v3 }
 0x207   : > { %9689 = vmatprep.subr.bf16.mxu1 %v10235_v3 }
 0x209   : > { %9616 = vmatpush3.bf16.msra.mxu0 %v11605_v48 }
 0x20a   : > { %9691 = vmatpush3.bf16.msra.mxu1 %v11610_v60  ;;  %8217 = vmatprep.subr.mxu0 %v12721_v38 }
 0x20b   : > { %8342 = vmatprep.subr.mxu1 %v12721_v38 }
 0x20d   : > { %8218 = vmatpush3.msk.msra.mxu0 %vm3560_vm3, %v11618_v1 }
 0x20e   : > { %8343 = vmatpush3.msk.msra.mxu1 %vm3560_vm3, %v11624_v21  ;;  %9617 = vmatprep.subr.bf16.mxu0 %v10235_v3 }
 0x20f   : > { %9692 = vmatprep.subr.bf16.mxu1 %v10235_v3 }
 0x253   : > { %v2395_v58 = vpop.f32.mrb[4].mxu0 }
 0x254   : > { %v2808_v7 = vpop.f32.mrb[4].mxu1  ;;  %v7791_v9 = vpop.f32.mrb[5].mxu0 }
 0x255   : > { %v2813_v52 = vmax.f32 %v2395_v58, %v2808_v7  ;;  %v7926_v20 = vpop.f32.mrb[5].mxu1  ;;  %v6159_v58 = vld [vmem:[%s12674_s3 + $0x1b8] sm:$0xff]  ;;  %v6160_v7 = vld [vmem:[%s12674_s3 + $0x1c0] sm:$0xff]  ;;  %v11759_v9 = vld [vmem:[%s12674_s3 + $0x50] sm:$0xf] }
 0x256   : > { %v6096_v20 = vld [vmem:[%s12674_s3 + $0x170] sm:$0xff] }
 0x2cb   : > { %v3166_v47 = vpop.f32.mrb[6].mxu0 }
 0x2cc   : > { %v3171_v42 = vmax.f32 %v2813_v52, %v3166_v47  ;;  %v3520_v23 = vpop.f32.mrb[6].mxu1  ;;  %v8061_v17 = vpop.f32.mrb[7].mxu0  ;;  %v11768_v52 = vpack.c.bf16 %v6160_v7, %v6159_v58  ;;  %v6161_v47 = vld [vmem:[%s12674_s3 + $0x1c8] sm:$0xff]  ;;  %v11892_v58 = vpack.c.bf16 %v6173_v46, %v6172_v45  ;;  %v6109_v7 = vld [vmem:[%s12674_s3 + $0x220] sm:$0xff]  ;;  %v6181_v46 = vld [vmem:[%s12674_s3 + $0x2b0] sm:$0xff] }
 0x2cd   : > { %v8196_v39 = vpop.f32.mrb[7].mxu1  ;;  %v6180_v45 = vld [vmem:[%s12674_s3 + $0x2a8] sm:$0xff] }
 0x2ce   : > { %v3525_v22 = vmax.f32 %v3171_v42, %v3520_v23  ;;  %v6162_v42 = vld [vmem:[%s12674_s3 + $0x1d0] sm:$0xff]  ;;  %v11792_v23 = vpack.c.bf16 %v6097_v2, %v6096_v20  ;;  %v6098_v39 = vld [vmem:[%s12674_s3 + $0x180] sm:$0xff]  ;;  %v6174_v20 = vld [vmem:[%s12674_s3 + $0x278] sm:$0xff] }
 0x2cf   : > { %v11794_v17 = vpack.c.bf16 %v6162_v42, %v6161_v47  ;;  %v6175_v2 = vld [vmem:[%s12674_s3 + $0x280] sm:$0xff] }
 0x2d0   : > { %v3526_v59 = vadd.f32 %v11469_v36, %v3525_v22  ;;  %v11670_v36 = vpack.c.bf16 %v3535_v24, %v3534_v19  ;;  %v6099_v22 = vld [vmem:[%s12674_s3 + $0x188] sm:$0xff]  ;;  %v6166_v24 = vld [vmem:[%s12674_s3 + $0x1f0] sm:$0xff]  ;;  %v11920_v42 = vpack.c.bf16 %v6175_v2, %v6174_v20  ;;  %v6120_v20 = vld [vmem:[%s12674_s3 + $0x2c0] sm:$0xff] }
 0x2d1   : > { %v11816_v41 = vpack.c.bf16 %v6099_v22, %v6098_v39  ;;  %v6165_v19 = vld [vmem:[%s12674_s3 + $0x1e8] sm:$0xff]  ;;  %v6111_v39 = vld [vmem:[%s12674_s3 + $0x230] sm:$0xff]  ;;  %v6112_v22 = vld [vmem:[%s12674_s3 + $0x238] sm:$0xff] }
 0x2d2   : > { %v3527_v11 = vmax.f32 %v3526_v59, 0.0  ;;  %v6163_v59 = vld [vmem:[%s12674_s3 + $0x1d8] sm:$0xff]  ;;  %v11838_v30 = vpack.c.bf16 %v6166_v24, %v6165_v19  ;;  %v11942_v8 = vpack.c.bf16 %v6112_v22, %v6111_v39  ;;  %v6113_v19 = vld [vmem:[%s12674_s3 + $0x240] sm:$0xff]  ;;  %v6114_v24 = vld [vmem:[%s12674_s3 + $0x248] sm:$0xff] }
 0x2d3   : > { %v11962_v49 = vpack.c.bf16 %v6114_v24, %v6113_v19  ;;  %v6121_v2 = vld [vmem:[%s12674_s3 + $0x2c8] sm:$0xff]  ;;  %v6185_v39 = vld [vmem:[%s12674_s3 + $0x318] sm:$0xff]  ;;  %v6186_v22 = vld [vmem:[%s12674_s3 + $0x320] sm:$0xff] }
 0x2d4   : > { %3529 = vst.msk [vmem:[#allocation2 + $0x8] sm:$0x7f] %vm1965_vm2, %v3527_v11  ;;  %v6164_v11 = vld [vmem:[%s12674_s3 + $0x1e0] sm:$0xff]  ;;  %v12014_v19 = vpack.c.bf16 %v6121_v2, %v6120_v20  ;;  %v12016_v24 = vpack.c.bf16 %v6186_v22, %v6185_v39  ;;  %v6125_v39 = vld [vmem:[%s12674_s3 + $0x2e8] sm:$0xff]  ;;  %v6189_v22 = vld [vmem:[%s12674_s3 + $0x338] sm:$0xff] }
 0x2d5   : > { %v11818_v4 = vpack.c.bf16 %v6164_v11, %v6163_v59  ;;  %v6176_v59 = vld [vmem:[%s12674_s3 + $0x288] sm:$0xff]  ;;  %v6177_v11 = vld [vmem:[%s12674_s3 + $0x290] sm:$0xff]  ;;  %v6124_v2 = vld [vmem:[%s12674_s3 + $0x2e0] sm:$0xff] }
 0x2d6   : > { %v11944_v12 = vpack.c.bf16 %v6177_v11, %v6176_v59  ;;  %v12007_v59 = vld [vmem:[%s12674_s3 + $0x260] sm:$0xf]  ;;  %v12012_v11 = vld [vmem:[%s12674_s3 + $0x2b8] sm:$0xf]  ;;  %12733 = vst [vmem:[#allocation15_spill] sm:$0xff] %v12016_v24 }
 0x2db   : > { %v11662_v31 = vld [vmem:[#allocation2 + $0x8] sm:$0x1f] }
 0x2dc   : > { %8220 = vmatmul.mubr.msk.f32.vlgmr.msra.gmra.mrb[8].mxu0 %vm3556_vm4, %v11662_v31  ;;  %8345 = vmatmul.mubr.msk.f32.vlgmr.msra.gmra.mrb[8].mxu1 %vm3556_vm4, %v11662_v31 }
 0x2dd   : > { %9619 = vmatpush3.bf16.msra.mxu0 %v11646_v13  ;;  %9694 = vmatpush3.bf16.msra.mxu1 %v11648_v18 }
 0x2de   : > { %9620 = vmatprep.subr.bf16.mxu0 %v10235_v3  ;;  %9695 = vmatprep.subr.bf16.mxu1 %v10235_v3 }
 0x2df   : > { %8244 = vmatprep.mubr.msk.f32.mxu0 %vm10236_vm0, %v12721_v38  ;;  %8369 = vmatprep.mubr.msk.f32.mxu1 %vm10236_vm0, %v12721_v38 }
 0x2e1   : > { %9622 = vmatpush3.bf16.msra.mxu0 %v11670_v36  ;;  %9697 = vmatpush3.bf16.msra.mxu1 %v11672_v37 }
 0x2e2   : > { %9623 = vmatprep.subr.bf16.mxu0 %v10235_v3  ;;  %9698 = vmatprep.subr.bf16.mxu1 %v10235_v3 }
 0x2e5   : > { %9625 = vmatpush3.bf16.msra.mxu0 %v11694_v55  ;;  %9700 = vmatpush3.bf16.msra.mxu1 %v11696_v56 }
 0x2e6   : > { %9626 = vmatprep.subr.bf16.mxu0 %v10235_v3  ;;  %9701 = vmatprep.subr.bf16.mxu1 %v10235_v3 }
 0x2e9   : > { %9628 = vmatpush3.bf16.msra.mxu0 %v11714_v26  ;;  %9703 = vmatpush3.bf16.msra.mxu1 %v11716_v27 }
 0x2ea   : > { %9629 = vmatprep.subr.bf16.mxu0 %v10235_v3  ;;  %9704 = vmatprep.subr.bf16.mxu1 %v10235_v3 }
 0x2ed   : > { %9631 = vmatpush3.bf16.msra.mxu0 %v11734_v10  ;;  %9706 = vmatpush3.bf16.msra.mxu1 %v11736_v14 }
 0x2ee   : > { %8242 = vmatprep.subr.mxu0 %v12721_v38  ;;  %8367 = vmatprep.subr.mxu1 %v12721_v38 }
 0x2f1   : > { %8243 = vmatpush3.msk.msra.mxu0 %vm3560_vm3, %v11759_v9  ;;  %8368 = vmatpush3.msk.msra.mxu1 %vm3560_vm3, %v11764_v32 }
 0x2f2   : > { %8245 = vmatmul.mubr.msk.f32.vlgmr.msra.gmra.mrb[8].mxu0 %vm3556_vm4, %v3531_v33  ;;  %9632 = vmatprep.subr.bf16.mxu0 %v10235_v3 }
 0x2f3   : > { %8370 = vmatmul.mubr.msk.f32.vlgmr.msra.gmra.mrb[8].mxu1 %vm3556_vm4, %v3531_v33  ;;  %9707 = vmatprep.subr.bf16.mxu1 %v10235_v3  ;;  %v6110_v33 = vld [vmem:[%s12674_s3 + $0x228] sm:$0xff] }
 0x2f4   : > { %9634 = vmatpush3.bf16.msra.mxu0 %v11766_v51  ;;  %9709 = vmatpush3.bf16.msra.mxu1 %v11768_v52  ;;  %v11918_v47 = vpack.c.bf16 %v6110_v33, %v6109_v7  ;;  %v11982_v7 = vpack.c.bf16 %v6116_v16, %v6115_v15  ;;  %v11984_v33 = vpack.c.bf16 %v6181_v46, %v6180_v45  ;;  %v12028_v15 = vld [vmem:[#allocation2 + $0x9] sm:$0x1f]  ;;  %v6188_v45 = vld [vmem:[%s12674_s3 + $0x330] sm:$0xff] }
 0x2f5   : > { %9635 = vmatprep.subr.bf16.mxu0 %v10235_v3  ;;  %9710 = vmatprep.subr.bf16.mxu1 %v10235_v3  ;;  %v6187_v16 = vld [vmem:[%s12674_s3 + $0x328] sm:$0xff]  ;;  %v12044_v46 = vpack.c.bf16 %v6123_v44, %v6122_v43  ;;  %v6190_v43 = vld [vmem:[%s12674_s3 + $0x340] sm:$0xff]  ;;  %v12068_v44 = vpack.c.bf16 %v6125_v39, %v6124_v2  ;;  %v6192_v2 = vld [vmem:[%s12674_s3 + $0x350] sm:$0xff] }
 0x2f6   : > { %8269 = vmatprep.mubr.msk.f32.mxu0 %vm10236_vm0, %v12721_v38  ;;  %8394 = vmatprep.mubr.msk.f32.mxu1 %vm10236_vm0, %v12721_v38  ;;  %v12046_v20 = vpack.c.bf16 %v6188_v45, %v6187_v16  ;;  %v12070_v16 = vpack.c.bf16 %v6190_v43, %v6189_v22  ;;  %v6126_v45 = vld [vmem:[%s12674_s3 + $0x2f0] sm:$0xff]  ;;  %v6128_v43 = vld [vmem:[%s12674_s3 + $0x300] sm:$0xff] }
 0x2f7   : > { %12734 = vst [vmem:[#allocation16_spill] sm:$0xff] %v12044_v46 }
 0x2f8   : > { %9637 = vmatpush3.bf16.msra.mxu0 %v11792_v23  ;;  %9712 = vmatpush3.bf16.msra.mxu1 %v11794_v17  ;;  %12735 = vst [vmem:[#allocation17_spill] sm:$0xff] %v12046_v20  ;;  %12736 = vst [vmem:[#allocation18_spill] sm:$0xff] %v12070_v16 }
 0x2f9   : > { %9638 = vmatprep.subr.bf16.mxu0 %v10235_v3  ;;  %9713 = vmatprep.subr.bf16.mxu1 %v10235_v3 }
 0x2fc   : > { %9640 = vmatpush3.bf16.msra.mxu0 %v11816_v41  ;;  %9715 = vmatpush3.bf16.msra.mxu1 %v11818_v4 }
 0x2fd   : > { %9641 = vmatprep.subr.bf16.mxu0 %v10235_v3  ;;  %9716 = vmatprep.subr.bf16.mxu1 %v10235_v3 }
 0x300   : > { %9643 = vmatpush3.bf16.msra.mxu0 %v11836_v25  ;;  %9718 = vmatpush3.bf16.msra.mxu1 %v11838_v30 }
 0x301   : > { %9644 = vmatprep.subr.bf16.mxu0 %v10235_v3  ;;  %9719 = vmatprep.subr.bf16.mxu1 %v10235_v3 }
 0x304   : > { %9646 = vmatpush3.bf16.msra.mxu0 %v11856_v61  ;;  %9721 = vmatpush3.bf16.msra.mxu1 %v11858_v62 }
 0x305   : > { %8267 = vmatprep.subr.mxu0 %v12721_v38  ;;  %8392 = vmatprep.subr.mxu1 %v12721_v38 }
 0x308   : > { %8268 = vmatpush3.msk.msra.mxu0 %vm3560_vm3, %v11881_v53  ;;  %8393 = vmatpush3.msk.msra.mxu1 %vm3560_vm3, %v11886_v63 }
 0x309   : > { %8270 = vmatmul.mubr.msk.f32.vlgmr.msra.gmra.mrb[8].mxu0 %vm3556_vm4, %v11888_v28  ;;  %9647 = vmatprep.subr.bf16.mxu0 %v10235_v3 }
 0x30a   : > { %8395 = vmatmul.mubr.msk.f32.vlgmr.msra.gmra.mrb[8].mxu1 %vm3556_vm4, %v11888_v28  ;;  %9722 = vmatprep.subr.bf16.mxu1 %v10235_v3 }
 0x30b   : > { %9649 = vmatpush3.bf16.msra.mxu0 %v11890_v40  ;;  %9724 = vmatpush3.bf16.msra.mxu1 %v11892_v58 }
 0x30c   : > { %9650 = vmatprep.subr.bf16.mxu0 %v10235_v3  ;;  %9725 = vmatprep.subr.bf16.mxu1 %v10235_v3 }
 0x30d   : > { %8294 = vmatprep.mubr.msk.f32.mxu0 %vm10236_vm0, %v12721_v38  ;;  %8419 = vmatprep.mubr.msk.f32.mxu1 %vm10236_vm0, %v12721_v38 }
 0x30f   : > { %9652 = vmatpush3.bf16.msra.mxu0 %v11918_v47  ;;  %9727 = vmatpush3.bf16.msra.mxu1 %v11920_v42 }
 0x310   : > { %9653 = vmatprep.subr.bf16.mxu0 %v10235_v3  ;;  %9728 = vmatprep.subr.bf16.mxu1 %v10235_v3 }
 0x313   : > { %9655 = vmatpush3.bf16.msra.mxu0 %v11942_v8  ;;  %9730 = vmatpush3.bf16.msra.mxu1 %v11944_v12 }
 0x314   : > { %9656 = vmatprep.subr.bf16.mxu0 %v10235_v3  ;;  %9731 = vmatprep.subr.bf16.mxu1 %v10235_v3 }
 0x317   : > { %9658 = vmatpush3.bf16.msra.mxu0 %v11962_v49  ;;  %9733 = vmatpush3.bf16.msra.mxu1 %v11964_v50 }
 0x318   : > { %9659 = vmatprep.subr.bf16.mxu0 %v10235_v3  ;;  %9734 = vmatprep.subr.bf16.mxu1 %v10235_v3 }
 0x31b   : > { %9661 = vmatpush3.bf16.msra.mxu0 %v11982_v7  ;;  %9736 = vmatpush3.bf16.msra.mxu1 %v11984_v33 }
 0x31c   : > { %8292 = vmatprep.subr.mxu0 %v12721_v38  ;;  %8417 = vmatprep.subr.mxu1 %v12721_v38 }
 0x31f   : > { %8293 = vmatpush3.msk.msra.mxu0 %vm3560_vm3, %v12007_v59  ;;  %8418 = vmatpush3.msk.msra.mxu1 %vm3560_vm3, %v12012_v11 }
 0x320   : > { %8295 = vmatmul.mubr.msk.f32.vlgmr.msra.gmra.mrb[8].mxu0 %vm3556_vm4, %v12028_v15  ;;  %9662 = vmatprep.subr.bf16.mxu0 %v10235_v3 }
 0x321   : > { %8420 = vmatmul.mubr.msk.f32.vlgmr.msra.gmra.mrb[8].mxu1 %vm3556_vm4, %v12028_v15  ;;  %9737 = vmatprep.subr.bf16.mxu1 %v10235_v3 }
 0x322   : > { %9664 = vmatpush3.bf16.msra.mxu0 %v12014_v19  ;;  %9739 = vmatpush3.bf16.msra.mxu1 %v12016_v24  ;;  %v6127_v24 = vld [vmem:[%s12674_s3 + $0x2f8] sm:$0xff] }
 0x323   : > { %9665 = vmatprep.subr.bf16.mxu0 %v10235_v3  ;;  %9740 = vmatprep.subr.bf16.mxu1 %v10235_v3  ;;  %v12088_v39 = vpack.c.bf16 %v6127_v24, %v6126_v45  ;;  %v6194_v24 = vld [vmem:[%s12674_s3 + $0x360] sm:$0xff] }
 0x324   : > { %8319 = vmatprep.mubr.msk.f32.mxu0 %vm10236_vm0, %v12721_v38  ;;  %8444 = vmatprep.mubr.msk.f32.mxu1 %vm10236_vm0, %v12721_v38 }
 0x326   : > { %9667 = vmatpush3.bf16.msra.mxu0 %v12044_v46  ;;  %9742 = vmatpush3.bf16.msra.mxu1 %v12046_v20  ;;  %v6191_v20 = vld [vmem:[%s12674_s3 + $0x348] sm:$0xff] }
 0x327   : > { %9668 = vmatprep.subr.bf16.mxu0 %v10235_v3  ;;  %9743 = vmatprep.subr.bf16.mxu1 %v10235_v3  ;;  %v12090_v22 = vpack.c.bf16 %v6192_v2, %v6191_v20  ;;  %v6129_v46 = vld [vmem:[%s12674_s3 + $0x308] sm:$0xff]  ;;  %v12121_v2 = vld [vmem:[%s12674_s3 + $0x310] sm:$0xf] }
 0x328   : > { %v12108_v20 = vpack.c.bf16 %v6129_v46, %v6128_v43  ;;  %v12126_v46 = vld [vmem:[%s12674_s3 + $0x368] sm:$0xf] }
 0x32a   : > { %9670 = vmatpush3.bf16.msra.mxu0 %v12068_v44  ;;  %9745 = vmatpush3.bf16.msra.mxu1 %v12070_v16  ;;  %v6193_v16 = vld [vmem:[%s12674_s3 + $0x358] sm:$0xff] }
 0x32b   : > { %9671 = vmatprep.subr.bf16.mxu0 %v10235_v3  ;;  %9746 = vmatprep.subr.bf16.mxu1 %v10235_v3  ;;  %v12110_v45 = vpack.c.bf16 %v6194_v24, %v6193_v16  ;;  %v12132_v16 = vld [vmem:[#allocation2 + $0x2] sm:$0x1f] }
 0x32e   : > { %9673 = vmatpush3.bf16.msra.mxu0 %v12088_v39  ;;  %9748 = vmatpush3.bf16.msra.mxu1 %v12090_v22 }
 0x32f   : > { %9674 = vmatprep.subr.bf16.mxu0 %v10235_v3  ;;  %9749 = vmatprep.subr.bf16.mxu1 %v10235_v3 }
 0x332   : > { %9676 = vmatpush3.bf16.msra.mxu0 %v12108_v20  ;;  %9751 = vmatpush3.bf16.msra.mxu1 %v12110_v45 }
 0x333   : > { %8317 = vmatprep.subr.mxu0 %v12721_v38  ;;  %8442 = vmatprep.subr.mxu1 %v12721_v38 }
 0x336   : > { %8318 = vmatpush3.msk.msra.mxu0 %vm3560_vm3, %v12121_v2  ;;  %8443 = vmatpush3.msk.msra.mxu1 %vm3560_vm3, %v12126_v46 }
 0x337   : > { %8320 = vmatmul.mubr.msk.f32.vlgmr.msra.gmra.mrb[8].mxu0 %vm3556_vm4, %v12132_v16  ;;  %8445 = vmatmul.mubr.msk.f32.vlgmr.msra.gmra.mrb[8].mxu1 %vm3556_vm4, %v12132_v16 }
 0x338   : > { %9752 = vmatprep.subr.bf16.mxu0 %v10235_v3  ;;  %9827 = vmatprep.subr.bf16.mxu1 %v10235_v3 }
 0x339   : > { %9754 = vmatpush3.bf16.msra.mxu0 %v11519_v5  ;;  %9829 = vmatpush3.bf16.msra.mxu1 %v11523_v6  ;;  %v12737_v5 = vld [vmem:[#allocation15_spill] sm:$0xff]  ;;  %v12738_v6 = vld [vmem:[#allocation16_spill] sm:$0xff] }
 0x33a   : > { %9755 = vmatprep.subr.bf16.mxu0 %v10235_v3  ;;  %9830 = vmatprep.subr.bf16.mxu1 %v10235_v3 }
 0x33b   : > { %8469 = vmatprep.mubr.msk.f32.mxu0 %vm10236_vm0, %v12721_v38  ;;  %8594 = vmatprep.mubr.msk.f32.mxu1 %vm10236_vm0, %v12721_v38 }
 0x33d   : > { %9757 = vmatpush3.bf16.msra.mxu0 %v11541_v34  ;;  %9832 = vmatpush3.bf16.msra.mxu1 %v11545_v35  ;;  %v12739_v34 = vld [vmem:[#allocation17_spill] sm:$0xff]  ;;  %v12740_v35 = vld [vmem:[#allocation18_spill] sm:$0xff] }
 0x33e   : > { %9758 = vmatprep.subr.bf16.mxu0 %v10235_v3  ;;  %9833 = vmatprep.subr.bf16.mxu1 %v10235_v3 }
 0x341   : > { %9760 = vmatpush3.bf16.msra.mxu0 %v11565_v54  ;;  %9835 = vmatpush3.bf16.msra.mxu1 %v11570_v0  ;;  %v6220_v54 = vld [vmem:[%s12676_s5 + $0x50] sm:$0xff]  ;;  %v6221_v0 = vld [vmem:[%s12676_s5 + $0x58] sm:$0xff] }
 0x342   : > { %9761 = vmatprep.subr.bf16.mxu0 %v10235_v3  ;;  %9836 = vmatprep.subr.bf16.mxu1 %v10235_v3 }
 0x345   : > { %9763 = vmatpush3.bf16.msra.mxu0 %v11585_v29  ;;  %9838 = vmatpush3.bf16.msra.mxu1 %v11590_v57  ;;  %v5133_v29 = vld [vmem:[%s12676_s5] sm:$0xff]  ;;  %v5134_v57 = vld [vmem:[%s12676_s5 + $0x8] sm:$0xff] }
 0x346   : > { %9764 = vmatprep.subr.bf16.mxu0 %v10235_v3  ;;  %9839 = vmatprep.subr.bf16.mxu1 %v10235_v3 }
 0x349   : > { %9766 = vmatpush3.bf16.msra.mxu0 %v11605_v48  ;;  %9841 = vmatpush3.bf16.msra.mxu1 %v11610_v60  ;;  %v9918_v48 = vpack.c.bf16 %v6221_v0, %v6220_v54  ;;  %v9903_v60 = vpack.c.bf16 %v5134_v57, %v5133_v29  ;;  %v6242_v54 = vld [vmem:[%s12676_s5 + $0xf0] sm:$0xff]  ;;  %v6243_v0 = vld [vmem:[%s12676_s5 + $0xf8] sm:$0xff]  ;;  %v6244_v57 = vld [vmem:[%s12676_s5 + $0x100] sm:$0xff] }
 0x34a   : > { %8467 = vmatprep.subr.mxu0 %v12721_v38  ;;  %8592 = vmatprep.subr.mxu1 %v12721_v38  ;;  %v9948_v29 = vpack.c.bf16 %v6243_v0, %v6242_v54  ;;  %v5652_v54 = vld [vmem:[%s12680_s9 + $0x8] sm:$0xff] }
 0x34d   : > { %8468 = vmatpush3.msk.msra.mxu0 %vm3560_vm3, %v11618_v1  ;;  %8593 = vmatpush3.msk.msra.mxu1 %vm3560_vm3, %v11624_v21  ;;  %v4691_v1 = vld [vmem:[#allocation2 + $0xa] sm:$0x1f]  ;;  %v6222_v21 = vld [vmem:[%s12676_s5 + $0x60] sm:$0xff] }
 0x34e   : > { %8470 = vmatmul.mubr.msk.f32.vlgmr.msra.gmra.mrb[10].mxu0 %vm3556_vm4, %v11888_v28  ;;  %9767 = vmatprep.subr.bf16.mxu0 %v10235_v3 }
 0x34f   : > { %8595 = vmatmul.mubr.msk.f32.vlgmr.msra.gmra.mrb[10].mxu1 %vm3556_vm4, %v11888_v28  ;;  %9842 = vmatprep.subr.bf16.mxu1 %v10235_v3 }
 0x350   : > { %9769 = vmatpush3.bf16.msra.mxu0 %v11646_v13  ;;  %9844 = vmatpush3.bf16.msra.mxu1 %v11648_v18  ;;  %v6223_v13 = vld [vmem:[%s12676_s5 + $0x68] sm:$0xff] }
 0x351   : > { %9770 = vmatprep.subr.bf16.mxu0 %v10235_v3  ;;  %9845 = vmatprep.subr.bf16.mxu1 %v10235_v3  ;;  %v9921_v18 = vpack.c.bf16 %v6223_v13, %v6222_v21  ;;  %v6246_v21 = vld [vmem:[%s12676_s5 + $0x110] sm:$0xff]  ;;  %v6247_v13 = vld [vmem:[%s12676_s5 + $0x118] sm:$0xff] }
 0x352   : > { %8494 = vmatprep.mubr.msk.f32.mxu0 %vm10236_vm0, %v12721_v38  ;;  %8619 = vmatprep.mubr.msk.f32.mxu1 %vm10236_vm0, %v12721_v38 }
 0x354   : > { %9772 = vmatpush3.bf16.msra.mxu0 %v11670_v36  ;;  %9847 = vmatpush3.bf16.msra.mxu1 %v11672_v37  ;;  %v5136_v36 = vld [vmem:[%s12676_s5 + $0x18] sm:$0xff] }
 0x355   : > { %9773 = vmatprep.subr.bf16.mxu0 %v10235_v3  ;;  %9848 = vmatprep.subr.bf16.mxu1 %v10235_v3 }
 0x358   : > { %9775 = vmatpush3.bf16.msra.mxu0 %v11694_v55  ;;  %9850 = vmatpush3.bf16.msra.mxu1 %v11696_v56  ;;  %v6224_v55 = vld [vmem:[%s12676_s5 + $0x70] sm:$0xff]  ;;  %v6225_v56 = vld [vmem:[%s12676_s5 + $0x78] sm:$0xff] }
 0x359   : > { %9776 = vmatprep.subr.bf16.mxu0 %v10235_v3  ;;  %9851 = vmatprep.subr.bf16.mxu1 %v10235_v3 }
 0x35c   : > { %9778 = vmatpush3.bf16.msra.mxu0 %v11714_v26  ;;  %9853 = vmatpush3.bf16.msra.mxu1 %v11716_v27  ;;  %v9924_v26 = vpack.c.bf16 %v6225_v56, %v6224_v55  ;;  %v5137_v27 = vld [vmem:[%s12676_s5 + $0x20] sm:$0xff]  ;;  %v6250_v55 = vld [vmem:[%s12676_s5 + $0x130] sm:$0xff]  ;;  %v6251_v56 = vld [vmem:[%s12676_s5 + $0x138] sm:$0xff] }
 0x35d   : > { %9779 = vmatprep.subr.bf16.mxu0 %v10235_v3  ;;  %9854 = vmatprep.subr.bf16.mxu1 %v10235_v3 }
 0x360   : > { %9781 = vmatpush3.bf16.msra.mxu0 %v11734_v10  ;;  %9856 = vmatpush3.bf16.msra.mxu1 %v11736_v14  ;;  %v5138_v10 = vld [vmem:[%s12676_s5 + $0x28] sm:$0xff] }
 0x361   : > { %8492 = vmatprep.subr.mxu0 %v12721_v38  ;;  %8617 = vmatprep.subr.mxu1 %v12721_v38  ;;  %v9909_v14 = vpack.c.bf16 %v5138_v10, %v5137_v27  ;;  %v6253_v27 = vld [vmem:[%s12676_s5 + $0x140] sm:$0xff]  ;;  %v6254_v10 = vld [vmem:[%s12676_s5 + $0x148] sm:$0xff] }
 0x364   : > { %8493 = vmatpush3.msk.msra.mxu0 %vm3560_vm3, %v11759_v9  ;;  %8618 = vmatpush3.msk.msra.mxu1 %vm3560_vm3, %v11764_v32  ;;  %v6226_v9 = vld [vmem:[%s12676_s5 + $0x80] sm:$0xff]  ;;  %v6227_v32 = vld [vmem:[%s12676_s5 + $0x88] sm:$0xff] }
 0x365   : > { %8495 = vmatmul.mubr.msk.f32.vlgmr.msra.gmra.mrb[10].mxu0 %vm3556_vm4, %v11662_v31  ;;  %9782 = vmatprep.subr.bf16.mxu0 %v10235_v3 }
 0x366   : > { %8620 = vmatmul.mubr.msk.f32.vlgmr.msra.gmra.mrb[10].mxu1 %vm3556_vm4, %v11662_v31  ;;  %9857 = vmatprep.subr.bf16.mxu1 %v10235_v3  ;;  %v5135_v31 = vld [vmem:[%s12676_s5 + $0x10] sm:$0xff] }
 0x367   : > { %9784 = vmatpush3.bf16.msra.mxu0 %v11766_v51  ;;  %9859 = vmatpush3.bf16.msra.mxu1 %v11768_v52  ;;  %v9906_v37 = vpack.c.bf16 %v5136_v36, %v5135_v31  ;;  %v9927_v51 = vpack.c.bf16 %v6227_v32, %v6226_v9  ;;  %v5139_v52 = vld [vmem:[%s12676_s5 + $0x30] sm:$0xff]  ;;  %v6248_v31 = vld [vmem:[%s12676_s5 + $0x120] sm:$0xff]  ;;  %v6249_v36 = vld [vmem:[%s12676_s5 + $0x128] sm:$0xff] }
 0x368   : > { %9785 = vmatprep.subr.bf16.mxu0 %v10235_v3  ;;  %9860 = vmatprep.subr.bf16.mxu1 %v10235_v3  ;;  %v6255_v9 = vld [vmem:[%s12676_s5 + $0x150] sm:$0xff]  ;;  %v6256_v32 = vld [vmem:[%s12676_s5 + $0x158] sm:$0xff] }
 0x369   : > { %8519 = vmatprep.mubr.msk.f32.mxu0 %vm10236_vm0, %v12721_v38  ;;  %8644 = vmatprep.mubr.msk.f32.mxu1 %vm10236_vm0, %v12721_v38 }
 0x36b   : > { %9787 = vmatpush3.bf16.msra.mxu0 %v11792_v23  ;;  %9862 = vmatpush3.bf16.msra.mxu1 %v11794_v17  ;;  %v5140_v23 = vld [vmem:[%s12676_s5 + $0x38] sm:$0xff] }
 0x36c   : > { %9788 = vmatprep.subr.bf16.mxu0 %v10235_v3  ;;  %9863 = vmatprep.subr.bf16.mxu1 %v10235_v3  ;;  %v9912_v17 = vpack.c.bf16 %v5140_v23, %v5139_v52  ;;  %v9966_v52 = vpack.c.bf16 %v6256_v32, %v6255_v9  ;;  %v6257_v23 = vld [vmem:[%s12676_s5 + $0x160] sm:$0xff] }
 0x36d   : > { %v5663_v32 = vld [vmem:[%s12680_s9 + $0x60] sm:$0xff] }
 0x36f   : > { %9790 = vmatpush3.bf16.msra.mxu0 %v11816_v41  ;;  %9865 = vmatpush3.bf16.msra.mxu1 %v11818_v4  ;;  %v6228_v41 = vld [vmem:[%s12676_s5 + $0x90] sm:$0xff]  ;;  %v6229_v4 = vld [vmem:[%s12676_s5 + $0x98] sm:$0xff] }
 0x370   : > { %9791 = vmatprep.subr.bf16.mxu0 %v10235_v3  ;;  %9866 = vmatprep.subr.bf16.mxu1 %v10235_v3 }
 0x373   : > { %9793 = vmatpush3.bf16.msra.mxu0 %v11836_v25  ;;  %9868 = vmatpush3.bf16.msra.mxu1 %v11838_v30  ;;  %v5141_v25 = vld [vmem:[%s12676_s5 + $0x40] sm:$0xff]  ;;  %v9930_v30 = vpack.c.bf16 %v6229_v4, %v6228_v41  ;;  %v6259_v4 = vld [vmem:[%s12676_s5 + $0x170] sm:$0xff] }
 0x374   : > { %9794 = vmatprep.subr.bf16.mxu0 %v10235_v3  ;;  %9869 = vmatprep.subr.bf16.mxu1 %v10235_v3 }
 0x377   : > { %9796 = vmatpush3.bf16.msra.mxu0 %v11856_v61  ;;  %9871 = vmatpush3.bf16.msra.mxu1 %v11858_v62  ;;  %v5142_v61 = vld [vmem:[%s12676_s5 + $0x48] sm:$0xff] }
 0x378   : > { %8517 = vmatprep.subr.mxu0 %v12721_v38  ;;  %8642 = vmatprep.subr.mxu1 %v12721_v38  ;;  %v9915_v62 = vpack.c.bf16 %v5142_v61, %v5141_v25  ;;  %v6260_v25 = vld [vmem:[%s12676_s5 + $0x178] sm:$0xff]  ;;  %v6261_v61 = vld [vmem:[%s12676_s5 + $0x180] sm:$0xff] }
 0x37b   : > { %8518 = vmatpush3.msk.msra.mxu0 %vm3560_vm3, %v11881_v53  ;;  %8643 = vmatpush3.msk.msra.mxu1 %vm3560_vm3, %v11886_v63 }
 0x37c   : > { %8520 = vmatmul.mubr.msk.f32.vlgmr.msra.gmra.mrb[10].mxu0 %vm3556_vm4, %v12028_v15  ;;  %9797 = vmatprep.subr.bf16.mxu0 %v10235_v3 }
 0x37d   : > { %8645 = vmatmul.mubr.msk.f32.vlgmr.msra.gmra.mrb[10].mxu1 %vm3556_vm4, %v12028_v15  ;;  %9872 = vmatprep.subr.bf16.mxu1 %v10235_v3 }
 0x37e   : > { %9799 = vmatpush3.bf16.msra.mxu0 %v11890_v40  ;;  %9874 = vmatpush3.bf16.msra.mxu1 %v11892_v58 }
 0x37f   : > { %9800 = vmatprep.subr.bf16.mxu0 %v10235_v3  ;;  %9875 = vmatprep.subr.bf16.mxu1 %v10235_v3 }
 0x380   : > { %8544 = vmatprep.mubr.msk.f32.mxu0 %vm10236_vm0, %v12721_v38  ;;  %8669 = vmatprep.mubr.msk.f32.mxu1 %vm10236_vm0, %v12721_v38 }
 0x382   : > { %9802 = vmatpush3.bf16.msra.mxu0 %v11918_v47  ;;  %9877 = vmatpush3.bf16.msra.mxu1 %v11920_v42 }
 0x383   : > { %9803 = vmatprep.subr.bf16.mxu0 %v10235_v3  ;;  %9878 = vmatprep.subr.bf16.mxu1 %v10235_v3 }
 0x386   : > { %9805 = vmatpush3.bf16.msra.mxu0 %v11942_v8  ;;  %9880 = vmatpush3.bf16.msra.mxu1 %v11944_v12 }
 0x387   : > { %9806 = vmatprep.subr.bf16.mxu0 %v10235_v3  ;;  %9881 = vmatprep.subr.bf16.mxu1 %v10235_v3 }
 0x38a   : > { %9808 = vmatpush3.bf16.msra.mxu0 %v11962_v49  ;;  %9883 = vmatpush3.bf16.msra.mxu1 %v11964_v50  ;;  %v6218_v50 = vld [vmem:[%s12675_s4] ss:$0 sm:$0xff] }
 0x38b   : > { %9809 = vmatprep.subr.bf16.mxu0 %v10235_v3  ;;  %9884 = vmatprep.subr.bf16.mxu1 %v10235_v3 }
 0x38e   : > { %9811 = vmatpush3.bf16.msra.mxu0 %v11982_v7  ;;  %9886 = vmatpush3.bf16.msra.mxu1 %v11984_v33 }
 0x38f   : > { %8542 = vmatprep.subr.mxu0 %v12721_v38  ;;  %8667 = vmatprep.subr.mxu1 %v12721_v38 }
 0x392   : > { %8543 = vmatpush3.msk.msra.mxu0 %vm3560_vm3, %v12007_v59  ;;  %8668 = vmatpush3.msk.msra.mxu1 %vm3560_vm3, %v12012_v11  ;;  %v6231_v11 = vld [vmem:[%s12676_s5 + $0xa0] sm:$0xff] }
 0x393   : > { %8545 = vmatmul.mubr.msk.f32.vlgmr.msra.gmra.mrb[10].mxu0 %vm3556_vm4, %v12132_v16  ;;  %9812 = vmatprep.subr.bf16.mxu0 %v10235_v3 }
 0x394   : > { %8670 = vmatmul.mubr.msk.f32.vlgmr.msra.gmra.mrb[10].mxu1 %vm3556_vm4, %v12132_v16  ;;  %9887 = vmatprep.subr.bf16.mxu1 %v10235_v3  ;;  %v6238_v16 = vld [vmem:[%s12676_s5 + $0xd8] sm:$0xff] }
 0x395   : > { %9814 = vmatpush3.bf16.msra.mxu0 %v12014_v19  ;;  %9889 = vmatpush3.bf16.msra.mxu1 %v12737_v5  ;;  %v6232_v19 = vld [vmem:[%s12676_s5 + $0xa8] sm:$0xff] }
 0x396   : > { %9815 = vmatprep.subr.bf16.mxu0 %v10235_v3  ;;  %9890 = vmatprep.subr.bf16.mxu1 %v10235_v3  ;;  %v9933_v15 = vpack.c.bf16 %v6232_v19, %v6231_v11  ;;  %v5571_v11 = vld [vmem:[%s12678_s7 + $0x40] sm:$0xff]  ;;  %v5572_v19 = vld [vmem:[%s12678_s7 + $0x48] sm:$0xff] }
 0x397   : > { %8569 = vmatprep.mubr.msk.f32.mxu0 %vm10236_vm0, %v12721_v38  ;;  %8694 = vmatprep.mubr.msk.f32.mxu1 %vm10236_vm0, %v12721_v38 }
 0x399   : > { %9817 = vmatpush3.bf16.msra.mxu0 %v12738_v6  ;;  %9892 = vmatpush3.bf16.msra.mxu1 %v12739_v34  ;;  %v6239_v6 = vld [vmem:[%s12676_s5 + $0xe0] sm:$0xff]  ;;  %v6240_v34 = vld [vmem:[%s12676_s5 + $0xe8] sm:$0xff] }
 0x39a   : > { %9818 = vmatprep.subr.bf16.mxu0 %v10235_v3  ;;  %9893 = vmatprep.subr.bf16.mxu1 %v10235_v3 }
 0x39d   : > { %9820 = vmatpush3.bf16.msra.mxu0 %v12068_v44  ;;  %9895 = vmatpush3.bf16.msra.mxu1 %v12740_v35  ;;  %v6233_v44 = vld [vmem:[%s12676_s5 + $0xb0] sm:$0xff]  ;;  %v9945_v35 = vpack.c.bf16 %v6240_v34, %v6239_v6  ;;  %v5131_v6 = vld [vmem:[%s12677_s6] sm:$0x1] }
 0x39e   : > { %9821 = vmatprep.subr.bf16.mxu0 %v10235_v3  ;;  %9896 = vmatprep.subr.bf16.mxu1 %v10235_v3 }
 0x3a1   : > { %9823 = vmatpush3.bf16.msra.mxu0 %v12088_v39  ;;  %9898 = vmatpush3.bf16.msra.mxu1 %v12090_v22  ;;  %v6234_v39 = vld [vmem:[%s12676_s5 + $0xb8] sm:$0xff] }
 0x3a2   : > { %9824 = vmatprep.subr.bf16.mxu0 %v10235_v3  ;;  %9899 = vmatprep.subr.bf16.mxu1 %v10235_v3  ;;  %v9936_v24 = vpack.c.bf16 %v6234_v39, %v6233_v44  ;;  %v5573_v44 = vld [vmem:[%s12678_s7 + $0x50] sm:$0xff]  ;;  %v5574_v39 = vld [vmem:[%s12678_s7 + $0x58] sm:$0xff] }
 0x3a5   : > { %9826 = vmatpush3.bf16.msra.mxu0 %v12108_v20  ;;  %9901 = vmatpush3.bf16.msra.mxu1 %v12110_v45  ;;  %v6235_v20 = vld [vmem:[%s12676_s5 + $0xc0] sm:$0xff]  ;;  %v6236_v45 = vld [vmem:[%s12676_s5 + $0xc8] sm:$0xff] }
 0x3a6   : > { %8567 = vmatprep.subr.mxu0 %v12721_v38  ;;  %8692 = vmatprep.subr.mxu1 %v12721_v38 }
 0x3a9   : > { %8568 = vmatpush3.msk.msra.mxu0 %vm3560_vm3, %v12121_v2  ;;  %8693 = vmatpush3.msk.msra.mxu1 %vm3560_vm3, %v12126_v46  ;;  %v9939_v2 = vpack.c.bf16 %v6236_v45, %v6235_v20  ;;  %v6237_v46 = vld [vmem:[%s12676_s5 + $0xd0] sm:$0xff] }
 0x3aa   : > { %8570 = vmatmul.mubr.msk.f32.vlgmr.msra.gmra.mrb[10].mxu0 %vm3556_vm4, %v4691_v1  ;;  %8695 = vmatmul.mubr.msk.f32.vlgmr.msra.gmra.mrb[10].mxu1 %vm3556_vm4, %v4691_v1  ;;  %v9942_v5 = vpack.c.bf16 %v6238_v16, %v6237_v46  ;;  %v5577_v45 = vld [vmem:[%s12678_s7 + $0x70] sm:$0xff] }
 0x3ab   : > { %9917 = vmatprep.subr.bf16.mxu0 %v10235_v3  ;;  %9902 = vmatprep.subr.bf16.mxu1 %v10235_v3 }
 0x3ac   : > { %9919 = vmatpush3.bf16.msra.mxu0 %v9918_v48  ;;  %9904 = vmatpush3.bf16.msra.mxu1 %v9903_v60  ;;  %v6245_v48 = vld [vmem:[%s12676_s5 + $0x108] sm:$0xff] }
 0x3ad   : > { %9920 = vmatprep.subr.bf16.mxu0 %v10235_v3  ;;  %9905 = vmatprep.subr.bf16.mxu1 %v10235_v3  ;;  %v9951_v1 = vpack.c.bf16 %v6245_v48, %v6244_v57 }
 0x3ae   : > { %8717 = vmatprep.mubr.msk.f32.mxu1 %vm10236_vm0, %v12721_v38  ;;  %8740 = vmatprep.mubr.msk.f32.mxu0 %vm10236_vm0, %v12721_v38 }
 0x3b0   : > { %9922 = vmatpush3.bf16.msra.mxu0 %v9921_v18  ;;  %9907 = vmatpush3.bf16.msra.mxu1 %v9906_v37  ;;  %v9954_v18 = vpack.c.bf16 %v6247_v13, %v6246_v21  ;;  %v9957_v37 = vpack.c.bf16 %v6249_v36, %v6248_v31  ;;  %v5654_v21 = vld [vmem:[%s12680_s9 + $0x18] sm:$0xff]  ;;  %v5656_v31 = vld [vmem:[%s12680_s9 + $0x28] sm:$0xff] }
 0x3b1   : > { %9923 = vmatprep.subr.bf16.mxu0 %v10235_v3  ;;  %9908 = vmatprep.subr.bf16.mxu1 %v10235_v3 }
 0x3b4   : > { %9925 = vmatpush3.bf16.msra.mxu0 %v9924_v26  ;;  %9910 = vmatpush3.bf16.msra.mxu1 %v9909_v14  ;;  %v9960_v26 = vpack.c.bf16 %v6251_v56, %v6250_v55  ;;  %v9963_v14 = vpack.c.bf16 %v6254_v10, %v6253_v27  ;;  %v5659_v56 = vld [vmem:[%s12680_s9 + $0x40] sm:$0xff]  ;;  %v5661_v10 = vld [vmem:[%s12680_s9 + $0x50] sm:$0xff] }
 0x3b5   : > { %9926 = vmatprep.subr.bf16.mxu0 %v10235_v3  ;;  %9911 = vmatprep.subr.bf16.mxu1 %v10235_v3 }
 0x3b8   : > { %9928 = vmatpush3.bf16.msra.mxu0 %v9927_v51  ;;  %9913 = vmatpush3.bf16.msra.mxu1 %v9912_v17  ;;  %v6258_v17 = vld [vmem:[%s12676_s5 + $0x168] sm:$0xff] }
 0x3b9   : > { %9929 = vmatprep.subr.bf16.mxu0 %v10235_v3  ;;  %9914 = vmatprep.subr.bf16.mxu1 %v10235_v3  ;;  %v9969_v41 = vpack.c.bf16 %v6258_v17, %v6257_v23  ;;  %v5665_v23 = vld [vmem:[%s12680_s9 + $0x70] sm:$0xff]  ;;  %v5666_v17 = vld [vmem:[%s12680_s9 + $0x78] sm:$0xff] }
 0x3bc   : > { %9931 = vmatpush3.bf16.msra.mxu0 %v9930_v30  ;;  %9916 = vmatpush3.bf16.msra.mxu1 %v9915_v62  ;;  %v9972_v30 = vpack.c.bf16 %v6260_v25, %v6259_v4  ;;  %v6262_v62 = vld [vmem:[%s12676_s5 + $0x188] sm:$0xff]  ;;  %v5579_v4 = vld [vmem:[%s12679_s8] sm:$0x1] }
 0x3bd   : > { %9932 = vmatprep.subr.bf16.mxu0 %v10235_v3  ;;  %9977 = vmatprep.subr.bf16.mxu1 %v10235_v3 }
 0x40a   : > { %v3975_v53 = vpop.f32.mrb[8].mxu0  ;;  %v4403_v63 = vpop.f32.mrb[8].mxu1 }
 0x40b   : > { %v4408_v28 = vmax.f32 %v3975_v53, %v4403_v63  ;;  %v8321_v40 = vpop.f32.mrb[9].mxu0  ;;  %v8446_v58 = vpop.f32.mrb[9].mxu1  ;;  %v9975_v53 = vpack.c.bf16 %v6262_v62, %v6261_v61 }
 0x40c   : > { %v5564_v40 = vld [vmem:[%s12678_s7 + $0x8] sm:$0xff]  ;;  %v5565_v58 = vld [vmem:[%s12678_s7 + $0x10] sm:$0xff] }
 0x47d   : > { %v4761_v47 = vpop.f32.mrb[10].mxu0  ;;  %v5115_v42 = vpop.f32.mrb[10].mxu1 }
 0x47e   : > { %v4766_v8 = vmax.f32 %v4408_v28, %v4761_v47  ;;  %v8571_v12 = vpop.f32.mrb[11].mxu0  ;;  %v8696_v49 = vpop.f32.mrb[11].mxu1  ;;  %v5563_v28 = vld [vmem:[%s12678_s7] sm:$0xff] }
 0x47f   : > { %v9978_v47 = vpack.c.bf16 %v5564_v40, %v5563_v28  ;;  %v5567_v12 = vld [vmem:[%s12678_s7 + $0x20] sm:$0xff]  ;;  %v5568_v49 = vld [vmem:[%s12678_s7 + $0x28] sm:$0xff] }
 0x480   : > { %v5120_v7 = vmax.f32 %v4766_v8, %v5115_v42  ;;  %v5566_v42 = vld [vmem:[%s12678_s7 + $0x18] sm:$0xff] }
 0x481   : > { %v9981_v8 = vpack.c.bf16 %v5566_v42, %v5565_v58 }
 0x482   : > { %v5127_v33 = vadd.f32 %v6218_v50, %v5120_v7  ;;  %v9984_v50 = vpack.c.bf16 %v5568_v49, %v5567_v12  ;;  %v5569_v7 = vld [vmem:[%s12678_s7 + $0x30] sm:$0xff] }
 0x484   : > { %v5128_v59 = vmax.f32 %v5127_v33, 0.0  ;;  %v5570_v33 = vld [vmem:[%s12678_s7 + $0x38] sm:$0xff] }
 0x486   : > { %5130 = vst.msk [vmem:[#allocation3] sm:$0x1f] %vm5129_vm5, %v5128_v59  ;;  %v9987_v59 = vpack.c.bf16 %v5570_v33, %v5569_v7 }
 0x48d   : > { %v5132_v22 = vld [vmem:[#allocation3] sm:$0x1]  ;;  %v5218_v43 = vld [vmem:[#allocation3 + $0x1] sm:$0x1]  ;;  %v5304_v60 = vld [vmem:[#allocation3 + $0x2] sm:$0x1] }
 0x48e   : > { %8718 = vmatmul.mubr.msk.f32.vlgmr.msra.gmra.mrb[12].mxu1 %vm5143_vm6, %v5132_v22  ;;  %8741 = vmatmul.mubr.msk.f32.vlgmr.msra.gmra.mrb[12].mxu0 %vm5143_vm6, %v5218_v43  ;;  %v5390_v51 = vld [vmem:[#allocation3 + $0x3] sm:$0x1]  ;;  %v5476_v63 = vld [vmem:[#allocation3 + $0x4] sm:$0x1]  ;;  %v9993_v22 = vpack.c.bf16 %v5574_v39, %v5573_v44  ;;  %v5575_v43 = vld [vmem:[%s12678_s7 + $0x60] sm:$0xff] }
 0x48f   : > { %9934 = vmatpush3.bf16.msra.mxu0 %v9933_v15  ;;  %8763 = vmatprep.mubr.msk.f32.mxu0 %vm10236_vm0, %v12721_v38  ;;  %v9990_v15 = vpack.c.bf16 %v5572_v19, %v5571_v11 }
 0x490   : > { %9935 = vmatprep.subr.bf16.mxu0 %v10235_v3  ;;  %8844 = vmatprep.mubr.msk.f32.mxu1 %vm10236_vm0, %v12721_v38 }
 0x491   : > { %9979 = vmatpush3.bf16.msra.mxu1 %v9978_v47 }
 0x492   : > { %9980 = vmatprep.subr.bf16.mxu1 %v10235_v3 }
 0x493   : > { %9937 = vmatpush3.bf16.msra.mxu0 %v9936_v24  ;;  %v5576_v24 = vld [vmem:[%s12678_s7 + $0x68] sm:$0xff] }
 0x494   : > { %9938 = vmatprep.subr.bf16.mxu0 %v10235_v3  ;;  %v9996_v20 = vpack.c.bf16 %v5576_v24, %v5575_v43 }
 0x495   : > { %9982 = vmatpush3.bf16.msra.mxu1 %v9981_v8 }
 0x496   : > { %9983 = vmatprep.subr.bf16.mxu1 %v10235_v3 }
 0x497   : > { %9940 = vmatpush3.bf16.msra.mxu0 %v9939_v2  ;;  %v5578_v2 = vld [vmem:[%s12678_s7 + $0x78] sm:$0xff] }
 0x498   : > { %9941 = vmatprep.subr.bf16.mxu0 %v10235_v3  ;;  %v9999_v46 = vpack.c.bf16 %v5578_v2, %v5577_v45 }
 0x499   : > { %9985 = vmatpush3.bf16.msra.mxu1 %v9984_v50 }
 0x49a   : > { %9986 = vmatprep.subr.bf16.mxu1 %v10235_v3 }
 0x49b   : > { %9943 = vmatpush3.bf16.msra.mxu0 %v9942_v5 }
 0x49c   : > { %9944 = vmatprep.subr.bf16.mxu0 %v10235_v3 }
 0x49d   : > { %9988 = vmatpush3.bf16.msra.mxu1 %v9987_v59 }
 0x49e   : > { %9989 = vmatprep.subr.bf16.mxu1 %v10235_v3 }
 0x49f   : > { %9946 = vmatpush3.bf16.msra.mxu0 %v9945_v35  ;;  %v5651_v35 = vld [vmem:[%s12680_s9] sm:$0xff] }
 0x4a0   : > { %9947 = vmatprep.subr.bf16.mxu0 %v10235_v3  ;;  %v10002_v48 = vpack.c.bf16 %v5652_v54, %v5651_v35 }
 0x4a1   : > { %9991 = vmatpush3.bf16.msra.mxu1 %v9990_v15 }
 0x4a2   : > { %8764 = vmatmul.mubr.msk.f32.vlgmr.msra.gmra.mrb[12].mxu0 %vm5143_vm6, %v5304_v60  ;;  %9992 = vmatprep.subr.bf16.mxu1 %v10235_v3 }
 0x4a3   : > { %9949 = vmatpush3.bf16.msra.mxu0 %v9948_v29  ;;  %8786 = vmatprep.mubr.msk.f32.mxu0 %vm10236_vm0, %v12721_v38 }
 0x4a4   : > { %9950 = vmatprep.subr.bf16.mxu0 %v10235_v3 }
 0x4a5   : > { %9994 = vmatpush3.bf16.msra.mxu1 %v9993_v22 }
 0x4a6   : > { %9995 = vmatprep.subr.bf16.mxu1 %v10235_v3 }
 0x4a7   : > { %9952 = vmatpush3.bf16.msra.mxu0 %v9951_v1  ;;  %v5653_v1 = vld [vmem:[%s12680_s9 + $0x10] sm:$0xff] }
 0x4a8   : > { %9953 = vmatprep.subr.bf16.mxu0 %v10235_v3  ;;  %v10005_v13 = vpack.c.bf16 %v5654_v21, %v5653_v1 }
 0x4a9   : > { %9997 = vmatpush3.bf16.msra.mxu1 %v9996_v20 }
 0x4aa   : > { %9998 = vmatprep.subr.bf16.mxu1 %v10235_v3 }
 0x4ab   : > { %9955 = vmatpush3.bf16.msra.mxu0 %v9954_v18  ;;  %v5655_v18 = vld [vmem:[%s12680_s9 + $0x20] sm:$0xff] }
 0x4ac   : > { %9956 = vmatprep.subr.bf16.mxu0 %v10235_v3  ;;  %v10008_v36 = vpack.c.bf16 %v5656_v31, %v5655_v18 }
 0x4ad   : > { %10000 = vmatpush3.bf16.msra.mxu1 %v9999_v46 }
 0x4ae   : > { %10001 = vmatprep.subr.bf16.mxu1 %v10235_v3 }
 0x4af   : > { %9958 = vmatpush3.bf16.msra.mxu0 %v9957_v37  ;;  %v5657_v37 = vld [vmem:[%s12680_s9 + $0x30] sm:$0xff] }
 0x4b0   : > { %9959 = vmatprep.subr.bf16.mxu0 %v10235_v3 }
 0x4b3   : > { %9961 = vmatpush3.bf16.msra.mxu0 %v9960_v26  ;;  %v5660_v26 = vld [vmem:[%s12680_s9 + $0x48] sm:$0xff] }
 0x4b4   : > { %9962 = vmatprep.subr.bf16.mxu0 %v10235_v3  ;;  %v10014_v27 = vpack.c.bf16 %v5660_v26, %v5659_v56 }
 0x4b6   : > { %8787 = vmatmul.mubr.msk.f32.vlgmr.msra.gmra.mrb[12].mxu0 %vm5143_vm6, %v5390_v51  ;;  %v5664_v51 = vld [vmem:[%s12680_s9 + $0x68] sm:$0xff] }
 0x4b7   : > { %9964 = vmatpush3.bf16.msra.mxu0 %v9963_v14  ;;  %8809 = vmatprep.mubr.msk.f32.mxu0 %vm10236_vm0, %v12721_v38  ;;  %v5662_v14 = vld [vmem:[%s12680_s9 + $0x58] sm:$0xff] }
 0x4b8   : > { %9965 = vmatprep.subr.bf16.mxu0 %v10235_v3  ;;  %v10017_v9 = vpack.c.bf16 %v5662_v14, %v5661_v10 }
 0x4bb   : > { %9967 = vmatpush3.bf16.msra.mxu0 %v9966_v52  ;;  %v10020_v52 = vpack.c.bf16 %v5664_v51, %v5663_v32 }
 0x4bc   : > { %9968 = vmatprep.subr.bf16.mxu0 %v10235_v3 }
 0x4bf   : > { %9970 = vmatpush3.bf16.msra.mxu0 %v9969_v41  ;;  %v10023_v41 = vpack.c.bf16 %v5666_v17, %v5665_v23 }
 0x4c0   : > { %9971 = vmatprep.subr.bf16.mxu0 %v10235_v3 }
 0x4c3   : > { %9973 = vmatpush3.bf16.msra.mxu0 %v9972_v30 }
 0x4c4   : > { %9974 = vmatprep.subr.bf16.mxu0 %v10235_v3 }
 0x4c7   : > { %9976 = vmatpush3.bf16.msra.mxu0 %v9975_v53 }
 0x4ca   : > { %8810 = vmatmul.mubr.msk.f32.vlgmr.msra.gmra.mrb[12].mxu0 %vm5143_vm6, %v5476_v63 }
 0x561   : > { %v5213_v16 = vpop.f32.mrb[12].mxu1 }
 0x562   : > { %v8719_v5 = vpop.f32.mrb[13].mxu1  ;;  %v5217_v34 = vadd.f32 %v5213_v16, %v5131_v6 }
 0x59d   : > { %v5557_v0 = vpop.f32.mrb[12].mxu0 }
 0x59e   : > { %v10026_v29 = vadd.f32 %v5557_v0, %v5217_v34  ;;  %v8811_v57 = vpop.f32.mrb[13].mxu0 }
 0x5a0   : > { %v5562_v60 = vmax.f32 %v10026_v29, 0.0 }
 0x5a2   : > { %8845 = vmatmul.mubr.f32.vlgmr.msra.gmra.mrb[14].mxu1 %v5562_v60 }
 0x5a3   : > { %10003 = vmatpush3.bf16.msra.mxu1 %v10002_v48  ;;  %8879 = vmatprep.mubr.msk.f32.mxu1 %vm10236_vm0, %v12721_v38  ;;  %v5658_v38 = vld [vmem:[%s12680_s9 + $0x38] sm:$0xff] }
 0x5a4   : > { %10004 = vmatprep.subr.bf16.mxu1 %v10235_v3  ;;  %v10011_v55 = vpack.c.bf16 %v5658_v38, %v5657_v37 }
 0x5a7   : > { %10006 = vmatpush3.bf16.msra.mxu1 %v10005_v13 }
 0x5a8   : > { %10007 = vmatprep.subr.bf16.mxu1 %v10235_v3 }
 0x5ab   : > { %10009 = vmatpush3.bf16.msra.mxu1 %v10008_v36 }
 0x5ac   : > { %10010 = vmatprep.subr.bf16.mxu1 %v10235_v3 }
 0x5af   : > { %10012 = vmatpush3.bf16.msra.mxu1 %v10011_v55 }
 0x5b0   : > { %10013 = vmatprep.subr.bf16.mxu1 %v10235_v3 }
 0x5b3   : > { %10015 = vmatpush3.bf16.msra.mxu1 %v10014_v27 }
 0x5b4   : > { %10016 = vmatprep.subr.bf16.mxu1 %v10235_v3 }
 0x5b7   : > { %10018 = vmatpush3.bf16.msra.mxu1 %v10017_v9 }
 0x5b8   : > { %10019 = vmatprep.subr.bf16.mxu1 %v10235_v3 }
 0x5bb   : > { %10021 = vmatpush3.bf16.msra.mxu1 %v10020_v52 }
 0x5bc   : > { %10022 = vmatprep.subr.bf16.mxu1 %v10235_v3  ;;  %v5667_v3 = vld [vmem:[%s12681_s10] sm:$0x1] }
 0x5bf   : > { %10024 = vmatpush3.bf16.msra.mxu1 %v10023_v41 }
 0x675   : > { %v5646_v25 = vpop.f32.mrb[14].mxu1 }
 0x676   : > { %v5647_v30 = vadd.f32 %v5646_v25, %v5579_v4  ;;  %v8846_v61 = vpop.f32.mrb[15].mxu1 }
 0x678   : > { %v5650_v62 = vmax.f32 %v5647_v30, 0.0 }
 0x67a   : > { %8880 = vmatmul.mubr.f32.vlgmr.msra.gmra.mrb[16].mxu1 %v5650_v62 }
 0x74d   : > { %v5734_v53 = vpop.f32.mrb[16].mxu1 }
 0x74e   : > { %v5735_v63 = vadd.f32 %v5734_v53, %v5667_v3  ;;  %v8881_v28 = vpop.f32.mrb[17].mxu1 }
 0x750   : > { %5738 = vst [vmem:[%s378_s22] sm:$0x1] %v5735_v63 }
 0x751   : > { %10184 = shalt.err (!%p10181_p3)
}
 0x752   : > { %s10185_s14 = scalar_lea.hbm %s12629_s30, 16  ;;  %s10189_s22 = scalar_lea.hbm %s12682_s11, 32 }
 0x753   : > { %p10186_p4 = scmp.ne.s32.totalorder %s12629_s30, %s10185_s14  ;;  %p10190_p9 = scmp.lt.u32.totalorder %s12629_s30, %s12682_s11 }
 0x754   : > { %p10191_p10 = scmp.lt.u32.totalorder %s10189_s22, %s10185_s14  ;;  %p10193_p12 = scmp.lt.u32.totalorder %s10185_s14, %s12629_s30 }
 0x755   : > { %p10187_p7 = pnand %p10186_p4, %p10337_p5 }
 0x756   : > { %p10192_p11 = por %p10191_p10, %p10190_p9 }
 0x757   : > { %p10188_p8 = pneg %p10187_p7 }
 0x758   : > { %p10194_p13 = por %p10193_p12, %p10192_p11 }
 0x75a   : > { %p10195_p0 = pnand %p10194_p13, %p10188_p8 }
 0x75c   : > { %10198 = shalt.err (!%p10195_p0)
}
 0x75d   : > { %10129 = dma.vmem_to_hbm [thread:$0]  (%p10337_p5), %s12631_s24, 16, %s12629_s30, %s5740_s12  }
 0x75e PF: > { %p10135_p1 = scmp.ge.s32.totalorder %s10233_s20, 2  ;;  %s5764_s19 = sand.u32 1, %s10221_s17  }
 0x75f   : > { %s5765_s21 = scalar_lea.sflag [#allocation5], %s5764_s19 }
 0x760   : > { %p10132_p2 = pnand %p10135_p1, %p10341_p6 }
 0x762   : > { %10216 = dma.done.wait (!%p10132_p2), %s5765_s21, 16  }
 0x763   : > { %10218 = vsyncadd (!%p10132_p2), %s5765_s21, 4294967280  ;;  %s12741_s26 = sld [smem:[#allocation7_spill]]  ;;  %s12742_s19 = sld [smem:[#allocation8_spill]] }
 0x764   : > { %p21_p3 = scmp.ge.s32.totalorder %s10324_s23, 4   ;;  %s12743_s17 = smov %s10225_s18 }
 0x765   : > { %s12745_s20 = smov %s10324_s23 }
 0x766   :  { %23 = sbr.rel (!%p21_p3) target bundleno = 3 (0x3), region = 125 }
 0x769   : > { %s12744_s18 = smov %s12741_s26 }
 0x76d   :  { %5769 = vsyncpa [#allocation5], 1 }
 0x76e   :  { %5771 = vsyncpa [#allocation5 + $0x1], 1 }

</bundles_post_ra>
